<compile_context>
chip_gen: v7x
topology: tpu7x:2x2x1
jax: 0.10.0
libtpu: 0.0.40
codegen_flags: <defaults>
</compile_context>

<pallas_src>
import functools

import numpy as np
import jax
import jax.numpy as jnp
from jax.experimental import pallas as pl
from jax.experimental.pallas import tpu as pltpu

NEG_INF = -1e30        # Python floats: jnp scalars here would be captured constants
LEAKY_SLOPE = 0.01     # F.leaky_relu default negative_slope


def _gat_kernel(ei_ref, ej_ref, xj_ref, adj_ref, out_ref,
                m_ref, l_ref, acc_ref, *, ones_col):
    j = pl.program_id(1)
    nj = pl.num_programs(1)

    @pl.when(j == 0)
    def _init():
        m_ref[...] = jnp.full(m_ref.shape, NEG_INF, jnp.float32)
        l_ref[...] = jnp.zeros_like(l_ref)
        acc_ref[...] = jnp.zeros_like(acc_ref)

    mask = adj_ref[...] != 0                               # (TM, TN) bool (adj is int8)
    e = ei_ref[...] + ej_ref[...]                          # (TM,1)+(1,TN) -> (TM,TN)
    e = jnp.maximum(e, LEAKY_SLOPE * e)                    # leaky_relu (2 VPU ops)
    logits = jnp.where(mask, e, NEG_INF)

    # online (flash-style) masked softmax; normalization deferred to the epilogue
    m_prev = m_ref[...]
    m_new = jnp.maximum(m_prev, jnp.max(logits, axis=1, keepdims=True))
    scale = jnp.exp(m_prev - m_new)
    # keep p explicitly masked: for fully-masked rows (padding / zero in-degree)
    # logits - m_new == 0 and an unmasked exp would give 1, corrupting l/acc.
    p = jnp.where(mask, jnp.exp(logits - m_new), 0.0)

    acc_ref[...] = scale * acc_ref[...] + jnp.dot(
        p.astype(jnp.bfloat16), xj_ref[...],
        preferred_element_type=jnp.float32)
    if ones_col is None:
        # no padded feature column available -> explicit running denominator
        l_ref[...] = scale * l_ref[...] + jnp.sum(p, axis=1, keepdims=True)
    m_ref[...] = m_new

    @pl.when(j == nj - 1)
    def _finalize():
        acc = acc_ref[...]
        if ones_col is None:
            l = l_ref[...]
        else:
            # the 1.0-padded column of x rode the matmul: acc[:, ones_col] == sum_j p
            col = jax.lax.broadcasted_iota(jnp.int32, acc.shape, 1)
            l = jnp.sum(jnp.where(col == ones_col, acc, 0.0), axis=1, keepdims=True)
        # zero-degree rows: l == 0 and acc == 0; the 1e-20 clamp keeps the approx
        # reciprocal finite (~1e20) so 0 * inv == 0, matching the reference output 0.
        inv = pl.reciprocal(jnp.maximum(l, 1e-20), approx=True)
        out_ref[...] = jnp.maximum(acc * inv, 0.0).astype(out_ref.dtype)


def _round_up(v, m):
    return (v + m - 1) // m * m


def gat_act_forward(x, a_i, a_j, adj, *, tm=256, tn=512):
    """One FTDEA GAT attention layer.

    x: (N, H) features; a_i / a_j: (H,) attention weight vectors;
    adj: (N, N) with adj[i, j] != 0 iff edge j -> i.  Returns (N, H) float32.
    """
    N, H = x.shape
    Hp = _round_up(H, 128)                  # lane-dense stores / MXU-friendly width
    ones_col = H if Hp > H else None        # padded column that carries the row-sum
    Nr = _round_up(N, tm)                   # target (row) padding, independent of
    Nc = _round_up(N, tn)                   # source (col) padding

    # tiny GEMVs stay in XLA; kernel receives the scores directly
    x_f32 = x.astype(jnp.float32)
    e_i = (x_f32 @ a_i.astype(jnp.float32)).reshape(N, 1)
    e_j = (x_f32 @ a_j.astype(jnp.float32)).reshape(1, N)

    ei_p = jnp.pad(e_i, ((0, Nr - N), (0, 0)))
    ej_p = jnp.pad(e_j, ((0, 0), (0, Nc - N)))
    x_bf = jnp.pad(x.astype(jnp.bfloat16), ((0, Nc - N), (0, Hp - H)))
    if ones_col is not None:
        x_bf = x_bf.at[:, ones_col].set(1.0)
    adj_p = jnp.pad((adj != 0).astype(jnp.int8), ((0, Nr - N), (0, Nc - N)))

    grid = (Nr // tm, Nc // tn)

    # explicit VMEM budget: double-buffered ins/outs ((8,128)-padded tiles) + scratch
    in_bytes = (tm * 128 * 4) + (8 * tn * 4) + (tn * Hp * 2) + (tm * tn * 1)
    out_bytes = tm * Hp * 4
    scratch_bytes = 2 * tm * 128 * 4 + tm * Hp * 4
    vmem_limit = int(min(2 * (in_bytes + out_bytes) + scratch_bytes + (8 << 20),
                         32 << 20))         # <= 32 MiB: safe on v7x's 64 MiB VMEM

    out_p = pl.pallas_call(
        functools.partial(_gat_kernel, ones_col=ones_col),
        out_shape=jax.ShapeDtypeStruct((Nr, Hp), jnp.float32),
        grid=grid,
        in_specs=[
            pl.BlockSpec((tm, 1), lambda i, j: (i, 0)),     # e_i (targets)
            pl.BlockSpec((1, tn), lambda i, j: (0, j)),     # e_j (sources)
            pl.BlockSpec((tn, Hp), lambda i, j: (j, 0)),    # x rows (sources, bf16)
            pl.BlockSpec((tm, tn), lambda i, j: (i, j)),    # int8 adjacency tile
        ],
        out_specs=pl.BlockSpec((tm, Hp), lambda i, j: (i, 0)),
        scratch_shapes=[
            pltpu.VMEM((tm, 1), jnp.float32),    # running max m
            pltpu.VMEM((tm, 1), jnp.float32),    # running denom l (fallback path)
            pltpu.VMEM((tm, Hp), jnp.float32),   # running accumulator
        ],
        compiler_params=pltpu.CompilerParams(
            dimension_semantics=("parallel", "arbitrary"),
            vmem_limit_bytes=vmem_limit),
    )(ei_p, ej_p, x_bf, adj_p)

    return out_p[:N, :H]


def gat_forward(x, params, adj):
    """Full module forward: conv1 -> ELU -> conv2 -> log_softmax."""
    # TODO(synk): dropout(p=0.6) before each conv is identity at inference and is omitted.
    # TODO(synk): multi-head / concat behaviour of GATConv is not modeled; the kernel
    # follows the FTDEA GATConv forward (single-head a_i/a_j scores over raw features).
    h = gat_act_forward(x, params["a_i1"], params["a_j1"], adj)    # conv1 (relu inside)
    h = jax.nn.elu(h)                                              # F.elu
    h = gat_act_forward(h, params["a_i2"], params["a_j2"], adj)    # conv2
    return jax.nn.log_softmax(h, axis=1)                           # F.log_softmax(dim=1)


def _reference_layer(x, a_i, a_j, edge_i, edge_j, num_nodes):
    """Pure-JAX edge-list reference for one layer (f32 throughout)."""
    ei = x @ a_i                          # a_i(x).squeeze()
    ej = x @ a_j
    e = ei[edge_i] + ej[edge_j]           # per-edge score
    e = jnp.where(e > 0, e, 0.01 * e)     # leaky_relu
    m = jax.ops.segment_max(e, edge_i, num_segments=num_nodes)
    m = jnp.where(jnp.isfinite(m), m, 0.0)
    p = jnp.exp(e - m[edge_i])
    s = jax.ops.segment_sum(p, edge_i, num_segments=num_nodes)
    alpha = p / s[edge_i]
    msg = alpha[:, None] * x[edge_j]
    out = jnp.zeros_like(x).at[edge_i].add(msg)   # spmm(edge_index[[1,0]], alpha, ...)
    return jnp.maximum(out, 0.0)


def reference_forward(x, params, edge_i, edge_j, num_nodes):
    h = _reference_layer(x, params["a_i1"], params["a_j1"], edge_i, edge_j, num_nodes)
    h = jax.nn.elu(h)
    h = _reference_layer(h, params["a_i2"], params["a_j2"], edge_i, edge_j, num_nodes)
    return jax.nn.log_softmax(h, axis=1)


if __name__ == "__main__":
    N, H = 300, 64
    key = jax.random.PRNGKey(0)
    kx, k1, k2, k3, k4, ke = jax.random.split(key, 6)

    x = jax.random.normal(kx, (N, H), dtype=jnp.float32)

    # nn.Linear(hidden, 1, bias=False)-style init: U(-1/sqrt(H), 1/sqrt(H))
    bound = 1.0 / np.sqrt(H)
    params = {
        "a_i1": jax.random.uniform(k1, (H,), jnp.float32, -bound, bound),
        "a_j1": jax.random.uniform(k2, (H,), jnp.float32, -bound, bound),
        "a_i2": jax.random.uniform(k3, (H,), jnp.float32, -bound, bound),
        "a_j2": jax.random.uniform(k4, (H,), jnp.float32, -bound, bound),
    }

    # deterministic random simple graph with self-loops (writable numpy copy)
    mask = np.array(jax.random.bernoulli(ke, 0.15, (N, N)))
    np.fill_diagonal(mask, True)
    rows, cols = np.nonzero(mask)                 # edge j -> i with i=row, j=col
    edge_i = jnp.asarray(rows, jnp.int32)         # targets
    edge_j = jnp.asarray(cols, jnp.int32)         # sources
    adj = jnp.asarray(mask)                       # bool; wrapper packs to int8

    out = gat_forward(x, params, adj)
    out = jax.block_until_ready(out)

    ref = reference_forward(x, params, edge_i, edge_j, N)
    ref = jax.block_until_ready(ref)

    assert out.shape == (N, H) and out.dtype == jnp.float32
    # bf16 aggregation matmul + approx reciprocal -> tolerance loosened vs pure f32
    np.testing.assert_allclose(np.asarray(out), np.asarray(ref), rtol=2e-2, atol=2e-2)
    print("KERNEL_OK")
</pallas_src>

<mosaic_0001>
module attributes {stable_mosaic.version = 11 : i64} {
  func.func @_gat_kernel(%arg0: i32, %arg1: i32, %arg2: memref<256x1xf32, #tpu.memory_space<vmem>>, %arg3: memref<1x512xf32, #tpu.memory_space<vmem>>, %arg4: memref<512x128xbf16, #tpu.memory_space<vmem>>, %arg5: memref<256x512xi8, #tpu.memory_space<vmem>>, %arg6: memref<256x128xf32, #tpu.memory_space<vmem>>, %arg7: memref<256x1xf32, #tpu.memory_space<vmem>>, %arg8: memref<256x1xf32, #tpu.memory_space<vmem>>, %arg9: memref<256x128xf32, #tpu.memory_space<vmem>>) attributes {dimension_semantics = [#tpu.dimension_semantics<parallel>, #tpu.dimension_semantics<arbitrary>], iteration_bounds = array<i64: 2, 1>, scalar_prefetch = 0 : i64, scratch_operands = 3 : i64, tpu.core_type = #tpu.core_type<tc>, window_params = [{transform_indices = @transform_0, window_bounds = array<i64: 256, 1>}, {transform_indices = @transform_1, window_bounds = array<i64: 1, 512>}, {transform_indices = @transform_2, window_bounds = array<i64: 512, 128>}, {transform_indices = @transform_3, window_bounds = array<i64: 256, 512>}, {transform_indices = @transform_4, window_bounds = array<i64: 256, 128>}]} {
    %c0_i32 = arith.constant 0 : i32
    %0 = arith.cmpi eq, %arg1, %c0_i32 : i32
    %1 = arith.extui %0 : i1 to i32
    %c0_i32_0 = arith.constant 0 : i32
    %2 = arith.cmpi ne, %1, %c0_i32_0 : i32
    scf.if %2 {
      %cst_22 = arith.constant -1.000000e+30 : f32
      %39 = vector.broadcast %cst_22 : f32 to vector<256x1xf32>
      %c0_23 = arith.constant 0 : index
      %c0_24 = arith.constant 0 : index
      %40 = vector.load %arg7[%c0_23, %c0_24] : memref<256x1xf32, #tpu.memory_space<vmem>>, vector<256x1xf32>
      tpu.vector_store %arg7[%c0_23, %c0_24], %39 {strides = array<i32>} : memref<256x1xf32, #tpu.memory_space<vmem>>, vector<256x1xf32>,
      %cst_25 = arith.constant 0.000000e+00 : f32
      %41 = vector.broadcast %cst_25 : f32 to vector<256x1xf32>
      %c0_26 = arith.constant 0 : index
      %c0_27 = arith.constant 0 : index
      %42 = vector.load %arg8[%c0_26, %c0_27] : memref<256x1xf32, #tpu.memory_space<vmem>>, vector<256x1xf32>
      tpu.vector_store %arg8[%c0_26, %c0_27], %41 {strides = array<i32>} : memref<256x1xf32, #tpu.memory_space<vmem>>, vector<256x1xf32>,
      %cst_28 = arith.constant 0.000000e+00 : f32
      %43 = vector.broadcast %cst_28 : f32 to vector<256x128xf32>
      %c0_29 = arith.constant 0 : index
      %c0_30 = arith.constant 0 : index
      %44 = vector.load %arg9[%c0_29, %c0_30] : memref<256x128xf32, #tpu.memory_space<vmem>>, vector<256x128xf32>
      tpu.vector_store %arg9[%c0_29, %c0_30], %43 {strides = array<i32>} : memref<256x128xf32, #tpu.memory_space<vmem>>, vector<256x128xf32>,
    } else {
    }
    %c0 = arith.constant 0 : index
    %c0_1 = arith.constant 0 : index
    %3 = vector.load %arg5[%c0, %c0_1] : memref<256x512xi8, #tpu.memory_space<vmem>>, vector<256x512xi8>
    %c0_i8 = arith.constant 0 : i8
    %4 = vector.broadcast %c0_i8 : i8 to vector<256x512xi8>
    %5 = arith.cmpi ne, %3, %4 : vector<256x512xi8>
    %c0_2 = arith.constant 0 : index
    %c0_3 = arith.constant 0 : index
    %6 = vector.load %arg2[%c0_2, %c0_3] : memref<256x1xf32, #tpu.memory_space<vmem>>, vector<256x1xf32>
    %c0_4 = arith.constant 0 : index
    %c0_5 = arith.constant 0 : index
    %7 = vector.load %arg3[%c0_4, %c0_5] : memref<1x512xf32, #tpu.memory_space<vmem>>, vector<1x512xf32>
    %8 = vector.broadcast %6 : vector<256x1xf32> to vector<256x512xf32>
    %9 = vector.broadcast %7 : vector<1x512xf32> to vector<256x512xf32>
    %10 = arith.addf %8, %9 : vector<256x512xf32>
    %cst = arith.constant 0.00999999977 : f32
    %11 = vector.broadcast %cst : f32 to vector<256x512xf32>
    %12 = arith.mulf %11, %10 : vector<256x512xf32>
    %13 = arith.maximumf %10, %12 : vector<256x512xf32>
    %cst_6 = arith.constant -1.000000e+30 : f32
    %14 = vector.broadcast %cst_6 : f32 to vector<256x512xf32>
    %15 = arith.select %5, %13, %14 : vector<256x512xi1>, vector<256x512xf32>
    %c0_7 = arith.constant 0 : index
    %c0_8 = arith.constant 0 : index
    %16 = vector.load %arg7[%c0_7, %c0_8] : memref<256x1xf32, #tpu.memory_space<vmem>>, vector<256x1xf32>
    %cst_9 = arith.constant dense<0xFF800000> : vector<256xf32>
    %17 = vector.multi_reduction <maximumf>, %15, %cst_9 [1] : vector<256x512xf32> to vector<256xf32>
    %18 = vector.shape_cast %17 : vector<256xf32> to vector<256x1xf32>
    %19 = arith.maximumf %16, %18 : vector<256x1xf32>
    %20 = arith.subf %16, %19 : vector<256x1xf32>
    %21 = math.exp %20 : vector<256x1xf32>
    %22 = vector.broadcast %19 : vector<256x1xf32> to vector<256x512xf32>
    %23 = arith.subf %15, %22 : vector<256x512xf32>
    %24 = math.exp %23 : vector<256x512xf32>
    %cst_10 = arith.constant 0.000000e+00 : f32
    %25 = vector.broadcast %cst_10 : f32 to vector<256x512xf32>
    %26 = arith.select %5, %24, %25 : vector<256x512xi1>, vector<256x512xf32>
    %c0_11 = arith.constant 0 : index
    %c0_12 = arith.constant 0 : index
    %27 = vector.load %arg9[%c0_11, %c0_12] : memref<256x128xf32, #tpu.memory_space<vmem>>, vector<256x128xf32>
    %28 = vector.broadcast %21 : vector<256x1xf32> to vector<256x128xf32>
    %29 = arith.mulf %28, %27 : vector<256x128xf32>
    %30 = arith.truncf %26 : vector<256x512xf32> to vector<256x512xbf16>
    %c0_13 = arith.constant 0 : index
    %c0_14 = arith.constant 0 : index
    %31 = vector.load %arg4[%c0_13, %c0_14] : memref<512x128xbf16, #tpu.memory_space<vmem>>, vector<512x128xbf16>
    %cst_15 = arith.constant dense<0.000000e+00> : vector<256x128xf32>
    %32 = tpu.matmul %30, %31, %cst_15 {dimension_numbers = #tpu.dot_dimension_numbers<[1], [0], [0], [1], [0, 0, 1, 1], [], []>} : vector<256x512xbf16>, vector<512x128xbf16>, vector<256x128xf32> -> vector<256x128xf32>
    %33 = arith.addf %29, %32 : vector<256x128xf32>
    %c0_16 = arith.constant 0 : index
    %c0_17 = arith.constant 0 : index
    %34 = vector.load %arg9[%c0_16, %c0_17] : memref<256x128xf32, #tpu.memory_space<vmem>>, vector<256x128xf32>
    tpu.vector_store %arg9[%c0_16, %c0_17], %33 {strides = array<i32>} : memref<256x128xf32, #tpu.memory_space<vmem>>, vector<256x128xf32>,
    %c0_18 = arith.constant 0 : index
    %c0_19 = arith.constant 0 : index
    %35 = vector.load %arg7[%c0_18, %c0_19] : memref<256x1xf32, #tpu.memory_space<vmem>>, vector<256x1xf32>
    tpu.vector_store %arg7[%c0_18, %c0_19], %19 {strides = array<i32>} : memref<256x1xf32, #tpu.memory_space<vmem>>, vector<256x1xf32>,
    %c0_i32_20 = arith.constant 0 : i32
    %36 = arith.cmpi eq, %arg1, %c0_i32_20 : i32
    %37 = arith.extui %36 : i1 to i32
    %c0_i32_21 = arith.constant 0 : i32
    %38 = arith.cmpi ne, %37, %c0_i32_21 : i32
    scf.if %38 {
      %c0_22 = arith.constant 0 : index
      %c0_23 = arith.constant 0 : index
      %39 = vector.load %arg9[%c0_22, %c0_23] : memref<256x128xf32, #tpu.memory_space<vmem>>, vector<256x128xf32>
      %40 = tpu.iota {dimensions = array<i32: 1>} : vector<256x128xi32>
      %c64_i32 = arith.constant 64 : i32
      %41 = vector.broadcast %c64_i32 : i32 to vector<256x128xi32>
      %42 = arith.cmpi eq, %40, %41 : vector<256x128xi32>
      %cst_24 = arith.constant 0.000000e+00 : f32
      %43 = vector.broadcast %cst_24 : f32 to vector<256x128xf32>
      %44 = arith.select %42, %39, %43 : vector<256x128xi1>, vector<256x128xf32>
      %cst_25 = arith.constant dense<0.000000e+00> : vector<256xf32>
      %45 = vector.multi_reduction <add>, %44, %cst_25 [1] : vector<256x128xf32> to vector<256xf32>
      %46 = vector.shape_cast %45 : vector<256xf32> to vector<256x1xf32>
      %cst_26 = arith.constant 9.99999968E-21 : f32
      %47 = vector.broadcast %cst_26 : f32 to vector<256x1xf32>
      %48 = arith.maximumf %46, %47 : vector<256x1xf32>
      %49 = tpu.reciprocal %48 {approx = true} : vector<256x1xf32> -> vector<256x1xf32>
      %50 = vector.broadcast %49 : vector<256x1xf32> to vector<256x128xf32>
      %51 = arith.mulf %39, %50 : vector<256x128xf32>
      %cst_27 = arith.constant 0.000000e+00 : f32
      %52 = vector.broadcast %cst_27 : f32 to vector<256x128xf32>
      %53 = arith.maximumf %51, %52 : vector<256x128xf32>
      %c0_28 = arith.constant 0 : index
      %c0_29 = arith.constant 0 : index
      %54 = vector.load %arg6[%c0_28, %c0_29] : memref<256x128xf32, #tpu.memory_space<vmem>>, vector<256x128xf32>
      tpu.vector_store %arg6[%c0_28, %c0_29], %53 {strides = array<i32>} : memref<256x128xf32, #tpu.memory_space<vmem>>, vector<256x128xf32>,
    } else {
    }
    return
  }
  func.func @transform_0(%arg0: i32, %arg1: i32) -> (i32, i32) {
    %c0_i32 = arith.constant 0 : i32
    %c0_i32_0 = arith.constant 0 : i32
    return %arg0, %c0_i32 : i32, i32
  }
  func.func @transform_1(%arg0: i32, %arg1: i32) -> (i32, i32) {
    %c0_i32 = arith.constant 0 : i32
    %c0_i32_0 = arith.constant 0 : i32
    return %c0_i32, %arg1 : i32, i32
  }
  func.func @transform_2(%arg0: i32, %arg1: i32) -> (i32, i32) {
    %c0_i32 = arith.constant 0 : i32
    %c0_i32_0 = arith.constant 0 : i32
    return %arg1, %c0_i32 : i32, i32
  }
  func.func @transform_3(%arg0: i32, %arg1: i32) -> (i32, i32) {
    %c0_i32 = arith.constant 0 : i32
    return %arg0, %arg1 : i32, i32
  }
  func.func @transform_4(%arg0: i32, %arg1: i32) -> (i32, i32) {
    %c0_i32 = arith.constant 0 : i32
    %c0_i32_0 = arith.constant 0 : i32
    return %arg0, %c0_i32 : i32, i32
  }
}

</mosaic_0001>

<bundles_post_ra>
// kernel: tpu_custom_call.1
= control target key start
LH: loop header
LB: loop body
LE: loop exit
PB: predicated region body
PF: predicated region fallthrough
CT: control target
= control target key end

     0   :  { %9 = vsyncpa [#allocation6], 0  ;;  %s9309_s0 = inlined_call_operand.vmem [shape: f32[512,1], index: 0, kind: input, shape index: {}]   ;;  %s9310_s1 = inlined_call_operand.vmem [shape: f32[1,512], index: 1, kind: input, shape index: {}]   ;;  %s9311_s2 = inlined_call_operand.hbm [shape: bf16[512,128], index: 2, kind: input, shape index: {}]   ;;  %s9312_s3 = inlined_call_operand.vmem [shape: s8[512,512], index: 3, kind: input, shape index: {}]   ;;  %s9313_s4 = inlined_call_operand.hbm [shape: f32[512,128], index: 4, kind: output, shape index: {}]  }
   0x1   :  { %10 = vsyncpa [#allocation7], 0 }
   0x2   :  { %12 = vsyncpa [#allocation7 + $0x1], 0  ;;  %s5247_s15 = smov 0   ;;  %s5249_s16 = smov 0  }
   0x3   :  { %s5251_s17 = smov 0   ;;  %s5253_s18 = smov 0  }
   0x4   :  { %s5255_s19 = smov 0   ;;  %s5257_s20 = smov 0  }
   0x5 LB: > { %s4142_s21 = sadd.s32 4294967295, %s5212_s20   ;;  %s4143_s22 = sadd.s32 4294967294, %s5212_s20   ;;  %s5212_s20 = sphi %s5257_s20, %s18_s20   ;;  %s5208_s19 = sphi %s5255_s19, %s11123_s19   ;;  %s5204_s18 = sphi %s5253_s18, %s11122_s18   ;;  %s5200_s17 = sphi %s5251_s17, %s11121_s17   ;;  %s5196_s16 = sphi %s5249_s16, %s11120_s16   ;;  %s5192_s15 = sphi %s5247_s15, %s11119_s15  }
   0x6   : > { %s30_s23 = sadd.s32 1, %s5208_s19  ;;  %s143_s24 = sadd.s32 1, %s5200_s17 }
   0x7   : > { %p32_p0 = scmp.ge.s32.totalorder %s30_s23, 2  ;;  %p153_p1 = scmp.ne.s32.totalorder %s5200_s17, %s5196_s16 }
   0x8   : > { %p154_p2 = scmp.eq.s32.totalorder %s4142_s21, 1  ;;  %p159_p3 = scmp.ne.s32.totalorder %s5196_s16, %s5192_s15 }
   0x9   : > { %s11125_s23 = smov (%p32_p0, %s30_s23), 0  ;;  %p160_p5 = scmp.eq.s32.totalorder %s4143_s22, 1 }
   0xa   : > { %p5287_p4 = por %p154_p2, %p153_p1  ;;  %s140_s26 = ssub.s32 %s5208_s19, %s11125_s23 }
   0xb   : > { %p4144_p6 = scmp.ge.s32.totalorder %s5212_s20, 1  ;;  %p141_p7 = scmp.eq.s32.totalorder %s140_s26, 0 }
   0xc   : > { %s9925_s25 = scalar_select %p5287_p4, 1, 0 }
   0xd   : > { %p5294_p8 = por %p160_p5, %p159_p3  ;;  %p167_p9 = scmp.lt.s32.totalorder %s5212_s20, 3 }
   0xe   : > { %s5300_s28 = scalar_select %p141_p7, %s5200_s17, %s143_s24  }
   0xf   : > { %s9926_s27 = scalar_select %p5294_p8, 1, 0 }
  0x10   : > { %p5302_p10 = pnand %p4144_p6, %p167_p9  ;;  %p5306_p11 = scmp.eq.s32.totalorder %s4142_s21, 0 }
  0x11   : > { %s5214_s5 = smov [#allocation5]   ;;  %s5102_s10 = scalar_lea.hbm %s9311_s2, 4096 }
  0x12   : > { %s9927_s29 = scalar_select %p5302_p10, 1, 0 }
  0x13   : > { %s9928_s30 = scalar_select %p5306_p11, 1, 0 }
  0x14   : > { %p4617_p12 = pneg %p5302_p10  ;;  %s190_s6 = sshll.u32 %s5214_s5, 4  ;;  %s191_s6 = int_to_ptr.vmem [resolvable:$true] %s190_s6 }
  0x15   : > { %p5103_p0 = scmp.ne.s32.totalorder %s9311_s2, %s5102_s10  ;;  %p5109_p5 = scmp.lt.u32.totalorder %s5102_s10, %s9311_s2 }
  0x16   : > { %p5314_p13 = pnand %p5306_p11, %p4617_p12 }
  0x18   : > { %p5104_p1 = pneg %p5314_p13 }
  0x1a   : > { %p5105_p2 = pnand %p5104_p1, %p5103_p0 }
  0x1c   : > { %p5106_p3 = pneg %p5105_p2 }
  0x1e   : > { %p5111_p6 = pnand %p5109_p5, %p5106_p3 }
  0x20   : > { %5114 = shalt.err (!%p5111_p6)
}
  0x21   : > { %s5115_s21 = scalar_lea.vmem %s191_s6, 4096  ;;  %p5123_p8 = scmp.lt.s32.totalorder %s191_s6, %s191_s6 }
  0x22   : > { %p5116_p7 = scmp.ne.s32.totalorder %s191_s6, %s5115_s21  ;;  %p5124_p4 = scmp.lt.s32.totalorder %s5115_s21, %s5115_s21 }
  0x24   : > { %p5118_p9 = pnand %p5116_p7, %p5104_p1  ;;  %p5125_p11 = por %p5124_p4, %p5123_p8 }
  0x26   : > { %p5119_p12 = pneg %p5118_p9 }
  0x28   : > { %p5126_p10 = pnand %p5125_p11, %p5119_p12 }
  0x2a   : > { %5129 = shalt.err (!%p5126_p10)
}
  0x2b   : > { %s5215_s22 = smov 64   ;;  %s5216_s24 = smov 4  }
  0x2c   : > { %4620 = dma.hbm_to_vmem [thread:$0]  (!%p5314_p13), %s9311_s2, 4096, %s191_s6, [#allocation6], %s5215_s22, %s5215_s22, %s5216_s24  }
  0x2d   : > { %p9930_p0 = scmp.ne.s32.totalorder %s9927_s29, 0 }
  0x2f   : > { %230 = sbr.rel (%p9930_p0) target bundleno = 1346 (0x542), region = 36 }
  0x36   : > { %p9931_p2 = scmp.ne.s32.totalorder %s9928_s30, 0 }
  0x38   : > { %5183 = dma.done.wait (%p9931_p2), [#allocation6], 4096  }
  0x39   : > { %5185 = vsyncadd (%p9931_p2), [#allocation6], 4294963200  ;;  %vm9321_vm0 = vcmask 7168   ;;  %s4151_s8 = sshll.u32 %s5204_s18, 5  ;;  %v9319_v0 = vmov 0   ;;  %s4153_s30 = sshll.u32 %s5204_s18, 3  ;;  %v9318_v21 = vlaneseq }
  0x3a   : > { %4685 = vset.pattern.permute.xlu1 %v9319_v0  ;;  %4684 = vset.pattern.permute.xlu0 %v9319_v0  ;;  %p271_p4 = scmp.lt.s32.totalorder %s4151_s8, 63  ;;  %p284_p8 = scmp.lt.s32.totalorder %s4153_s30, 15  ;;  %v495_v55 = vld [vmem:[%s9310_s1] sm:$0xf] }
  0x3b   : > { %v658_v26 = vshrl.u32 %v9318_v21, 7  ;;  %s267_s22 = sand.u32 1, %s5196_s16   ;;  %s4386_s5 = sshll.u32 %s5204_s18, 12 }
  0x3c   : > { %s11127_s8 = smov (!%p271_p4, %s4151_s8), 63  ;;  %s11129_s30 = smov (!%p284_p8, %s4153_s30), 15 }
  0x3d   : > { %s4152_s6 = sshll.u32 %s11127_s8, 3  ;;  %s4385_s10 = sshll.u32 %s11129_s30, 5  ;;  %v659_v35 = vsub.s32 0, %v658_v26  ;;  %v663_v36 = vsub.s32 1, %v658_v26  ;;  %v667_v46 = vsub.s32 2, %v658_v26  ;;  %v671_v51 = vsub.s32 3, %v658_v26 }
  0x3e   : > { %s5346_s9 = scalar_lea.vmem %s9309_s0, %s4152_s6  ;;  %s5364_s13 = scalar_lea.vmem %s9312_s3, %s4385_s10 }
  0x3f   : > { %v465_v1 = vld [vmem:[%s5346_s9 + $0x10] sm:$0xff]  ;;  %v463_v2 = vld [vmem:[%s5346_s9] sm:$0xff]  ;;  %v466_v3 = vld [vmem:[%s5346_s9 + $0x18] sm:$0xff]  ;;  %s4150_s24 = sshll.u32 %s267_s22, 8  ;;  %s9255_s29 = scalar_lea.hbm %s9313_s4, %s4386_s5 }
  0x40   : > { %508 = vperm.xlu1 %4685, %v465_v1   ;;  %498 = vperm.xlu0 %4684, %v463_v2   ;;  %v464_v4 = vld [vmem:[%s5346_s9 + $0x8] sm:$0xff]  ;;  %v467_v6 = vld [vmem:[%s5346_s9 + $0x20] sm:$0xff]  ;;  %v470_v7 = vld [vmem:[%s5346_s9 + $0x38] sm:$0xff]  ;;  %v5392_v2 = vrot.slane %v495_v55, %v659_v35  ;;  %s9176_s26 = scalar_lea.vmem [#allocation8], %s4150_s24  ;;  %s9263_s18 = scalar_lea.sflag [#allocation7], %s267_s22 }
  0x41   : > { %v468_v5 = vld [vmem:[%s5346_s9 + $0x28] sm:$0xff]  ;;  %v469_v8 = vld [vmem:[%s5346_s9 + $0x30] sm:$0xff]  ;;  %v471_v10 = vld [vmem:[%s5346_s9 + $0x40] sm:$0xff]  ;;  %s4028_s8 = sshll.u32 %s9176_s26, 4  ;;  %p11117_p11 = scmp.ne.s32.totalorder %s9925_s25, 0  ;;  %s9257_s8 = int_to_ptr.vmem [resolvable:$true] %s4028_s8 }
  0x42   : > { %v472_v9 = vld [vmem:[%s5346_s9 + $0x48] sm:$0xff]  ;;  %v474_v11 = vld [vmem:[%s5346_s9 + $0x58] sm:$0xff]  ;;  %v473_v12 = vld [vmem:[%s5346_s9 + $0x50] sm:$0xff]  ;;  %9932 = vst [vmem:[#allocation11_spill] sm:$0xff] %v5392_v2  ;;  %s5219_s30 = smov [#allocation8]  }
  0x43   : > { %v399_v13 = vld [vmem:[%s5364_s13] sm:$0xff]  ;;  %v400_v14 = vld [vmem:[%s5364_s13 + $0x8] sm:$0xff]  ;;  %v401_v15 = vld [vmem:[%s5364_s13 + $0x10] sm:$0xff]  ;;  %s5134_s10 = sshll.u32 %s5219_s30, 4  ;;  %s5135_s10 = int_to_ptr.vmem [resolvable:$false] %s5134_s10 }
  0x44   : > { %513 = vperm.xlu1 %4685, %v466_v3   ;;  %503 = vperm.xlu0 %4684, %v464_v4   ;;  %v402_v16 = vld [vmem:[%s5364_s13 + $0x18] sm:$0xff]  ;;  %vm431_vm1 = vnez %v399_v13  ;;  %vm432_vm2 = vnez %v400_v14  ;;  %vm433_vm3 = vnez %v401_v15  ;;  %v403_v33 = vld [vmem:[%s5364_s13 + $0x20] sm:$0xff]  ;;  %v404_v34 = vld [vmem:[%s5364_s13 + $0x28] sm:$0xff]  ;;  %s5136_s11 = scalar_lea.vmem %s5135_s10, 8192  ;;  %p5137_p3 = scmp.lt.s32.totalorder %s9257_s8, %s5135_s10 }
  0x45   : > { %vm434_vm4 = vnez %v402_v16  ;;  %v1061_v17 = vsel %vm431_vm1, 16843009, %v9319_v0  ;;  %v1062_v18 = vsel %vm432_vm2, 16843009, %v9319_v0  ;;  %v1063_v19 = vsel %vm433_vm3, 16843009, %v9319_v0 }
  0x46   : > { %v1064_v20 = vsel %vm434_vm4, 16843009, %v9319_v0  ;;  %v1093_v22 = vunpack.c.0.s8 %v1061_v17  ;;  %v1094_v23 = vunpack.c.0.s8 %v1062_v18  ;;  %v1095_v24 = vunpack.c.0.s8 %v1063_v19  ;;  %v405_v38 = vld [vmem:[%s5364_s13 + $0x30] sm:$0xff]  ;;  %v406_v39 = vld [vmem:[%s5364_s13 + $0x38] sm:$0xff]  ;;  %v407_v13 = vld [vmem:[%s5364_s13 + $0x40] sm:$0xff] }
  0x47   : > { %v1096_v25 = vunpack.c.0.s8 %v1064_v20  ;;  %v1097_v29 = vunpack.c.1.s8 %v1061_v17  ;;  %v1098_v30 = vunpack.c.1.s8 %v1062_v18  ;;  %v1099_v31 = vunpack.c.1.s8 %v1063_v19 }
  0x48   : > { %523 = vperm.xlu1 %4685, %v468_v5   ;;  %518 = vperm.xlu0 %4684, %v467_v6   ;;  %v1221_v27 = vpack.c.b16 %v1094_v23, %v1093_v22  ;;  %v1100_v32 = vunpack.c.1.s8 %v1064_v20  ;;  %v1101_v42 = vunpack.c.2.s8 %v1061_v17  ;;  %v1102_v43 = vunpack.c.2.s8 %v1062_v18 }
  0x49   : > { %v1222_v28 = vpack.c.b16 %v1096_v25, %v1095_v24  ;;  %v1224_v40 = vpack.c.b16 %v1098_v30, %v1097_v29  ;;  %v1103_v44 = vunpack.c.2.s8 %v1063_v19  ;;  %v1104_v45 = vunpack.c.2.s8 %v1064_v20 }
  0x4a   : > { %v1225_v41 = vpack.c.b16 %v1100_v32, %v1099_v31  ;;  %vm435_vm5 = vnez %v403_v33  ;;  %vm436_vm6 = vnez %v404_v34  ;;  %v1105_v47 = vunpack.c.3.s8 %v1061_v17 }
  0x4b   : > { %v1223_v37 = vpack.c.b8 %v1222_v28, %v1221_v27  ;;  %vm437_vm7 = vnez %v405_v38  ;;  %vm438_vm8 = vnez %v406_v39  ;;  %v1106_v48 = vunpack.c.3.s8 %v1062_v18  ;;  %v408_v18 = vld [vmem:[%s5364_s13 + $0x48] sm:$0xff] }
  0x4c   : > { %533 = vperm.xlu1 %4685, %v470_v7   ;;  %528 = vperm.xlu0 %4684, %v469_v8   ;;  %v1107_v49 = vunpack.c.3.s8 %v1063_v19  ;;  %v1108_v50 = vunpack.c.3.s8 %v1064_v20  ;;  %v1226_v52 = vpack.c.b8 %v1225_v41, %v1224_v40  ;;  %v5380_v53 = vsel %vm435_vm5, 16843009, %v9319_v0  ;;  %v409_v19 = vld [vmem:[%s5364_s13 + $0x50] sm:$0xff]  ;;  %v410_v20 = vld [vmem:[%s5364_s13 + $0x58] sm:$0xff] }
  0x4d   : > { %vm1317_vm9 = vnez %v1223_v37  ;;  %v1066_v54 = vsel %vm436_vm6, 16843009, %v9319_v0  ;;  %v1227_v56 = vpack.c.b16 %v1102_v43, %v1101_v42  ;;  %v1228_v57 = vpack.c.b16 %v1104_v45, %v1103_v44 }
  0x4e   : > { %v1067_v58 = vsel %vm437_vm7, 16843009, %v9319_v0  ;;  %v1068_v59 = vsel %vm438_vm8, 16843009, %v9319_v0  ;;  %v5389_v60 = vsel %vm1317_vm9, 16843009, %v9319_v0  ;;  %v1230_v61 = vpack.c.b16 %v1106_v48, %v1105_v47 }
  0x4f   : > { %v1231_v62 = vpack.c.b16 %v1108_v50, %v1107_v49  ;;  %v1109_v63 = vunpack.c.0.s8 %v5380_v53  ;;  %v1110_v1 = vunpack.c.0.s8 %v1066_v54  ;;  %vm1318_vm10 = vnez %v1226_v52 }
  0x50   : > { %543 = vperm.xlu1 %4685, %v472_v9   ;;  %538 = vperm.xlu0 %4684, %v471_v10   ;;  %v1111_v3 = vunpack.c.0.s8 %v1067_v58  ;;  %v1112_v4 = vunpack.c.0.s8 %v1068_v59  ;;  %v5394_v5 = vrot.slane %v495_v55, %v663_v36  ;;  %v5396_v6 = vrot.slane %v495_v55, %v667_v46 }
  0x51   : > { %v5398_v7 = vrot.slane %v495_v55, %v671_v51  ;;  %v1229_v8 = vpack.c.b8 %v1228_v57, %v1227_v56  ;;  %v1381_v9 = vunpack.c.0.s8 %v5389_v60  ;;  %v1382_v10 = vunpack.c.1.s8 %v5389_v60 }
  0x52   : > { %v5406_v14 = vsel %vm1318_vm10, 16843009, %v9319_v0  ;;  %v1232_v15 = vpack.c.b8 %v1231_v62, %v1230_v61  ;;  %v1233_v16 = vpack.c.b16 %v1110_v1, %v1109_v63  ;;  %v1113_v17 = vunpack.c.1.s8 %v5380_v53 }
  0x53   : > { %v1234_v22 = vpack.c.b16 %v1112_v4, %v1111_v3  ;;  %v1114_v23 = vunpack.c.1.s8 %v1066_v54  ;;  %v1115_v24 = vunpack.c.1.s8 %v1067_v58  ;;  %v1116_v25 = vunpack.c.1.s8 %v1068_v59 }
  0x54   : > { %553 = vperm.xlu1 %4685, %v474_v11   ;;  %548 = vperm.xlu0 %4684, %v473_v12   ;;  %v1383_v11 = vunpack.c.2.s8 %v5389_v60  ;;  %v1384_v12 = vunpack.c.3.s8 %v5389_v60  ;;  %v1117_v26 = vunpack.c.2.s8 %v5380_v53  ;;  %v1118_v27 = vunpack.c.2.s8 %v1066_v54 }
  0x55   : > { %v1119_v28 = vunpack.c.2.s8 %v1067_v58  ;;  %vm439_vm11 = vnez %v407_v13  ;;  %v1120_v29 = vunpack.c.2.s8 %v1068_v59  ;;  %vm440_vm12 = vnez %v408_v18 }
  0x56   : > { %vm441_vm13 = vnez %v409_v19  ;;  %vm442_vm14 = vnez %v410_v20  ;;  %v1121_v30 = vunpack.c.3.s8 %v5380_v53  ;;  %v1122_v31 = vunpack.c.3.s8 %v1066_v54 }
  0x57   : > { %v1123_v32 = vunpack.c.3.s8 %v1067_v58  ;;  %v1124_v33 = vunpack.c.3.s8 %v1068_v59  ;;  %v1385_v34 = vunpack.c.0.s8 %v5406_v14  ;;  %v1386_v35 = vunpack.c.1.s8 %v5406_v14 }
  0x58   : > { %vm5416_vm15 = vnez %v1229_v8  ;;  %v1069_v37 = vsel %vm439_vm11, 16843009, %v9319_v0  ;;  %v1387_v38 = vunpack.c.2.s8 %v5406_v14  ;;  %v1070_v39 = vsel %vm440_vm12, 16843009, %v9319_v0 }
  0x59   : > { %v1071_v40 = vsel %vm441_vm13, 16843009, %v9319_v0  ;;  %v1072_v41 = vsel %vm442_vm14, 16843009, %v9319_v0  ;;  %vm5425_vm1 = vnez %v1232_v15  ;;  %v1235_v43 = vpack.c.b8 %v1234_v22, %v1233_v16 }
  0x5a   : > { %v1236_v44 = vpack.c.b16 %v1114_v23, %v1113_v17  ;;  %v1237_v45 = vpack.c.b16 %v1116_v25, %v1115_v24  ;;  %v1239_v46 = vpack.c.b16 %v1118_v27, %v1117_v26  ;;  %v1240_v47 = vpack.c.b16 %v1120_v29, %v1119_v28 }
  0x5b   : > { %v1242_v48 = vpack.c.b16 %v1122_v31, %v1121_v30  ;;  %v1243_v49 = vpack.c.b16 %v1124_v33, %v1123_v32  ;;  %v1125_v50 = vunpack.c.0.s8 %v1069_v37  ;;  %v1126_v51 = vunpack.c.0.s8 %v1070_v39 }
  0x5c   : > { %v1127_v52 = vunpack.c.0.s8 %v1071_v40  ;;  %v1128_v53 = vunpack.c.0.s8 %v1072_v41  ;;  %v1129_v54 = vunpack.c.1.s8 %v1069_v37  ;;  %v1130_v55 = vunpack.c.1.s8 %v1070_v39 }
  0x5d   : > { %v1131_v56 = vunpack.c.1.s8 %v1071_v40  ;;  %v1132_v57 = vunpack.c.1.s8 %v1072_v41  ;;  %v1133_v58 = vunpack.c.2.s8 %v1069_v37  ;;  %v1134_v59 = vunpack.c.2.s8 %v1070_v39 }
  0x5e   : > { %v1135_v61 = vunpack.c.2.s8 %v1071_v40  ;;  %v1136_v62 = vunpack.c.2.s8 %v1072_v41  ;;  %v1137_v63 = vunpack.c.3.s8 %v1069_v37  ;;  %v1138_v1 = vunpack.c.3.s8 %v1070_v39 }
  0x5f   : > { %v1139_v3 = vunpack.c.3.s8 %v1071_v40  ;;  %v1140_v4 = vunpack.c.3.s8 %v1072_v41  ;;  %v5432_v8 = vsel %vm5416_vm15, 16843009, %v9319_v0  ;;  %v1238_v13 = vpack.c.b8 %v1237_v45, %v1236_v44 }
  0x60   : > { %v1245_v15 = vpack.c.b16 %v1126_v51, %v1125_v50  ;;  %v1246_v16 = vpack.c.b16 %v1128_v53, %v1127_v52  ;;  %v1388_v17 = vunpack.c.3.s8 %v5406_v14  ;;  %v5438_v18 = vsel %vm5425_vm1, 16843009, %v9319_v0 }
  0x61   : > { %v1248_v19 = vpack.c.b16 %v1130_v55, %v1129_v54  ;;  %v1249_v20 = vpack.c.b16 %v1132_v57, %v1131_v56  ;;  %vm1321_vm2 = vnez %v1235_v43  ;;  %v1241_v22 = vpack.c.b8 %v1240_v47, %v1239_v46 }
  0x62   : > { %v5440_v23 = vpack.c.b16 %v1134_v59, %v1133_v58  ;;  %v5442_v24 = vpack.c.b16 %v1136_v62, %v1135_v61  ;;  %v1389_v25 = vunpack.c.0.s8 %v5432_v8  ;;  %v1244_v26 = vpack.c.b8 %v1243_v49, %v1242_v48 }
  0x63   : > { %v5445_v27 = vpack.c.b16 %v1138_v1, %v1137_v63  ;;  %v5447_v28 = vpack.c.b16 %v1140_v4, %v1139_v3  ;;  %v1390_v29 = vunpack.c.1.s8 %v5432_v8  ;;  %v1391_v30 = vunpack.c.2.s8 %v5432_v8 }
  0x64   : > { %vm1322_vm3 = vnez %v1238_v13  ;;  %v1247_v31 = vpack.c.b8 %v1246_v16, %v1245_v15  ;;  %v1392_v32 = vunpack.c.3.s8 %v5432_v8  ;;  %v1393_v33 = vunpack.c.0.s8 %v5438_v18 }
  0x65   : > { %v5454_v36 = vsel %vm1321_vm2, 16843009, %v9319_v0  ;;  %v1250_v37 = vpack.c.b8 %v1249_v20, %v1248_v19  ;;  %v1394_v39 = vunpack.c.1.s8 %v5438_v18  ;;  %vm1323_vm4 = vnez %v1241_v22 }
  0x66   : > { %v1253_v41 = vpack.c.b8 %v5442_v24, %v5440_v23  ;;  %v5462_v43 = vsel %vm1322_vm3, 16843009, %v9319_v0  ;;  %vm5464_vm5 = vnez %v1244_v26  ;;  %v1256_v45 = vpack.c.b8 %v5447_v28, %v5445_v27 }
  0x67   : > { %vm5472_vm6 = vnez %v1247_v31  ;;  %v5479_v51 = vsel %vm1323_vm4, 16843009, %v9319_v0  ;;  %vm5481_vm7 = vnez %v1250_v37  ;;  %v5218_v53 = vmov -1e+30  }
  0x68   : > { %303 = vst.msk [vmem:[#allocation2] sm:$0xff] %vm9321_vm0, %v5218_v53  ;;  %304 = vst.msk [vmem:[#allocation2 + $0x8] sm:$0xff] %vm9321_vm0, %v5218_v53  ;;  %v5522_v56 = vsel %vm5464_vm5, 16843009, %v9319_v0  ;;  %vm1327_vm8 = vnez %v1253_v41  ;;  %v5529_v59 = vsel %vm5472_vm6, 16843009, %v9319_v0  ;;  %vm1328_vm9 = vnez %v1256_v45 }
  0x69   : > { %305 = vst.msk [vmem:[#allocation2 + $0x10] sm:$0xff] %vm9321_vm0, %v5218_v53  ;;  %306 = vst.msk [vmem:[#allocation2 + $0x18] sm:$0xff] %vm9321_vm0, %v5218_v53  ;;  %v5537_v1 = vsel %vm5481_vm7, 16843009, %v9319_v0  ;;  %v5543_v15 = vsel %vm1327_vm8, 16843009, %v9319_v0 }
  0x6a   : > { %307 = vst.msk [vmem:[#allocation2 + $0x20] sm:$0xff] %vm9321_vm0, %v5218_v53  ;;  %308 = vst.msk [vmem:[#allocation2 + $0x28] sm:$0xff] %vm9321_vm0, %v5218_v53  ;;  %vm5547_vm10 = vcmp.ne.s32.totalorder %v1381_v9, 0  ;;  %v9943_v16 = vmov 0  ;;  %vm5553_vm11 = vcmp.ne.s32.totalorder %v1382_v10, 0  ;;  %v9946_v19 = vmov 0 }
  0x6b   : > { %309 = vst.msk [vmem:[#allocation2 + $0x30] sm:$0xff] %vm9321_vm0, %v5218_v53  ;;  %310 = vst.msk [vmem:[#allocation2 + $0x38] sm:$0xff] %vm9321_vm0, %v5218_v53  ;;  %v9944_v16 = vsel %vm5547_vm10, 4294967295, %v9943_v16  ;;  %v9947_v19 = vsel %vm5553_vm11, 4294967295, %v9946_v19  ;;  %vm5559_vm12 = vcmp.ne.s32.totalorder %v1383_v11, 0  ;;  %v9949_v20 = vmov 0 }
  0x6c   : > { %311 = vst.msk [vmem:[#allocation2 + $0x40] sm:$0xff] %vm9321_vm0, %v5218_v53  ;;  %312 = vst.msk [vmem:[#allocation2 + $0x48] sm:$0xff] %vm9321_vm0, %v5218_v53  ;;  %v9950_v20 = vsel %vm5559_vm12, 4294967295, %v9949_v20  ;;  %v5567_v24 = vsel %vm1328_vm9, 16843009, %v9319_v0  ;;  %vm5591_vm13 = vcmp.ne.s32.totalorder %v1384_v12, 0 }
  0x6d   : > { %313 = vst.msk [vmem:[#allocation2 + $0x50] sm:$0xff] %vm9321_vm0, %v5218_v53  ;;  %314 = vst.msk [vmem:[#allocation2 + $0x58] sm:$0xff] %vm9321_vm0, %v5218_v53  ;;  %v9953_v48 = vmov 0  ;;  %vm5601_vm14 = vcmp.ne.s32.totalorder %v1385_v34, 0  ;;  %v9956_v26 = vmov 0  ;;  %vm5607_vm15 = vcmp.ne.s32.totalorder %v1386_v35, 0 }
  0x6e   : > { %315 = vst.msk [vmem:[#allocation2 + $0x60] sm:$0xff] %vm9321_vm0, %v5218_v53  ;;  %316 = vst.msk [vmem:[#allocation2 + $0x68] sm:$0xff] %vm9321_vm0, %v5218_v53  ;;  %v9954_v48 = vsel %vm5591_vm13, 4294967295, %v9953_v48  ;;  %v9957_v26 = vsel %vm5601_vm14, 4294967295, %v9956_v26  ;;  %v9959_v60 = vmov 0  ;;  %vm5619_vm1 = vcmp.ne.s32.totalorder %v1387_v38, 0 }
  0x6f   : > { %317 = vst.msk [vmem:[#allocation2 + $0x70] sm:$0xff] %vm9321_vm0, %v5218_v53  ;;  %318 = vst.msk [vmem:[#allocation2 + $0x78] sm:$0xff] %vm9321_vm0, %v5218_v53  ;;  %v9960_v60 = vsel %vm5607_vm15, 4294967295, %v9959_v60  ;;  %v9962_v34 = vmov 0  ;;  %vm5636_vm2 = vcmp.ne.s32.totalorder %v1389_v25, 0  ;;  %v9965_v38 = vmov 0 }
  0x70   : > { %319 = vst.msk [vmem:[#allocation2 + $0x80] sm:$0xff] %vm9321_vm0, %v5218_v53  ;;  %320 = vst.msk [vmem:[#allocation2 + $0x88] sm:$0xff] %vm9321_vm0, %v5218_v53  ;;  %v9963_v34 = vsel %vm5619_vm1, 4294967295, %v9962_v34  ;;  %v9966_v38 = vsel %vm5636_vm2, 4294967295, %v9965_v38  ;;  %vm5642_vm3 = vcmp.ne.s32.totalorder %v1390_v29, 0  ;;  %vm5652_vm4 = vcmp.ne.s32.totalorder %v1388_v17, 0 }
  0x71   : > { %321 = vst.msk [vmem:[#allocation2 + $0x90] sm:$0xff] %vm9321_vm0, %v5218_v53  ;;  %322 = vst.msk [vmem:[#allocation2 + $0x98] sm:$0xff] %vm9321_vm0, %v5218_v53  ;;  %v9971_v25 = vmov 0  ;;  %vm5660_vm5 = vcmp.ne.s32.totalorder %v1391_v30, 0  ;;  %v9974_v54 = vmov 0  ;;  %vm5695_vm6 = vcmp.ne.s32.totalorder %v1392_v32, 0 }
  0x72   : > { %323 = vst.msk [vmem:[#allocation2 + $0xa0] sm:$0xff] %vm9321_vm0, %v5218_v53  ;;  %324 = vst.msk [vmem:[#allocation2 + $0xa8] sm:$0xff] %vm9321_vm0, %v5218_v53  ;;  %v9972_v25 = vsel %vm5652_vm4, 4294967295, %v9971_v25  ;;  %v9975_v54 = vsel %vm5660_vm5, 4294967295, %v9974_v54  ;;  %vm5731_vm7 = vcmp.ne.s32.totalorder %v1393_v33, 0  ;;  %vm5737_vm8 = vcmp.ne.s32.totalorder %v1394_v39, 0 }
  0x73   : > { %325 = vst.msk [vmem:[#allocation2 + $0xb0] sm:$0xff] %vm9321_vm0, %v5218_v53  ;;  %326 = vst.msk [vmem:[#allocation2 + $0xb8] sm:$0xff] %vm9321_vm0, %v5218_v53 }
  0x74   : > { %327 = vst.msk [vmem:[#allocation2 + $0xc0] sm:$0xff] %vm9321_vm0, %v5218_v53  ;;  %328 = vst.msk [vmem:[#allocation2 + $0xc8] sm:$0xff] %vm9321_vm0, %v5218_v53 }
  0x75   : > { %329 = vst.msk [vmem:[#allocation2 + $0xd0] sm:$0xff] %vm9321_vm0, %v5218_v53  ;;  %330 = vst.msk [vmem:[#allocation2 + $0xd8] sm:$0xff] %vm9321_vm0, %v5218_v53 }
  0x76   : > { %331 = vst.msk [vmem:[#allocation2 + $0xe0] sm:$0xff] %vm9321_vm0, %v5218_v53  ;;  %332 = vst.msk [vmem:[#allocation2 + $0xe8] sm:$0xff] %vm9321_vm0, %v5218_v53 }
  0x77   : > { %333 = vst.msk [vmem:[#allocation2 + $0xf0] sm:$0xff] %vm9321_vm0, %v5218_v53  ;;  %334 = vst.msk [vmem:[#allocation2 + $0xf8] sm:$0xff] %vm9321_vm0, %v5218_v53 }
  0x78   : > { %9945 = vst [vmem:[#allocation12_spill] sm:$0xff] %v9944_v16  ;;  %9948 = vst [vmem:[#allocation13_spill] sm:$0xff] %v9947_v19 }
  0x79   : > { %9951 = vst [vmem:[#allocation14_spill] sm:$0xff] %v9950_v20  ;;  %9952 = vst [vmem:[#allocation15_spill] sm:$0xff] %v5567_v24 }
  0x7a   : > { %9955 = vst [vmem:[#allocation16_spill] sm:$0xff] %v9954_v48  ;;  %9958 = vst [vmem:[#allocation17_spill] sm:$0xff] %v9957_v26 }
  0x7b   : > { %9961 = vst [vmem:[#allocation18_spill] sm:$0xff] %v9960_v60  ;;  %9964 = vst [vmem:[#allocation19_spill] sm:$0xff] %v9963_v34 }
  0x7c   : > { %9967 = vst [vmem:[#allocation20_spill] sm:$0xff] %v9966_v38  ;;  %9973 = vst [vmem:[#allocation22_spill] sm:$0xff] %v9972_v25  ;;  %v10012_v38 = vunpack.c.2.s8 %v5454_v36  ;;  %v10017_v25 = vunpack.c.3.s8 %v5454_v36 }
  0x7d   : > { %9976 = vst [vmem:[#allocation23_spill] sm:$0xff] %v9975_v54  ;;  %v10022_v54 = vmov 0 }
  0xbf   : > { %v509_v44 = vpop.permute.xlu1 %508  ;;  %v499_v45 = vpop.permute.xlu0 %498 }
  0xc0   : > { %v5582_v0 = vadd.f32 %v5392_v2, %v509_v44  ;;  %v5585_v27 = vadd.f32 %v5394_v5, %v509_v44  ;;  %v677_v37 = vadd.f32 %v5392_v2, %v499_v45  ;;  %v678_v41 = vadd.f32 %v5394_v5, %v499_v45 }
  0xc1   : > { %v679_v53 = vadd.f32 %v5396_v6, %v499_v45  ;;  %v680_v21 = vadd.f32 %v5398_v7, %v499_v45  ;;  %v5612_v12 = vadd.f32 %v5396_v6, %v509_v44  ;;  %v5624_v35 = vadd.f32 %v5398_v7, %v509_v44 }
  0xc2   : > { %v805_v28 = vmul.f32 0.01, %v677_v37  ;;  %v806_v11 = vmul.f32 0.01, %v678_v41  ;;  %v813_v23 = vmul.f32 0.01, %v5582_v0 }
  0xc3   : > { %v5615_v31 = vpop.permute.xlu1 %513  ;;  %v504_v52 = vpop.permute.xlu0 %503  ;;  %v807_v10 = vmul.f32 0.01, %v679_v53  ;;  %v808_v9 = vmul.f32 0.01, %v680_v21  ;;  %v814_v4 = vmul.f32 0.01, %v5585_v27 }
  0xc4   : > { %v5629_v22 = vadd.f32 %v5392_v2, %v5615_v31  ;;  %v681_v45 = vadd.f32 %v5392_v2, %v504_v52  ;;  %v682_v13 = vadd.f32 %v5394_v5, %v504_v52  ;;  %v9968_v44 = vmov 0 }
  0xc5   : > { %v9969_v44 = vsel %vm5642_vm3, 4294967295, %v9968_v44  ;;  %v5648_v3 = vadd.f32 %v5394_v5, %v5615_v31  ;;  %v933_v63 = vmax.f32 %v677_v37, %v805_v28  ;;  %v934_v62 = vmax.f32 %v678_v41, %v806_v11 }
  0xc6   : > { %9970 = vst [vmem:[#allocation21_spill] sm:$0xff] %v9969_v44  ;;  %v935_v61 = vmax.f32 %v679_v53, %v807_v10  ;;  %v683_v58 = vadd.f32 %v5396_v6, %v504_v52  ;;  %v684_v29 = vadd.f32 %v5398_v7, %v504_v52  ;;  %v809_v57 = vmul.f32 0.01, %v681_v45 }
  0xc7   : > { %v810_v55 = vmul.f32 0.01, %v682_v13  ;;  %v5664_v11 = vpop.permute.xlu1 %523  ;;  %v5666_v10 = vpop.permute.xlu0 %518  ;;  %v936_v14 = vmax.f32 %v680_v21, %v808_v9  ;;  %v5670_v17 = vsel %vm5547_vm10, %v933_v63, -1e+30  ;;  %v5674_v28 = vsel %vm5553_vm11, %v934_v62, -1e+30 }
  0xc8   : > { %9977 = vst [vmem:[#allocation24_spill] sm:$0xff] %v5670_v17  ;;  %9978 = vst [vmem:[#allocation25_spill] sm:$0xff] %v5674_v28  ;;  %v5678_v37 = vsel %vm5559_vm12, %v935_v61, -1e+30  ;;  %v5682_v30 = vadd.f32 %v5392_v2, %v5664_v11  ;;  %v5686_v41 = vadd.f32 %v5394_v5, %v5664_v11  ;;  %v5690_v21 = vadd.f32 %v5392_v2, %v5666_v10 }
  0xc9   : > { %9979 = vst [vmem:[#allocation26_spill] sm:$0xff] %v5678_v37  ;;  %v941_v63 = vmax.f32 %v5582_v0, %v813_v23  ;;  %v9980_v62 = vmov 0  ;;  %v5701_v61 = vadd.f32 %v5394_v5, %v5666_v10  ;;  %v1797_v9 = vmax.f32 %v5670_v17, %v5674_v28 }
  0xca   : > { %v9981_v62 = vsel %vm5695_vm6, 4294967295, %v9980_v62  ;;  %v811_v52 = vmul.f32 0.01, %v683_v58  ;;  %v812_v53 = vmul.f32 0.01, %v684_v29  ;;  %v937_v50 = vmax.f32 %v681_v45, %v809_v57 }
  0xcb   : > { %9982 = vst [vmem:[#allocation27_spill] sm:$0xff] %v9981_v62  ;;  %v938_v49 = vmax.f32 %v682_v13, %v810_v55  ;;  %v815_v47 = vmul.f32 0.01, %v5612_v12  ;;  %v816_v0 = vmul.f32 0.01, %v5624_v35  ;;  %v5707_v8 = vpop.permute.xlu1 %533  ;;  %v5709_v32 = vpop.permute.xlu0 %528  ;;  %v1798_v46 = vmax.f32 %v1797_v9, %v5678_v37 }
  0xcc   : > { %v5713_v23 = vsel %vm5591_vm13, %v936_v14, -1e+30  ;;  %v939_v42 = vmax.f32 %v683_v58, %v811_v52  ;;  %v942_v40 = vmax.f32 %v5585_v27, %v814_v4  ;;  %v5719_v55 = vadd.f32 %v5392_v2, %v5707_v8 }
  0xcd   : > { %9983 = vst [vmem:[#allocation28_spill] sm:$0xff] %v5713_v23  ;;  %v5723_v57 = vadd.f32 %v5394_v5, %v5707_v8  ;;  %v5727_v13 = vadd.f32 %v5392_v2, %v5709_v32  ;;  %v940_v45 = vmax.f32 %v684_v29, %v812_v53  ;;  %v9984_v14 = vmov 0 }
  0xce   : > { %v9985_v14 = vsel %vm5731_vm7, 4294967295, %v9984_v14  ;;  %v9987_v58 = vmov 0  ;;  %v9990_v4 = vunpack.c.2.s8 %v5438_v18  ;;  %v9991_v27 = vmov 0 }
  0xcf   : > { %9986 = vst [vmem:[#allocation29_spill] sm:$0xff] %v9985_v14  ;;  %v9988_v58 = vsel %vm5737_vm8, 4294967295, %v9987_v58  ;;  %v5749_v29 = vadd.f32 %v5394_v5, %v5709_v32  ;;  %v1799_v33 = vmax.f32 %v1798_v46, %v5713_v23  ;;  %v5754_v9 = vsel %vm5601_vm14, %v937_v50, -1e+30  ;;  %v5776_v26 = vpop.permute.xlu0 %538 }
  0xd0   : > { %9989 = vst [vmem:[#allocation30_spill] sm:$0xff] %v9988_v58  ;;  %vm5743_vm9 = vcmp.ne.s32.totalorder %v9990_v4, 0  ;;  %9994 = vst [vmem:[#allocation32_spill] sm:$0xff] %v5754_v9  ;;  %v5758_v39 = vsel %vm5607_vm15, %v938_v49, -1e+30  ;;  %v9996_v52 = vunpack.c.3.s8 %v5438_v18  ;;  %v9997_v53 = vmov 0  ;;  %v5774_v49 = vpop.permute.xlu1 %543 }
  0xd1   : > { %v9992_v27 = vsel %vm5743_vm9, 4294967295, %v9991_v27  ;;  %9995 = vst [vmem:[#allocation33_spill] sm:$0xff] %v5758_v39  ;;  %v5768_v4 = vsel %vm5619_vm1, %v939_v42, -1e+30  ;;  %v1802_v46 = vmax.f32 %v5754_v9, %v5758_v39  ;;  %v943_v50 = vmax.f32 %v5612_v12, %v815_v47  ;;  %1800 = vmax.xlane.f32.xlu0 %v1799_v33 }
  0xd2   : > { %9993 = vst [vmem:[#allocation31_spill] sm:$0xff] %v9992_v27  ;;  %vm5762_vm0 = vcmp.ne.s32.totalorder %v9996_v52, 0  ;;  %10000 = vst [vmem:[#allocation35_spill] sm:$0xff] %v5768_v4  ;;  %v944_v20 = vmax.f32 %v5624_v35, %v816_v0  ;;  %v5780_v18 = vsel %vm5636_vm2, %v941_v63, -1e+30  ;;  %v691_v52 = vadd.f32 %v5396_v6, %v5615_v31 }
  0xd3   : > { %v9998_v53 = vsel %vm5762_vm0, 4294967295, %v9997_v53  ;;  %10001 = vst [vmem:[#allocation36_spill] sm:$0xff] %v5780_v18  ;;  %v5784_v42 = vsel %vm5642_vm3, %v942_v40, -1e+30  ;;  %v692_v47 = vadd.f32 %v5398_v7, %v5615_v31  ;;  %v10003_v12 = vunpack.c.0.s8 %v5454_v36  ;;  %v5859_v9 = vpop.permute.xlu0 %548 }
  0xd4   : > { %9999 = vst [vmem:[#allocation34_spill] sm:$0xff] %v9998_v53  ;;  %10002 = vst [vmem:[#allocation37_spill] sm:$0xff] %v5784_v42  ;;  %v10004_v35 = vmov 0  ;;  %v5798_v63 = vadd.f32 %v5392_v2, %v5774_v49  ;;  %v5802_v40 = vadd.f32 %v5394_v5, %v5774_v49  ;;  %v5806_v0 = vadd.f32 %v5392_v2, %v5776_v26  ;;  %v423_v53 = vld [vmem:[%s5364_s13 + $0xc0] sm:$0xff] }
  0xd5   : > { %vm5792_vm1 = vcmp.ne.s32.totalorder %v10003_v12, 0  ;;  %v5810_v31 = vsel %vm5652_vm4, %v940_v45, -1e+30  ;;  %v10008_v33 = vunpack.c.1.s8 %v5454_v36  ;;  %v10009_v12 = vmov 0 }
  0xd6   : > { %v10005_v35 = vsel %vm5792_vm1, 4294967295, %v10004_v35  ;;  %10007 = vst [vmem:[#allocation39_spill] sm:$0xff] %v5810_v31  ;;  %vm5820_vm3 = vcmp.ne.s32.totalorder %v10012_v38, 0  ;;  %v10013_v44 = vmov 0  ;;  %v5826_v34 = vadd.f32 %v5394_v5, %v5776_v26 }
  0xd7   : > { %10006 = vst [vmem:[#allocation38_spill] sm:$0xff] %v10005_v35  ;;  %vm5814_vm2 = vcmp.ne.s32.totalorder %v10008_v33, 0  ;;  %v10014_v44 = vsel %vm5820_vm3, 4294967295, %v10013_v44  ;;  %v1803_v16 = vmax.f32 %v1802_v46, %v5768_v4  ;;  %v5831_v45 = vsel %vm5660_vm5, %v943_v50, -1e+30  ;;  %v5857_v4 = vpop.permute.xlu1 %553 }
  0xd8   : > { %v10010_v12 = vsel %vm5814_vm2, 4294967295, %v10009_v12  ;;  %10015 = vst [vmem:[#allocation41_spill] sm:$0xff] %v10014_v44  ;;  %10016 = vst [vmem:[#allocation42_spill] sm:$0xff] %v5831_v45  ;;  %v1807_v33 = vmax.f32 %v5780_v18, %v5784_v42  ;;  %vm5837_vm12 = vcmp.ne.s32.totalorder %v10017_v25, 0  ;;  %v10018_v38 = vmov 0 }
  0xd9   : > { %10011 = vst [vmem:[#allocation40_spill] sm:$0xff] %v10010_v12  ;;  %v10019_v38 = vsel %vm5837_vm12, 4294967295, %v10018_v38  ;;  %v817_v48 = vmul.f32 0.01, %v5629_v22  ;;  %v818_v60 = vmul.f32 0.01, %v5648_v3  ;;  %v695_v46 = vadd.f32 %v5396_v6, %v5666_v10 }
  0xda   : > { %10020 = vst [vmem:[#allocation43_spill] sm:$0xff] %v10019_v38  ;;  %v819_v19 = vmul.f32 0.01, %v691_v52  ;;  %v10021_v50 = vunpack.c.0.s8 %v5462_v43  ;;  %v1804_v36 = vmax.f32 %v1803_v16, %v5810_v31  ;;  %v5854_v25 = vsel %vm5695_vm6, %v944_v20, -1e+30 }
  0xdb   : > { %10025 = vst [vmem:[#allocation45_spill] sm:$0xff] %v5854_v25  ;;  %v1808_v42 = vmax.f32 %v1807_v33, %v5831_v45  ;;  %v820_v39 = vmul.f32 0.01, %v692_v47  ;;  %v5863_v18 = vadd.f32 %v5392_v2, %v5857_v4  ;;  %v5871_v16 = vadd.f32 %v5392_v2, %v5859_v9 }
  0xdc   : > { %vm5847_vm5 = vcmp.ne.s32.totalorder %v10021_v50, 0  ;;  %v5867_v50 = vadd.f32 %v5394_v5, %v5857_v4  ;;  %v696_v20 = vadd.f32 %v5398_v7, %v5666_v10  ;;  %v10027_v33 = vunpack.c.1.s8 %v5462_v43  ;;  %1805 = vmax.xlane.f32.xlu1 %v1804_v36 }
  0xdd   : > { %v10023_v54 = vsel %vm5847_vm5, 4294967295, %v10022_v54  ;;  %v10028_v62 = vmov 0  ;;  %v10031_v45 = vunpack.c.2.s8 %v5462_v43  ;;  %v10032_v31 = vmov 0 }
  0xde   : > { %10024 = vst [vmem:[#allocation44_spill] sm:$0xff] %v10023_v54  ;;  %10026 = vst [vmem:[#allocation46_spill] sm:$0xff] %v5867_v50  ;;  %vm5877_vm6 = vcmp.ne.s32.totalorder %v10027_v33, 0  ;;  %v1809_v23 = vmax.f32 %v1808_v42, %v5854_v25  ;;  %v945_v37 = vmax.f32 %v5629_v22, %v817_v48  ;;  %v946_v28 = vmax.f32 %v5648_v3, %v818_v60 }
  0xdf   : > { %v10029_v62 = vsel %vm5877_vm6, 4294967295, %v10028_v62  ;;  %vm5883_vm14 = vcmp.ne.s32.totalorder %v10031_v45, 0  ;;  %v947_v10 = vmax.f32 %v691_v52, %v819_v19  ;;  %v10035_v17 = vunpack.c.3.s8 %v5462_v43 }
  0xe0   : > { %10030 = vst [vmem:[#allocation47_spill] sm:$0xff] %v10029_v62  ;;  %v10033_v31 = vsel %vm5883_vm14, 4294967295, %v10032_v31  ;;  %v10036_v33 = vmov 0  ;;  %v948_v2 = vmax.f32 %v692_v47, %v820_v39  ;;  %v821_v45 = vmul.f32 0.01, %v5690_v21  ;;  %1810 = vmax.xlane.f32.xlu0 %v1809_v23 }
  0xe1   : > { %10034 = vst [vmem:[#allocation48_spill] sm:$0xff] %v10033_v31  ;;  %vm5892_vm10 = vcmp.ne.s32.totalorder %v10035_v17, 0  ;;  %v822_v24 = vmul.f32 0.01, %v5701_v61  ;;  %v823_v50 = vmul.f32 0.01, %v695_v46  ;;  %v699_v19 = vadd.f32 %v5396_v6, %v5664_v11 }
  0xe2   : > { %v10037_v33 = vsel %vm5892_vm10, 4294967295, %v10036_v33  ;;  %v5900_v42 = vsel %vm5731_vm7, %v945_v37, -1e+30  ;;  %v5904_v3 = vsel %vm5737_vm8, %v946_v28, -1e+30  ;;  %v949_v17 = vmax.f32 %v5690_v21, %v821_v45 }
  0xe3   : > { %10038 = vst [vmem:[#allocation49_spill] sm:$0xff] %v10037_v33  ;;  %10039 = vst [vmem:[#allocation50_spill] sm:$0xff] %v5900_v42  ;;  %v5908_v43 = vsel %vm5743_vm9, %v947_v10, -1e+30  ;;  %v5914_v22 = vsel %vm5762_vm0, %v948_v2, -1e+30  ;;  %v1812_v48 = vmax.f32 %v5900_v42, %v5904_v3  ;;  %v10043_v28 = vunpack.c.0.s8 %v5479_v51 }
  0xe4   : > { %10040 = vst [vmem:[#allocation51_spill] sm:$0xff] %v5904_v3  ;;  %10041 = vst [vmem:[#allocation52_spill] sm:$0xff] %v5908_v43  ;;  %v824_v60 = vmul.f32 0.01, %v696_v20  ;;  %v10044_v37 = vmov 0  ;;  %v10047_v23 = vunpack.c.1.s8 %v5479_v51  ;;  %v10048_v39 = vmov 0 }
  0xe5   : > { %10042 = vst [vmem:[#allocation53_spill] sm:$0xff] %v5914_v22  ;;  %vm5921_vm7 = vcmp.ne.s32.totalorder %v10043_v28, 0  ;;  %v950_v2 = vmax.f32 %v5701_v61, %v822_v24  ;;  %v951_v52 = vmax.f32 %v695_v46, %v823_v50  ;;  %v700_v47 = vadd.f32 %v5398_v7, %v5664_v11 }
  0xe6   : > { %v10045_v37 = vsel %vm5921_vm7, 4294967295, %v10044_v37  ;;  %vm5927_vm9 = vcmp.ne.s32.totalorder %v10047_v23, 0  ;;  %v825_v21 = vmul.f32 0.01, %v5682_v30  ;;  %v10051_v36 = vunpack.c.2.s8 %v5479_v51 }
  0xe7   : > { %10046 = vst [vmem:[#allocation54_spill] sm:$0xff] %v10045_v37  ;;  %v10049_v39 = vsel %vm5927_vm9, 4294967295, %v10048_v39  ;;  %v10052_v10 = vmov 0  ;;  %v1813_v45 = vmax.f32 %v1812_v48, %v5908_v43  ;;  %v952_v28 = vmax.f32 %v696_v20, %v824_v60  ;;  %v6566_v43 = vld [vmem:[#allocation2 + $0x38] sm:$0xff] }
  0xe8   : > { %10050 = vst [vmem:[#allocation55_spill] sm:$0xff] %v10049_v39  ;;  %vm5937_vm0 = vcmp.ne.s32.totalorder %v10051_v36, 0  ;;  %v5944_v23 = vsel %vm5792_vm1, %v949_v17, -1e+30  ;;  %v826_v24 = vmul.f32 0.01, %v5686_v41  ;;  %v10056_v61 = vunpack.c.3.s8 %v5479_v51 }
  0xe9   : > { %v10053_v10 = vsel %vm5937_vm0, 4294967295, %v10052_v10  ;;  %10055 = vst [vmem:[#allocation57_spill] sm:$0xff] %v5944_v23  ;;  %v10057_v11 = vmov 0  ;;  %v5955_v46 = vsel %vm5814_vm2, %v950_v2, -1e+30  ;;  %v953_v48 = vmax.f32 %v5682_v30, %v825_v21  ;;  %10207 = vst [vmem:[#allocation126_spill] sm:$0xff] %v6566_v43 }
  0xea   : > { %10054 = vst [vmem:[#allocation56_spill] sm:$0xff] %v10053_v10  ;;  %vm5949_vm8 = vcmp.ne.s32.totalorder %v10056_v61, 0  ;;  %10060 = vst [vmem:[#allocation59_spill] sm:$0xff] %v5955_v46  ;;  %v5959_v50 = vsel %vm5820_vm3, %v951_v52, -1e+30  ;;  %v1814_v60 = vmax.f32 %v1813_v45, %v5914_v22  ;;  %v1817_v17 = vmax.f32 %v5944_v23, %v5955_v46 }
  0xeb   : > { %v10058_v11 = vsel %vm5949_vm8, 4294967295, %v10057_v11  ;;  %10061 = vst [vmem:[#allocation60_spill] sm:$0xff] %v5959_v50  ;;  %v827_v20 = vmul.f32 0.01, %v699_v19  ;;  %v5965_v51 = vsel %vm5837_vm12, %v952_v28, -1e+30  ;;  %v10063_v2 = vunpack.c.0.s8 %v5522_v56 }
  0xec   : > { %10059 = vst [vmem:[#allocation58_spill] sm:$0xff] %v10058_v11  ;;  %10062 = vst [vmem:[#allocation61_spill] sm:$0xff] %v5965_v51  ;;  %v828_v36 = vmul.f32 0.01, %v700_v47  ;;  %v10064_v61 = vmov 0  ;;  %v10067_v52 = vunpack.c.1.s8 %v5522_v56  ;;  %v10068_v30 = vmov 0  ;;  %1815 = vmax.xlane.f32.xlu1 %v1814_v60 }
  0xed   : > { %vm5971_vm1 = vcmp.ne.s32.totalorder %v10063_v2, 0  ;;  %v10071_v21 = vunpack.c.2.s8 %v5522_v56  ;;  %v10072_v45 = vmov 0  ;;  %v954_v28 = vmax.f32 %v5686_v41, %v826_v24 }
  0xee   : > { %v10065_v61 = vsel %vm5971_vm1, 4294967295, %v10064_v61  ;;  %vm5977_vm3 = vcmp.ne.s32.totalorder %v10067_v52, 0  ;;  %v955_v44 = vmax.f32 %v699_v19, %v827_v20  ;;  %v5990_v2 = vsel %vm5847_vm5, %v953_v48, -1e+30 }
  0xef   : > { %10066 = vst [vmem:[#allocation62_spill] sm:$0xff] %v10065_v61  ;;  %v10069_v30 = vsel %vm5977_vm3, 4294967295, %v10068_v30  ;;  %vm5983_vm12 = vcmp.ne.s32.totalorder %v10071_v21, 0  ;;  %10075 = vst [vmem:[#allocation65_spill] sm:$0xff] %v5990_v2  ;;  %v703_v35 = vadd.f32 %v5396_v6, %v5709_v32  ;;  %v10076_v52 = vunpack.c.3.s8 %v5522_v56 }
  0xf0   : > { %10070 = vst [vmem:[#allocation63_spill] sm:$0xff] %v10069_v30  ;;  %v10073_v45 = vsel %vm5983_vm12, 4294967295, %v10072_v45  ;;  %v10077_v38 = vmov 0  ;;  %v1818_v21 = vmax.f32 %v1817_v17, %v5959_v50  ;;  %v956_v12 = vmax.f32 %v700_v47, %v828_v36 }
  0xf1   : > { %10074 = vst [vmem:[#allocation64_spill] sm:$0xff] %v10073_v45  ;;  %vm5996_vm2 = vcmp.ne.s32.totalorder %v10076_v52, 0  ;;  %v704_v41 = vadd.f32 %v5398_v7, %v5709_v32  ;;  %v829_v19 = vmul.f32 0.01, %v5727_v13  ;;  %v6006_v24 = vsel %vm5877_vm6, %v954_v28, -1e+30 }
  0xf2   : > { %v10078_v38 = vsel %vm5996_vm2, 4294967295, %v10077_v38  ;;  %10080 = vst [vmem:[#allocation67_spill] sm:$0xff] %v6006_v24  ;;  %v6010_v56 = vsel %vm5883_vm14, %v955_v44, -1e+30  ;;  %v830_v20 = vmul.f32 0.01, %v5749_v29  ;;  %v707_v48 = vadd.f32 %v5396_v6, %v5707_v8 }
  0xf3   : > { %10079 = vst [vmem:[#allocation66_spill] sm:$0xff] %v10078_v38  ;;  %10081 = vst [vmem:[#allocation68_spill] sm:$0xff] %v6010_v56  ;;  %v1819_v47 = vmax.f32 %v1818_v21, %v5965_v51  ;;  %v6018_v32 = vsel %vm5892_vm10, %v956_v12, -1e+30  ;;  %v1822_v60 = vmax.f32 %v5990_v2, %v6006_v24  ;;  %v831_v17 = vmul.f32 0.01, %v703_v35 }
  0xf4   : > { %10082 = vst [vmem:[#allocation69_spill] sm:$0xff] %v6018_v32  ;;  %v832_v36 = vmul.f32 0.01, %v704_v41  ;;  %v957_v28 = vmax.f32 %v5727_v13, %v829_v19  ;;  %v958_v44 = vmax.f32 %v5749_v29, %v830_v20  ;;  %v708_v52 = vadd.f32 %v5398_v7, %v5707_v8 }
  0xf5   : > { %v10083_v31 = vunpack.c.0.s8 %v5529_v59  ;;  %v10084_v21 = vmov 0  ;;  %1820 = vmax.xlane.f32.xlu0 %v1819_v47  ;;  %v1823_v12 = vmax.f32 %v1822_v60, %v6010_v56  ;;  %v959_v54 = vmax.f32 %v703_v35, %v831_v17 }
  0xf6   : > { %v833_v33 = vmul.f32 0.01, %v5719_v55  ;;  %v834_v62 = vmul.f32 0.01, %v5723_v57  ;;  %v10087_v13 = vunpack.c.1.s8 %v5529_v59  ;;  %v10088_v29 = vmov 0 }
  0xf7   : > { %vm6028_vm14 = vcmp.ne.s32.totalorder %v10083_v31, 0  ;;  %v10091_v8 = vunpack.c.2.s8 %v5529_v59  ;;  %v10092_v31 = vmov 0  ;;  %v960_v19 = vmax.f32 %v704_v41, %v832_v36 }
  0xf8   : > { %v10085_v21 = vsel %vm6028_vm14, 4294967295, %v10084_v21  ;;  %vm6037_vm5 = vcmp.ne.s32.totalorder %v10087_v13, 0  ;;  %v6049_v35 = vsel %vm5921_vm7, %v957_v28, -1e+30  ;;  %v6053_v20 = vsel %vm5927_vm9, %v958_v44, -1e+30 }
  0xf9   : > { %10086 = vst [vmem:[#allocation70_spill] sm:$0xff] %v10085_v21  ;;  %v10089_v29 = vsel %vm6037_vm5, 4294967295, %v10088_v29  ;;  %vm6043_vm10 = vcmp.ne.s32.totalorder %v10091_v8, 0  ;;  %10095 = vst [vmem:[#allocation73_spill] sm:$0xff] %v6049_v35  ;;  %v835_v47 = vmul.f32 0.01, %v707_v48  ;;  %v10097_v60 = vunpack.c.0.s8 %v5537_v1 }
  0xfa   : > { %10090 = vst [vmem:[#allocation71_spill] sm:$0xff] %v10089_v29  ;;  %v10093_v31 = vsel %vm6043_vm10, 4294967295, %v10092_v31  ;;  %10096 = vst [vmem:[#allocation74_spill] sm:$0xff] %v6053_v20  ;;  %v10098_v17 = vmov 0  ;;  %v1824_v13 = vmax.f32 %v1823_v12, %v6018_v32  ;;  %v6064_v41 = vsel %vm5937_vm0, %v959_v54, -1e+30 }
  0xfb   : > { %10094 = vst [vmem:[#allocation72_spill] sm:$0xff] %v10093_v31  ;;  %vm6057_vm6 = vcmp.ne.s32.totalorder %v10097_v60, 0  ;;  %10101 = vst [vmem:[#allocation76_spill] sm:$0xff] %v6064_v41  ;;  %v1827_v36 = vmax.f32 %v6049_v35, %v6053_v20  ;;  %v836_v28 = vmul.f32 0.01, %v708_v52  ;;  %v10102_v44 = vunpack.c.1.s8 %v5537_v1  ;;  %v6543_v32 = vld [vmem:[#allocation2 + $0x30] sm:$0xff] }
  0xfc   : > { %v10099_v17 = vsel %vm6057_vm6, 4294967295, %v10098_v17  ;;  %v10103_v8 = vmov 0  ;;  %v6076_v60 = vsel %vm5949_vm8, %v960_v19, -1e+30  ;;  %v961_v12 = vmax.f32 %v5719_v55, %v833_v33  ;;  %1825 = vmax.xlane.f32.xlu1 %v1824_v13  ;;  %10203 = vst [vmem:[#allocation123_spill] sm:$0xff] %v6543_v32 }
  0xfd   : > { %10100 = vst [vmem:[#allocation75_spill] sm:$0xff] %v10099_v17  ;;  %vm6070_vm7 = vcmp.ne.s32.totalorder %v10102_v44, 0  ;;  %10106 = vst [vmem:[#allocation78_spill] sm:$0xff] %v6076_v60  ;;  %v962_v10 = vmax.f32 %v5723_v57, %v834_v62  ;;  %v963_v54 = vmax.f32 %v707_v48, %v835_v47  ;;  %v10107_v37 = vunpack.c.3.s8 %v5529_v59 }
  0xfe   : > { %v10104_v8 = vsel %vm6070_vm7, 4294967295, %v10103_v8  ;;  %v10108_v39 = vmov 0  ;;  %v10111_v44 = vunpack.c.2.s8 %v5537_v1  ;;  %v10112_v27 = vmov 0 }
  0xff   : > { %10105 = vst [vmem:[#allocation77_spill] sm:$0xff] %v10104_v8  ;;  %vm6082_vm0 = vcmp.ne.s32.totalorder %v10107_v37, 0  ;;  %v1828_v19 = vmax.f32 %v1827_v36, %v6064_v41  ;;  %v964_v11 = vmax.f32 %v708_v52, %v836_v28  ;;  %v711_v62 = vadd.f32 %v5396_v6, %v5776_v26  ;;  %v6486_v41 = vld [vmem:[#allocation2 + $0x20] sm:$0xff] }
 0x100   : > { %v10109_v39 = vsel %vm6082_vm0, 4294967295, %v10108_v39  ;;  %vm6088_vm9 = vcmp.ne.s32.totalorder %v10111_v44, 0  ;;  %v712_v59 = vadd.f32 %v5398_v7, %v5776_v26  ;;  %v6099_v55 = vsel %vm5971_vm1, %v961_v12, -1e+30  ;;  %10194 = vst [vmem:[#allocation117_spill] sm:$0xff] %v6486_v41 }
 0x101   : > { %10110 = vst [vmem:[#allocation79_spill] sm:$0xff] %v10109_v39  ;;  %v10113_v27 = vsel %vm6088_vm9, 4294967295, %v10112_v27  ;;  %10115 = vst [vmem:[#allocation81_spill] sm:$0xff] %v6099_v55  ;;  %v6103_v57 = vsel %vm5977_vm3, %v962_v10, -1e+30  ;;  %v715_v37 = vadd.f32 %v5396_v6, %v5774_v49  ;;  %v1829_v48 = vmax.f32 %v1828_v19, %v6076_v60 }
 0x102   : > { %10114 = vst [vmem:[#allocation80_spill] sm:$0xff] %v10113_v27  ;;  %10116 = vst [vmem:[#allocation82_spill] sm:$0xff] %v6103_v57  ;;  %v6107_v33 = vsel %vm5983_vm12, %v963_v54, -1e+30  ;;  %v6114_v26 = vsel %vm5996_vm2, %v964_v11, -1e+30  ;;  %v1832_v52 = vmax.f32 %v6099_v55, %v6103_v57  ;;  %v10119_v10 = vunpack.c.3.s8 %v5537_v1 }
 0x103   : > { %10117 = vst [vmem:[#allocation83_spill] sm:$0xff] %v6107_v33  ;;  %10118 = vst [vmem:[#allocation84_spill] sm:$0xff] %v6114_v26  ;;  %v837_v47 = vmul.f32 0.01, %v5806_v0  ;;  %v10120_v13 = vmov 0  ;;  %v10123_v36 = vunpack.c.0.s8 %v5543_v15  ;;  %v10124_v28 = vmov 0  ;;  %1830 = vmax.xlane.f32.xlu0 %v1829_v48 }
 0x104   : > { %vm6121_vm1 = vcmp.ne.s32.totalorder %v10119_v10, 0  ;;  %v838_v11 = vmul.f32 0.01, %v5826_v34  ;;  %v839_v12 = vmul.f32 0.01, %v711_v62  ;;  %v716_v44 = vadd.f32 %v5398_v7, %v5774_v49  ;;  %v426_v57 = vld [vmem:[%s5364_s13 + $0xd8] sm:$0xff] }
 0x105   : > { %v10121_v13 = vsel %vm6121_vm1, 4294967295, %v10120_v13  ;;  %vm6127_vm12 = vcmp.ne.s32.totalorder %v10123_v36, 0  ;;  %v840_v54 = vmul.f32 0.01, %v712_v59  ;;  %v1833_v1 = vmax.f32 %v1832_v52, %v6107_v33 }
 0x106   : > { %10122 = vst [vmem:[#allocation85_spill] sm:$0xff] %v10121_v13  ;;  %v10125_v28 = vsel %vm6127_vm12, 4294967295, %v10124_v28  ;;  %v965_v19 = vmax.f32 %v5806_v0, %v837_v47  ;;  %v841_v10 = vmul.f32 0.01, %v5798_v63  ;;  %v842_v45 = vmul.f32 0.01, %v5802_v40 }
 0x107   : > { %10126 = vst [vmem:[#allocation86_spill] sm:$0xff] %v10125_v28  ;;  %v10127_v36 = vunpack.c.1.s8 %v5543_v15  ;;  %v10128_v61 = vmov 0  ;;  %v966_v38 = vmax.f32 %v5826_v34, %v838_v11  ;;  %v967_v30 = vmax.f32 %v711_v62, %v839_v12 }
 0x108   : > { %v968_v14 = vmax.f32 %v712_v59, %v840_v54  ;;  %v843_v49 = vmul.f32 0.01, %v715_v37  ;;  %v1834_v48 = vmax.f32 %v1833_v1, %v6114_v26  ;;  %v6148_v0 = vsel %vm6028_vm14, %v965_v19, -1e+30  ;;  %v425_v26 = vld [vmem:[%s5364_s13 + $0xd0] sm:$0xff] }
 0x109   : > { %vm6140_vm2 = vcmp.ne.s32.totalorder %v10127_v36, 0  ;;  %10131 = vst [vmem:[#allocation88_spill] sm:$0xff] %v6148_v0  ;;  %v844_v52 = vmul.f32 0.01, %v716_v44  ;;  %v969_v47 = vmax.f32 %v5798_v63, %v841_v10  ;;  %v10132_v33 = vunpack.c.2.s8 %v5543_v15 }
 0x10a   : > { %v10129_v61 = vsel %vm6140_vm2, 4294967295, %v10128_v61  ;;  %v10133_v36 = vmov 0  ;;  %v718_v34 = vadd.f32 %v5394_v5, %v5859_v9  ;;  %v6161_v62 = vsel %vm6037_vm5, %v966_v38, -1e+30  ;;  %1835 = vmax.xlane.f32.xlu1 %v1834_v48 }
 0x10b   : > { %10130 = vst [vmem:[#allocation87_spill] sm:$0xff] %v10129_v61  ;;  %vm6153_vm8 = vcmp.ne.s32.totalorder %v10132_v33, 0  ;;  %10136 = vst [vmem:[#allocation90_spill] sm:$0xff] %v6161_v62  ;;  %v6165_v59 = vsel %vm6043_vm10, %v967_v30, -1e+30  ;;  %v970_v11 = vmax.f32 %v5802_v40, %v842_v45  ;;  %v1837_v63 = vmax.f32 %v6148_v0, %v6161_v62  ;;  %v424_v0 = vld [vmem:[%s5364_s13 + $0xc8] sm:$0xff] }
 0x10c   : > { %v10134_v36 = vsel %vm6153_vm8, 4294967295, %v10133_v36  ;;  %10137 = vst [vmem:[#allocation91_spill] sm:$0xff] %v6165_v59  ;;  %v971_v33 = vmax.f32 %v715_v37, %v843_v49  ;;  %v972_v12 = vmax.f32 %v716_v44, %v844_v52  ;;  %v6172_v54 = vsel %vm6057_vm6, %v969_v47, -1e+30 }
 0x10d   : > { %10135 = vst [vmem:[#allocation89_spill] sm:$0xff] %v10134_v36  ;;  %10138 = vst [vmem:[#allocation92_spill] sm:$0xff] %v6172_v54  ;;  %v10139_v1 = vunpack.c.3.s8 %v5543_v15  ;;  %v10140_v38 = vmov 0  ;;  %v6182_v30 = vsel %vm6070_vm7, %v970_v11, -1e+30  ;;  %v719_v40 = vadd.f32 %v5396_v6, %v5859_v9 }
 0x10e   : > { %10143 = vst [vmem:[#allocation94_spill] sm:$0xff] %v6182_v30  ;;  %v720_v45 = vadd.f32 %v5398_v7, %v5859_v9  ;;  %v845_v37 = vmul.f32 0.01, %v5871_v16  ;;  %v6191_v44 = vsel %vm6082_vm0, %v968_v14, -1e+30  ;;  %v1838_v15 = vmax.f32 %v1837_v63, %v6165_v59 }
 0x10f   : > { %vm6176_vm14 = vcmp.ne.s32.totalorder %v10139_v1, 0  ;;  %10144 = vst [vmem:[#allocation95_spill] sm:$0xff] %v6191_v44  ;;  %v6196_v19 = vsel %vm6088_vm9, %v971_v33, -1e+30  ;;  %v1842_v10 = vmax.f32 %v6172_v54, %v6182_v30  ;;  %v846_v49 = vmul.f32 0.01, %v718_v34 }
 0x110   : > { %v10141_v38 = vsel %vm6176_vm14, 4294967295, %v10140_v38  ;;  %10145 = vst [vmem:[#allocation96_spill] sm:$0xff] %v6196_v19  ;;  %v847_v48 = vmul.f32 0.01, %v719_v40  ;;  %v848_v52 = vmul.f32 0.01, %v720_v45  ;;  %v973_v9 = vmax.f32 %v5871_v16, %v845_v37 }
 0x111   : > { %10142 = vst [vmem:[#allocation93_spill] sm:$0xff] %v10141_v38  ;;  %v1839_v47 = vmax.f32 %v1838_v15, %v6191_v44  ;;  %v1843_v11 = vmax.f32 %v1842_v10, %v6196_v19  ;;  %v723_v14 = vadd.f32 %v5396_v6, %v5857_v4  ;;  %v724_v63 = vadd.f32 %v5398_v7, %v5857_v4  ;;  %v10148_v15 = vld [vmem:[#allocation46_spill] sm:$0xff] }
 0x112   : > { %v6209_v33 = vsel %vm6121_vm1, %v972_v12, -1e+30  ;;  %v974_v1 = vmax.f32 %v718_v34, %v846_v49  ;;  %v975_v27 = vmax.f32 %v719_v40, %v847_v48  ;;  %v6213_v31 = vsel %vm6127_vm12, %v973_v9, -1e+30  ;;  %v10150_v12 = vld [vmem:[#allocation15_spill] sm:$0xff]  ;;  %v418_v38 = vld [vmem:[%s5364_s13 + $0x98] sm:$0xff] }
 0x113   : > { %10146 = vst [vmem:[#allocation97_spill] sm:$0xff] %v6209_v33  ;;  %10147 = vst [vmem:[#allocation98_spill] sm:$0xff] %v6213_v31  ;;  %1840 = vmax.xlane.f32.xlu0 %v1839_v47  ;;  %v1844_v16 = vmax.f32 %v1843_v11, %v6209_v33  ;;  %v849_v37 = vmul.f32 0.01, %v5863_v18  ;;  %v850_v10 = vmul.f32 0.01, %v10148_v15  ;;  %v976_v21 = vmax.f32 %v720_v45, %v848_v52 }
 0x114   : > { %v851_v17 = vmul.f32 0.01, %v723_v14  ;;  %v6220_v4 = vsel %vm6140_vm2, %v974_v1, -1e+30  ;;  %v10151_v34 = vunpack.c.0.s8 %v10150_v12  ;;  %v10152_v40 = vmov 0  ;;  %v6451_v30 = vld [vmem:[#allocation2 + $0x18] sm:$0xff] }
 0x115   : > { %10149 = vst [vmem:[#allocation46_spill] sm:$0xff] %v6220_v4  ;;  %v10155_v49 = vunpack.c.1.s8 %v10150_v12  ;;  %v10156_v48 = vmov 0  ;;  %1845 = vmax.xlane.f32.xlu1 %v1844_v16  ;;  %v1847_v45 = vmax.f32 %v6213_v31, %v6220_v4  ;;  %v852_v52 = vmul.f32 0.01, %v724_v63  ;;  %10189 = vst [vmem:[#allocation114_spill] sm:$0xff] %v6451_v30 }
 0x116   : > { %vm6224_vm9 = vcmp.ne.s32.totalorder %v10151_v34, 0  ;;  %v977_v9 = vmax.f32 %v5863_v18, %v849_v37  ;;  %v978_v47 = vmax.f32 %v10148_v15, %v850_v10  ;;  %v6240_v11 = vsel %vm6153_vm8, %v975_v27, -1e+30 }
 0x117   : > { %v10153_v40 = vsel %vm6224_vm9, 4294967295, %v10152_v40  ;;  %vm6230_vm12 = vcmp.ne.s32.totalorder %v10155_v49, 0  ;;  %10159 = vst [vmem:[#allocation100_spill] sm:$0xff] %v6240_v11  ;;  %v979_v1 = vmax.f32 %v723_v14, %v851_v17  ;;  %v10160_v34 = vunpack.c.2.s8 %v10150_v12 }
 0x118   : > { %10154 = vst [vmem:[#allocation15_spill] sm:$0xff] %v10153_v40  ;;  %v10157_v48 = vsel %vm6230_vm12, 4294967295, %v10156_v48  ;;  %v10161_v49 = vmov 0  ;;  %v1848_v16 = vmax.f32 %v1847_v45, %v6240_v11  ;;  %v980_v28 = vmax.f32 %v724_v63, %v852_v52  ;;  %v476_v52 = vld [vmem:[%s5346_s9 + $0x68] sm:$0xff] }
 0x119   : > { %10158 = vst [vmem:[#allocation99_spill] sm:$0xff] %v10157_v48  ;;  %vm6244_vm2 = vcmp.ne.s32.totalorder %v10160_v34, 0  ;;  %v6251_v18 = vsel %vm6224_vm9, %v977_v9, -1e+30  ;;  %v6255_v27 = vsel %vm6230_vm12, %v978_v47, -1e+30  ;;  %v10167_v14 = vunpack.c.3.s8 %v10150_v12 }
 0x11a   : > { %v10162_v49 = vsel %vm6244_vm2, 4294967295, %v10161_v49  ;;  %10164 = vst [vmem:[#allocation102_spill] sm:$0xff] %v6251_v18  ;;  %10165 = vst [vmem:[#allocation103_spill] sm:$0xff] %v6255_v27  ;;  %v6259_v17 = vsel %vm6176_vm14, %v976_v21, -1e+30  ;;  %v10168_v37 = vmov 0  ;;  %v1852_v63 = vmax.f32 %v6251_v18, %v6255_v27 }
 0x11b   : > { %10163 = vst [vmem:[#allocation101_spill] sm:$0xff] %v10162_v49  ;;  %10166 = vst [vmem:[#allocation104_spill] sm:$0xff] %v6259_v17  ;;  %vm6263_vm8 = vcmp.ne.s32.totalorder %v10167_v14, 0  ;;  %v1849_v15 = vmax.f32 %v1848_v16, %v6259_v17  ;;  %v6272_v10 = vsel %vm6244_vm2, %v979_v1, -1e+30  ;;  %v475_v9 = vld [vmem:[%s5346_s9 + $0x60] sm:$0xff] }
 0x11c   : > { %v10169_v37 = vsel %vm6263_vm8, 4294967295, %v10168_v37  ;;  %10171 = vst [vmem:[#allocation106_spill] sm:$0xff] %v6272_v10  ;;  %v1853_v21 = vmax.f32 %v1852_v63, %v6272_v10  ;;  %v6277_v12 = vsel %vm6263_vm8, %v980_v28, -1e+30  ;;  %v478_v47 = vld [vmem:[%s5346_s9 + $0x78] sm:$0xff]  ;;  %v477_v1 = vld [vmem:[%s5346_s9 + $0x70] sm:$0xff] }
 0x11d   : > { %10170 = vst [vmem:[#allocation105_spill] sm:$0xff] %v10169_v37  ;;  %1850 = vmax.xlane.f32.xlu0 %v1849_v15  ;;  %10172 = vst [vmem:[#allocation107_spill] sm:$0xff] %v6277_v12  ;;  %v480_v34 = vld [vmem:[%s5346_s9 + $0x88] sm:$0xff]  ;;  %v479_v28 = vld [vmem:[%s5346_s9 + $0x80] sm:$0xff]  ;;  %vm10180_vm10 = vcmask 7168  }
 0x11e   : > { %v1854_v45 = vmax.f32 %v1853_v21, %v6277_v12  ;;  %v482_v16 = vld [vmem:[%s5346_s9 + $0x98] sm:$0xff]  ;;  %v481_v14 = vld [vmem:[%s5346_s9 + $0x90] sm:$0xff]  ;;  %v484_v63 = vld [vmem:[%s5346_s9 + $0xa8] sm:$0xff] }
 0x11f   : > { %v483_v15 = vld [vmem:[%s5346_s9 + $0xa0] sm:$0xff]  ;;  %v486_v21 = vld [vmem:[%s5346_s9 + $0xb8] sm:$0xff]  ;;  %v416_v40 = vld [vmem:[%s5364_s13 + $0x88] sm:$0xff] }
 0x120   : > { %1855 = vmax.xlane.f32.xlu1 %v1854_v45  ;;  %v485_v45 = vld [vmem:[%s5346_s9 + $0xb0] sm:$0xff] }
 0x121   : > { %v417_v37 = vld [vmem:[%s5364_s13 + $0x90] sm:$0xff] }
 0x131   : > { %563 = vperm.xlu1 %4685, %v476_v52   ;;  %v488_v52 = vld [vmem:[%s5346_s9 + $0xc8] sm:$0xff] }
 0x133   : > { %558 = vperm.xlu0 %4684, %v475_v9   ;;  %v487_v9 = vld [vmem:[%s5346_s9 + $0xc0] sm:$0xff] }
 0x135   : > { %573 = vperm.xlu1 %4685, %v478_v47   ;;  %v490_v47 = vld [vmem:[%s5346_s9 + $0xd8] sm:$0xff] }
 0x137   : > { %568 = vperm.xlu0 %4684, %v477_v1   ;;  %v489_v1 = vld [vmem:[%s5346_s9 + $0xd0] sm:$0xff] }
 0x139   : > { %583 = vperm.xlu1 %4685, %v480_v34   ;;  %v492_v34 = vld [vmem:[%s5346_s9 + $0xe8] sm:$0xff] }
 0x13b   : > { %578 = vperm.xlu0 %4684, %v479_v28   ;;  %v491_v28 = vld [vmem:[%s5346_s9 + $0xe0] sm:$0xff] }
 0x13d   : > { %593 = vperm.xlu1 %4685, %v482_v16   ;;  %v494_v16 = vld [vmem:[%s5346_s9 + $0xf8] sm:$0xff] }
 0x13f   : > { %588 = vperm.xlu0 %4684, %v481_v14   ;;  %v493_v14 = vld [vmem:[%s5346_s9 + $0xf0] sm:$0xff]  ;;  %s5130_s9 = scalar_lea.vmem %s9257_s8, 4096 }
 0x140   : > { %p5131_p10 = scmp.ne.s32.totalorder %s9257_s8, %s5130_s9  ;;  %p5138_p5 = scmp.lt.s32.totalorder %s5136_s11, %s5130_s9 }
 0x141   : > { %603 = vperm.xlu1 %4685, %v484_v63   ;;  %v411_v63 = vld [vmem:[%s5364_s13 + $0x60] sm:$0xff] }
 0x142   : > { %vm443_vm2 = vnez %v411_v63  ;;  %p5132_p13 = pnand %p5131_p10, %p11117_p11  ;;  %p5139_p6 = por %p5138_p5, %p5137_p3 }
 0x143   : > { %598 = vperm.xlu0 %4684, %v483_v15   ;;  %v412_v15 = vld [vmem:[%s5364_s13 + $0x68] sm:$0xff] }
 0x144   : > { %vm444_vm9 = vnez %v412_v15  ;;  %p5133_p1 = pneg %p5132_p13 }
 0x145   : > { %613 = vperm.xlu1 %4685, %v486_v21   ;;  %v413_v21 = vld [vmem:[%s5364_s13 + $0x70] sm:$0xff] }
 0x146   : > { %vm445_vm8 = vnez %v413_v21  ;;  %p5140_p7 = pnand %p5139_p6, %p5133_p1 }
 0x147   : > { %608 = vperm.xlu0 %4684, %v485_v45   ;;  %v414_v45 = vld [vmem:[%s5364_s13 + $0x78] sm:$0xff] }
 0x148   : > { %vm446_vm14 = vnez %v414_v45 }
 0x149   : > { %623 = vperm.xlu1 %4685, %v488_v52   ;;  %v10173_v52 = vmov 0  }
 0x14b   : > { %618 = vperm.xlu0 %4684, %v487_v9   ;;  %v1073_v9 = vsel %vm443_vm2, 16843009, %v10173_v52 }
 0x14c   : > { %v1141_v63 = vunpack.c.0.s8 %v1073_v9  ;;  %v1149_v48 = vunpack.c.2.s8 %v1073_v9 }
 0x14d   : > { %633 = vperm.xlu1 %4685, %v490_v47   ;;  %v1074_v47 = vsel %vm444_vm9, 16843009, %v10173_v52  ;;  %vm449_vm9 = vnez %v417_v37  ;;  %v1153_v37 = vunpack.c.3.s8 %v1073_v9 }
 0x14e   : > { %v1142_v15 = vunpack.c.0.s8 %v1074_v47  ;;  %v1150_v61 = vunpack.c.2.s8 %v1074_v47  ;;  %v6319_v17 = vsel %vm449_vm9, 16843009, %v10173_v52 }
 0x14f   : > { %628 = vperm.xlu0 %4684, %v489_v1   ;;  %v1075_v1 = vsel %vm445_vm8, 16843009, %v10173_v52  ;;  %vm448_vm8 = vnez %v416_v40 }
 0x150   : > { %v1147_v49 = vunpack.c.1.s8 %v1075_v1  ;;  %v1143_v21 = vunpack.c.0.s8 %v1075_v1  ;;  %v1151_v13 = vunpack.c.2.s8 %v1075_v1  ;;  %v1257_v11 = vpack.c.b16 %v1142_v15, %v1141_v63 }
 0x151   : > { %643 = vperm.xlu1 %4685, %v492_v34   ;;  %v1076_v34 = vsel %vm446_vm14, 16843009, %v10173_v52  ;;  %vm450_vm14 = vnez %v418_v38  ;;  %v6316_v18 = vsel %vm448_vm8, 16843009, %v10173_v52  ;;  %v1154_v38 = vunpack.c.3.s8 %v1074_v47 }
 0x152   : > { %v1148_v36 = vunpack.c.1.s8 %v1076_v34  ;;  %v1144_v45 = vunpack.c.0.s8 %v1076_v34  ;;  %v1152_v39 = vunpack.c.2.s8 %v1076_v34  ;;  %v6322_v4 = vsel %vm450_vm14, 16843009, %v10173_v52 }
 0x153   : > { %638 = vperm.xlu0 %4684, %v491_v28   ;;  %v415_v28 = vld [vmem:[%s5364_s13 + $0x80] sm:$0xff]  ;;  %v1159_v63 = vunpack.c.0.s8 %v6319_v17  ;;  %v1160_v15 = vunpack.c.0.s8 %v6322_v4  ;;  %v1266_v27 = vpack.c.b16 %v1154_v38, %v1153_v37 }
 0x154   : > { %vm447_vm2 = vnez %v415_v28  ;;  %v1261_v29 = vpack.c.b16 %v1148_v36, %v1147_v49  ;;  %v1258_v10 = vpack.c.b16 %v1144_v45, %v1143_v21  ;;  %v1263_v28 = vpack.c.b16 %v1150_v61, %v1149_v48 }
 0x155   : > { %653 = vperm.xlu1 %4685, %v494_v16   ;;  %v1145_v16 = vunpack.c.1.s8 %v1073_v9  ;;  %v6313_v31 = vsel %vm447_vm2, 16843009, %v10173_v52  ;;  %v1264_v40 = vpack.c.b16 %v1152_v39, %v1151_v13  ;;  %v1156_v36 = vunpack.c.3.s8 %v1076_v34 }
 0x156   : > { %v1157_v49 = vunpack.c.0.s8 %v6313_v31  ;;  %v1259_v45 = vpack.c.b8 %v1258_v10, %v1257_v11  ;;  %v1270_v61 = vpack.c.b16 %v1160_v15, %v1159_v63  ;;  %v1161_v39 = vunpack.c.1.s8 %v6313_v31  ;;  %v427_v15 = vld [vmem:[%s5364_s13 + $0xe0] sm:$0xff]  ;;  %v428_v63 = vld [vmem:[%s5364_s13 + $0xe8] sm:$0xff] }
 0x157   : > { %648 = vperm.xlu0 %4684, %v493_v14   ;;  %v1146_v14 = vunpack.c.1.s8 %v1074_v47  ;;  %v1265_v12 = vpack.c.b8 %v1264_v40, %v1263_v28  ;;  %v1162_v13 = vunpack.c.1.s8 %v6316_v18  ;;  %v1163_v48 = vunpack.c.1.s8 %v6319_v17 }
 0x158   : > { %vm1329_vm8 = vnez %v1259_v45  ;;  %v1164_v9 = vunpack.c.1.s8 %v6322_v4  ;;  %v1165_v47 = vunpack.c.2.s8 %v6313_v31  ;;  %v1168_v11 = vunpack.c.2.s8 %v6322_v4 }
 0x159   : > { %v1260_v8 = vpack.c.b16 %v1146_v14, %v1145_v16  ;;  %v1155_v16 = vunpack.c.3.s8 %v1075_v1  ;;  %v1158_v14 = vunpack.c.0.s8 %v6316_v18  ;;  %vm1331_vm9 = vnez %v1265_v12  ;;  %v6356_v12 = vld [vmem:[#allocation2] sm:$0xff] }
 0x15a   : > { %v6340_v28 = vsel %vm1329_vm8, 16843009, %v10173_v52  ;;  %v1272_v40 = vpack.c.b16 %v1162_v13, %v1161_v39  ;;  %v1273_v37 = vpack.c.b16 %v1164_v9, %v1163_v48  ;;  %10178 = vst [vmem:[#allocation108_spill] sm:$0xff] %v6356_v12  ;;  %v1169_v13 = vunpack.c.3.s8 %v6313_v31 }
 0x15b   : > { %v1262_v21 = vpack.c.b8 %v1261_v29, %v1260_v8  ;;  %v1267_v19 = vpack.c.b16 %v1156_v36, %v1155_v16  ;;  %v1269_v54 = vpack.c.b16 %v1158_v14, %v1157_v49  ;;  %v1166_v29 = vunpack.c.2.s8 %v6316_v18 }
 0x15c   : > { %v1167_v8 = vunpack.c.2.s8 %v6319_v17  ;;  %v6344_v16 = vsel %vm1331_vm9, 16843009, %v10173_v52  ;;  %v1274_v9 = vpack.c.b8 %v1273_v37, %v1272_v40  ;;  %v1170_v40 = vunpack.c.3.s8 %v6316_v18 }
 0x15d   : > { %vm1330_vm2 = vnez %v1262_v21  ;;  %v1268_v1 = vpack.c.b8 %v1267_v19, %v1266_v27  ;;  %v1271_v34 = vpack.c.b8 %v1270_v61, %v1269_v54  ;;  %v1275_v36 = vpack.c.b16 %v1166_v29, %v1165_v47  ;;  %v419_v61 = vld [vmem:[%s5364_s13 + $0xa0] sm:$0xff]  ;;  %v420_v47 = vld [vmem:[%s5364_s13 + $0xa8] sm:$0xff]  ;;  %v421_v29 = vld [vmem:[%s5364_s13 + $0xb0] sm:$0xff] }
 0x15e   : > { %v6337_v10 = vsel %vm1330_vm2, 16843009, %v10173_v52  ;;  %v1276_v49 = vpack.c.b16 %v1168_v11, %v1167_v8  ;;  %v422_v8 = vld [vmem:[%s5364_s13 + $0xb8] sm:$0xff]  ;;  %v1801_v11 = vpop.xlane.xlu0 %1800  ;;  %v1171_v37 = vunpack.c.3.s8 %v6319_v17  ;;  %vm451_vm8 = vnez %v419_v61  ;;  %v6391_v27 = vld [vmem:[#allocation2 + $0x8] sm:$0xff]  ;;  %v6409_v17 = vld [vmem:[#allocation2 + $0x10] sm:$0xff] }
 0x15f   : > { %vm6348_vm14 = vnez %v1268_v1  ;;  %vm6352_vm2 = vnez %v1271_v34  ;;  %v6381_v48 = vmax.f32 %v6356_v12, %v1801_v11  ;;  %v1172_v19 = vunpack.c.3.s8 %v6322_v4  ;;  %10181 = vst [vmem:[#allocation110_spill] sm:$0xff] %v6391_v27  ;;  %10182 = vst [vmem:[#allocation111_spill] sm:$0xff] %v6409_v17 }
 0x160   : > { %v6372_v1 = vsel %vm6348_vm14, 16843009, %v10173_v52  ;;  %v6377_v34 = vsel %vm6352_vm2, 16843009, %v10173_v52  ;;  %v1277_v39 = vpack.c.b8 %v1276_v49, %v1275_v36  ;;  %vm452_vm9 = vnez %v420_v47 }
 0x161   : > { %10179 = vst [vmem:[#allocation109_spill] sm:$0xff] %v6381_v48  ;;  %vm453_vm14 = vnez %v421_v29  ;;  %vm454_vm12 = vnez %v422_v8  ;;  %3688 = vst.msk [vmem:[#allocation2] sm:$0xff] %vm10180_vm10, %v6381_v48  ;;  %vm1334_vm2 = vnez %v1274_v9  ;;  %v6397_v61 = vsel %vm451_vm8, 16843009, %v10173_v52 }
 0x162   : > { %v6401_v29 = vsel %vm452_vm9, 16843009, %v10173_v52  ;;  %v6404_v9 = vsel %vm453_vm14, 16843009, %v10173_v52  ;;  %v6407_v8 = vsel %vm454_vm12, 16843009, %v10173_v52  ;;  %vm6414_vm10 = vnez %v1277_v39 }
 0x163   : > { %v6412_v4 = vsel %vm1334_vm2, 16843009, %v10173_v52  ;;  %v1278_v47 = vpack.c.b16 %v1170_v40, %v1169_v13  ;;  %v1279_v49 = vpack.c.b16 %v1172_v19, %v1171_v37  ;;  %v1173_v14 = vunpack.c.0.s8 %v6397_v61  ;;  %v429_v40 = vld [vmem:[%s5364_s13 + $0xf0] sm:$0xff]  ;;  %v430_v37 = vld [vmem:[%s5364_s13 + $0xf8] sm:$0xff] }
 0x164   : > { %v1174_v39 = vunpack.c.0.s8 %v6401_v29  ;;  %v1175_v38 = vunpack.c.0.s8 %v6404_v9  ;;  %v1176_v13 = vunpack.c.0.s8 %v6407_v8  ;;  %vm10186_vm12 = vcmask 7168  }
 0x165   : > { %v6442_v45 = vsel %vm6414_vm10, 16843009, %v10173_v52  ;;  %v1280_v33 = vpack.c.b8 %v1279_v49, %v1278_v47  ;;  %vm459_vm8 = vnez %v427_v15  ;;  %vm460_vm9 = vnez %v428_v63  ;;  %vm10188_vm14 = vmmov %vm10186_vm12 }
 0x166   : > { %v1178_v44 = vunpack.c.1.s8 %v6401_v29  ;;  %vm461_vm2 = vnez %v429_v40  ;;  %v1282_v59 = vpack.c.b16 %v1176_v13, %v1175_v38  ;;  %v1179_v63 = vunpack.c.1.s8 %v6404_v9 }
 0x167   : > { %v1180_v15 = vunpack.c.1.s8 %v6407_v8  ;;  %v6456_v49 = vsel %vm459_vm8, 16843009, %v10173_v52  ;;  %v6459_v47 = vsel %vm460_vm9, 16843009, %v10173_v52  ;;  %v6462_v40 = vsel %vm461_vm2, 16843009, %v10173_v52  ;;  %vm10196_vm8 = vmmov %vm10188_vm14 }
 0x168   : > { %v1213_v38 = vunpack.c.2.s8 %v6456_v49  ;;  %vm6469_vm10 = vnez %v1280_v33  ;;  %v1215_v18 = vunpack.c.2.s8 %v6462_v40  ;;  %v1181_v55 = vunpack.c.2.s8 %v6397_v61 }
 0x169   : > { %v1806_v11 = vpop.xlane.xlu1 %1805  ;;  %v1217_v33 = vunpack.c.3.s8 %v6456_v49  ;;  %v1185_v56 = vunpack.c.3.s8 %v6397_v61  ;;  %vm455_vm9 = vnez %v423_v53  ;;  %vm457_vm2 = vnez %v425_v26 }
 0x16a   : > { %v6419_v31 = vmax.f32 %v6391_v27, %v1806_v11  ;;  %v1281_v11 = vpack.c.b16 %v1174_v39, %v1173_v14  ;;  %v1214_v39 = vunpack.c.2.s8 %v6459_v47  ;;  %v6519_v26 = vsel %vm6469_vm10, 16843009, %v10173_v52 }
 0x16b   : > { %v10356_v48 = vunpack.c.2.s8 %v6442_v45 }
 0x16c   : > { %10185 = vst [vmem:[#allocation112_spill] sm:$0xff] %v6419_v31  ;;  %3689 = vst.msk [vmem:[#allocation2 + $0x8] sm:$0xff] %vm10186_vm12, %v6419_v31  ;;  %vm462_vm12 = vnez %v430_v37  ;;  %v6483_v58 = vpack.c.b16 %v1214_v39, %v1213_v38  ;;  %v1283_v20 = vpack.c.b8 %v1282_v59, %v1281_v11  ;;  %v1285_v38 = vpack.c.b16 %v1180_v15, %v1179_v63  ;;  %v6507_v59 = vld [vmem:[#allocation2 + $0x28] sm:$0xff] }
 0x16d   : > { %v1811_v54 = vpop.xlane.xlu0 %1810  ;;  %v6465_v14 = vsel %vm462_vm12, 16843009, %v10173_v52  ;;  %v1184_v39 = vunpack.c.2.s8 %v6407_v8  ;;  %vm458_vm12 = vnez %v426_v57  ;;  %10199 = vst [vmem:[#allocation121_spill] sm:$0xff] %v6507_v59  ;;  %v1187_v11 = vunpack.c.3.s8 %v6404_v9 }
 0x16e   : > { %v6435_v19 = vmax.f32 %v6409_v17, %v1811_v54  ;;  %v1177_v54 = vunpack.c.1.s8 %v6397_v61  ;;  %v1216_v36 = vunpack.c.2.s8 %v6465_v14  ;;  %10193 = vst [vmem:[#allocation116_spill] sm:$0xff] %v6483_v58  ;;  %v1188_v61 = vunpack.c.3.s8 %v6407_v8 }
 0x16f   : > { %v1219_v63 = vunpack.c.3.s8 %v6462_v40  ;;  %v1220_v15 = vunpack.c.3.s8 %v6465_v14  ;;  %v6523_v57 = vsel %vm455_vm9, 16843009, %v10173_v52  ;;  %v6533_v35 = vsel %vm458_vm12, 16843009, %v10173_v52  ;;  %vm10205_vm9 = vmmov %vm10196_vm8 }
 0x170   : > { %10187 = vst [vmem:[#allocation113_spill] sm:$0xff] %v6435_v19  ;;  %3690 = vst.msk [vmem:[#allocation2 + $0x10] sm:$0xff] %vm10188_vm14, %v6435_v19  ;;  %v6473_v21 = vpack.c.b16 %v1178_v44, %v1177_v54  ;;  %v1182_v44 = vunpack.c.2.s8 %v6401_v29  ;;  %v1183_v54 = vunpack.c.2.s8 %v6404_v9  ;;  %v6492_v60 = vpack.c.b16 %v1216_v36, %v1215_v18 }
 0x171   : > { %vm456_vm14 = vnez %v424_v0  ;;  %v1186_v18 = vunpack.c.3.s8 %v6401_v29  ;;  %vm6538_vm10 = vnez %v1283_v20  ;;  %v1193_v51 = vunpack.c.1.s8 %v6523_v57 }
 0x172   : > { %10195 = vst [vmem:[#allocation118_spill] sm:$0xff] %v6492_v60  ;;  %v6527_v29 = vsel %vm456_vm14, 16843009, %v10173_v52  ;;  %v1287_v8 = vpack.c.b16 %v1182_v44, %v1181_v55  ;;  %v1286_v0 = vpack.c.b8 %v1285_v38, %v6473_v21  ;;  %v1291_v55 = vpack.c.b16 %v1188_v61, %v1187_v11 }
 0x173   : > { %v1189_v44 = vunpack.c.0.s8 %v6523_v57  ;;  %v1196_v24 = vunpack.c.1.s8 %v6533_v35  ;;  %v6572_v11 = vsel %vm6538_vm10, 16843009, %v10173_v52  ;;  %v1197_v38 = vunpack.c.2.s8 %v6523_v57 }
 0x174   : > { %vm6574_vm14 = vnez %v1286_v0  ;;  %v1198_v25 = vunpack.c.2.s8 %v6527_v29  ;;  %v1200_v0 = vunpack.c.2.s8 %v6533_v35  ;;  %v1209_v61 = vunpack.c.1.s8 %v6456_v49 }
 0x175   : > { %v10281_v58 = vmov 0  ;;  %v10344_v19 = vunpack.c.0.s8 %v6442_v45  ;;  %vm7086_vm3 = vcmp.ne.s32.totalorder %v10356_v48, 0 }
 0x179   : > { %v1816_v13 = vpop.xlane.xlu1 %1815 }
 0x17a   : > { %v6478_v62 = vmax.f32 %v6451_v30, %v1816_v13  ;;  %v1218_v13 = vunpack.c.3.s8 %v6459_v47  ;;  %v1211_v30 = vunpack.c.1.s8 %v6462_v40 }
 0x17c   : > { %10192 = vst [vmem:[#allocation115_spill] sm:$0xff] %v6478_v62  ;;  %3691 = vst.msk [vmem:[#allocation2 + $0x18] sm:$0xff] %vm10196_vm8, %v6478_v62  ;;  %v6501_v50 = vpack.c.b16 %v1218_v13, %v1217_v33  ;;  %v1288_v33 = vpack.c.b16 %v1184_v39, %v1183_v54  ;;  %v6530_v13 = vsel %vm457_vm2, 16843009, %v10173_v52  ;;  %v1190_v54 = vunpack.c.0.s8 %v6527_v29 }
 0x17d   : > { %v6547_v39 = vpack.c.b16 %v1220_v15, %v1219_v63  ;;  %v1191_v20 = vunpack.c.0.s8 %v6530_v13  ;;  %v1195_v15 = vunpack.c.1.s8 %v6530_v13  ;;  %vm10210_vm2 = vmmov %vm10196_vm8  ;;  %v1199_v53 = vunpack.c.2.s8 %v6530_v13 }
 0x17e   : > { %10197 = vst [vmem:[#allocation119_spill] sm:$0xff] %v6501_v50  ;;  %v1293_v42 = vpack.c.b16 %v1190_v54, %v1189_v44  ;;  %v1203_v44 = vunpack.c.3.s8 %v6530_v13  ;;  %v1204_v54 = vunpack.c.3.s8 %v6533_v35  ;;  %vm10212_vm12 = vmmov %vm10210_vm2  ;;  %v10324_v62 = vmov 0 }
 0x17f   : > { %10204 = vst [vmem:[#allocation124_spill] sm:$0xff] %v6547_v39 }
 0x182   : > { %v1821_v2 = vpop.xlane.xlu0 %1820 }
 0x183   : > { %v6504_v36 = vmax.f32 %v6486_v41, %v1821_v2  ;;  %v1290_v2 = vpack.c.b16 %v1186_v18, %v1185_v56  ;;  %v1194_v56 = vunpack.c.1.s8 %v6527_v29  ;;  %v1303_v41 = vpack.c.b16 %v1204_v54, %v1203_v44 }
 0x185   : > { %10198 = vst [vmem:[#allocation120_spill] sm:$0xff] %v6504_v36  ;;  %3692 = vst.msk [vmem:[#allocation2 + $0x20] sm:$0xff] %vm10196_vm8, %v6504_v36  ;;  %v1292_v18 = vpack.c.b8 %v1291_v55, %v1290_v2  ;;  %v1296_v23 = vpack.c.b16 %v1194_v56, %v1193_v51  ;;  %v1202_v2 = vunpack.c.3.s8 %v6527_v29  ;;  %v6599_v29 = vld [vmem:[#allocation2 + $0x40] sm:$0xff]  ;;  %v1299_v55 = vpack.c.b16 %v1198_v25, %v1197_v38 }
 0x186   : > { %10213 = vst [vmem:[#allocation128_spill] sm:$0xff] %v6599_v29  ;;  %v1300_v51 = vpack.c.b16 %v1200_v0, %v1199_v53 }
 0x187   : > { %vm6610_vm10 = vnez %v1292_v18 }
 0x188   : > { %v6642_v0 = vsel %vm6610_vm10, 16843009, %v10173_v52 }
 0x189   : > { %v1826_v9 = vpop.xlane.xlu1 %1825 }
 0x18a   : > { %v6536_v37 = vmax.f32 %v6507_v59, %v1826_v9  ;;  %v1192_v9 = vunpack.c.0.s8 %v6533_v35  ;;  %v6614_v59 = vld [vmem:[#allocation2 + $0x48] sm:$0xff] }
 0x18b   : > { %10218 = vst [vmem:[#allocation129_spill] sm:$0xff] %v6614_v59 }
 0x18c   : > { %10200 = vst [vmem:[#allocation122_spill] sm:$0xff] %v6536_v37  ;;  %3693 = vst.msk [vmem:[#allocation2 + $0x28] sm:$0xff] %vm10205_vm9, %v6536_v37  ;;  %v1294_v46 = vpack.c.b16 %v1192_v9, %v1191_v20  ;;  %v1205_v20 = vunpack.c.0.s8 %v6456_v49  ;;  %v6604_v9 = vsel %vm6574_vm14, 16843009, %v10173_v52  ;;  %v10306_v37 = vmov 0 }
 0x18d   : > { %vm10220_vm9 = vmmov %vm10210_vm2 }
 0x18e   : > { %v1295_v56 = vpack.c.b8 %v1294_v46, %v1293_v42  ;;  %v1212_v42 = vunpack.c.1.s8 %v6465_v14 }
 0x190   : > { %v1831_v21 = vpop.xlane.xlu0 %1830  ;;  %vm1341_vm14 = vnez %v1295_v56  ;;  %v1309_v54 = vpack.c.b16 %v1212_v42, %v1211_v30 }
 0x191   : > { %v6560_v63 = vmax.f32 %v6543_v32, %v1831_v21  ;;  %v1289_v21 = vpack.c.b8 %v1288_v33, %v1287_v8  ;;  %v1297_v8 = vpack.c.b16 %v1196_v24, %v1195_v15  ;;  %v1201_v33 = vunpack.c.3.s8 %v6523_v57 }
 0x192   : > { %v1207_v24 = vunpack.c.0.s8 %v6462_v40  ;;  %v1208_v57 = vunpack.c.0.s8 %v6465_v14  ;;  %v1301_v14 = vpack.c.b8 %v1300_v51, %v1299_v55  ;;  %v6650_v55 = vld [vmem:[#allocation2 + $0x50] sm:$0xff]  ;;  %v10259_v51 = vld [vmem:[#allocation11_spill] sm:$0xff]  ;;  %v10262_v40 = vmov 0 }
 0x193   : > { %10206 = vst [vmem:[#allocation125_spill] sm:$0xff] %v6560_v63  ;;  %3694 = vst.msk [vmem:[#allocation2 + $0x30] sm:$0xff] %vm10210_vm2, %v6560_v63  ;;  %vm6606_vm8 = vnez %v1289_v21  ;;  %v1298_v15 = vpack.c.b8 %v1297_v8, %v1296_v23  ;;  %v1210_v21 = vunpack.c.1.s8 %v6459_v47 }
 0x194   : > { %v1306_v27 = vpack.c.b16 %v1208_v57, %v1207_v24  ;;  %v6629_v49 = vsel %vm6606_vm8, 16843009, %v10173_v52  ;;  %10224 = vst [vmem:[#allocation132_spill] sm:$0xff] %v6650_v55  ;;  %v6659_v57 = vsel %vm1341_vm14, 16843009, %v10173_v52  ;;  %vm1343_vm8 = vnez %v1301_v14  ;;  %vm10231_vm14 = vmmov %vm10210_vm2 }
 0x195   : > { %v1308_v44 = vpack.c.b16 %v1210_v21, %v1209_v61  ;;  %v10232_v61 = vunpack.c.0.s8 %v6337_v10  ;;  %v10241_v14 = vunpack.c.2.s8 %v6337_v10  ;;  %v10247_v21 = vunpack.c.3.s8 %v6337_v10 }
 0x197   : > { %v1836_v22 = vpop.xlane.xlu1 %1835  ;;  %v1310_v42 = vpack.c.b8 %v1309_v54, %v1308_v44  ;;  %v10236_v44 = vunpack.c.1.s8 %v6337_v10  ;;  %v10237_v54 = vmov 0  ;;  %v10255_v10 = vunpack.c.1.s8 %v6340_v28 }
 0x198   : > { %v6585_v3 = vmax.f32 %v6566_v43, %v1836_v22  ;;  %v1206_v22 = vunpack.c.0.s8 %v6459_v47  ;;  %v1302_v43 = vpack.c.b16 %v1202_v2, %v1201_v33  ;;  %v6686_v33 = vsel %vm1343_vm8, 16843009, %v10173_v52 }
 0x199   : > { %vm6722_vm8 = vcmp.ne.s32.totalorder %v10241_v14, 0  ;;  %v10248_v14 = vmov 0 }
 0x19a   : > { %10211 = vst [vmem:[#allocation127_spill] sm:$0xff] %v6585_v3  ;;  %3695 = vst.msk [vmem:[#allocation2 + $0x38] sm:$0xff] %vm10212_vm12, %v6585_v3  ;;  %v1305_v17 = vpack.c.b16 %v1206_v22, %v1205_v20  ;;  %v1304_v8 = vpack.c.b8 %v1303_v41, %v1302_v43  ;;  %vm6646_vm12 = vnez %v1298_v15  ;;  %v6675_v15 = vld [vmem:[#allocation2 + $0x58] sm:$0xff]  ;;  %v10251_v41 = vunpack.c.0.s8 %v6340_v28 }
 0x19b   : > { %v6666_v35 = vsel %vm6646_vm12, 16843009, %v10173_v52  ;;  %10228 = vst [vmem:[#allocation134_spill] sm:$0xff] %v6675_v15  ;;  %vm6698_vm12 = vcmp.ne.s32.totalorder %v10236_v44, 0  ;;  %v10252_v43 = vmov 0 }
 0x19c   : > { %v1307_v2 = vpack.c.b8 %v1306_v27, %v1305_v17  ;;  %vm6668_vm10 = vnez %v1304_v8  ;;  %v10238_v54 = vsel %vm6698_vm12, 4294967295, %v10237_v54  ;;  %vm6747_vm6 = vcmp.ne.s32.totalorder %v10251_v41, 0 }
 0x19d   : > { %10239 = vst [vmem:[#allocation136_spill] sm:$0xff] %v10238_v54  ;;  %v6708_v17 = vsel %vm6668_vm10, 16843009, %v10173_v52  ;;  %vm6729_vm10 = vnez %v1310_v42  ;;  %v10253_v43 = vsel %vm6747_vm6, 4294967295, %v10252_v43  ;;  %v10261_v42 = vunpack.c.2.s8 %v6340_v28 }
 0x19e   : > { %10254 = vst [vmem:[#allocation140_spill] sm:$0xff] %v10253_v43  ;;  %v10296_v43 = vmov 0 }
 0x19f   : > { %vm6774_vm1 = vcmp.ne.s32.totalorder %v10261_v42, 0 }
 0x1a0   : > { %v1841_v32 = vpop.xlane.xlu0 %1840  ;;  %v10263_v40 = vsel %vm6774_vm1, 4294967295, %v10262_v40 }
 0x1a1   : > { %v6620_v18 = vmax.f32 %v6599_v29, %v1841_v32  ;;  %10264 = vst [vmem:[#allocation142_spill] sm:$0xff] %v10263_v40  ;;  %v10302_v40 = vmov 0 }
 0x1a2   : > { %v1846_v25 = vpop.xlane.xlu1 %1845 }
 0x1a3   : > { %10219 = vst [vmem:[#allocation130_spill] sm:$0xff] %v6620_v18  ;;  %3696 = vst.msk [vmem:[#allocation2 + $0x40] sm:$0xff] %vm10220_vm9, %v6620_v18  ;;  %v6634_v32 = vmax.f32 %v6614_v59, %v1846_v25  ;;  %vm6678_vm9 = vnez %v1307_v2  ;;  %v10233_v2 = vmov 0  ;;  %v10242_v25 = vmov 0 }
 0x1a4   : > { %v6718_v8 = vsel %vm6678_vm9, 16843009, %v10173_v52  ;;  %v10243_v25 = vsel %vm6722_vm8, 4294967295, %v10242_v25  ;;  %vm6737_vm9 = vcmp.ne.s32.totalorder %v10247_v21, 0  ;;  %v10256_v21 = vmov 0 }
 0x1a5   : > { %10221 = vst [vmem:[#allocation131_spill] sm:$0xff] %v6634_v32  ;;  %3697 = vst.msk [vmem:[#allocation2 + $0x48] sm:$0xff] %vm10210_vm2, %v6634_v32  ;;  %vm6692_vm2 = vcmp.ne.s32.totalorder %v10232_v61, 0  ;;  %v10249_v14 = vsel %vm6737_vm9, 4294967295, %v10248_v14  ;;  %v10280_v32 = vunpack.c.2.s8 %v6344_v16  ;;  %v10323_v18 = vunpack.c.3.s8 %v6377_v34 }
 0x1a6   : > { %v10234_v2 = vsel %vm6692_vm2, 4294967295, %v10233_v2  ;;  %10244 = vst [vmem:[#allocation138_spill] sm:$0xff] %v10243_v25  ;;  %10250 = vst [vmem:[#allocation139_spill] sm:$0xff] %v10249_v14  ;;  %v10291_v14 = vunpack.c.0.s8 %v6372_v1 }
 0x1a7   : > { %10235 = vst [vmem:[#allocation135_spill] sm:$0xff] %v10234_v2  ;;  %vm6974_vm5 = vcmp.ne.s32.totalorder %v10323_v18, 0 }
 0x1a8   : > { %v10325_v62 = vsel %vm6974_vm5, 4294967295, %v10324_v62 }
 0x1a9   : > { %10326 = vst [vmem:[#allocation165_spill] sm:$0xff] %v10325_v62 }
 0x1aa   : > { %v1851_v27 = vpop.xlane.xlu0 %1850 }
 0x1ab   : > { %v6673_v56 = vmax.f32 %v6650_v55, %v1851_v27  ;;  %v10266_v55 = vmov 0 }
 0x1ad   : > { %10227 = vst [vmem:[#allocation133_spill] sm:$0xff] %v6673_v56  ;;  %3698 = vst.msk [vmem:[#allocation2 + $0x50] sm:$0xff] %vm10231_vm14, %v6673_v56  ;;  %v1856_v27 = vpop.xlane.xlu1 %1855 }
 0x1ae   : > { %v6711_v61 = vmax.f32 %v6675_v15, %v1856_v27  ;;  %v10265_v15 = vunpack.c.3.s8 %v6340_v28 }
 0x1b0   : > { %10240 = vst [vmem:[#allocation137_spill] sm:$0xff] %v6711_v61  ;;  %3699 = vst.msk [vmem:[#allocation2 + $0x58] sm:$0xff] %vm10231_vm14, %v6711_v61  ;;  %vm6753_vm14 = vcmp.ne.s32.totalorder %v10255_v10, 0  ;;  %v6767_v10 = vsel %vm6729_vm10, 16843009, %v10173_v52  ;;  %vm6782_vm10 = vcmp.ne.s32.totalorder %v10265_v15, 0  ;;  %v10269_v15 = vunpack.c.0.s8 %v6344_v16 }
 0x1b1   : > { %v564_v24 = vpop.permute.xlu1 %563  ;;  %v10257_v21 = vsel %vm6753_vm14, 4294967295, %v10256_v21  ;;  %10260 = vst [vmem:[#allocation11_spill] sm:$0xff] %v6767_v10  ;;  %v10267_v55 = vsel %vm6782_vm10, 4294967295, %v10266_v55  ;;  %v10270_v61 = vmov 0  ;;  %v10357_v10 = vmov 0 }
 0x1b2   : > { %10258 = vst [vmem:[#allocation141_spill] sm:$0xff] %v10257_v21  ;;  %v729_v22 = vadd.f32 %v10259_v51, %v564_v24  ;;  %v730_v41 = vadd.f32 %v5394_v5, %v564_v24  ;;  %v559_v20 = vpop.permute.xlu0 %558  ;;  %v731_v53 = vadd.f32 %v5396_v6, %v564_v24  ;;  %v732_v27 = vadd.f32 %v5398_v7, %v564_v24 }
 0x1b3   : > { %v725_v44 = vadd.f32 %v10259_v51, %v559_v20  ;;  %v726_v13 = vadd.f32 %v5394_v5, %v559_v20  ;;  %v727_v30 = vadd.f32 %v5396_v6, %v559_v20  ;;  %10268 = vst [vmem:[#allocation143_spill] sm:$0xff] %v10267_v55  ;;  %v728_v42 = vadd.f32 %v5398_v7, %v559_v20 }
 0x1b4   : > { %v857_v38 = vmul.f32 0.01, %v729_v22  ;;  %v858_v46 = vmul.f32 0.01, %v730_v41  ;;  %v859_v23 = vmul.f32 0.01, %v731_v53 }
 0x1b5   : > { %v6786_v24 = vpop.permute.xlu1 %573  ;;  %v860_v59 = vmul.f32 0.01, %v732_v27  ;;  %v853_v29 = vmul.f32 0.01, %v725_v44  ;;  %v854_v52 = vmul.f32 0.01, %v726_v13 }
 0x1b6   : > { %v569_v47 = vpop.permute.xlu0 %568  ;;  %v985_v50 = vmax.f32 %v729_v22, %v857_v38  ;;  %v986_v39 = vmax.f32 %v730_v41, %v858_v46  ;;  %v987_v60 = vmax.f32 %v731_v53, %v859_v23  ;;  %vm6793_vm0 = vcmp.ne.s32.totalorder %v10269_v15, 0 }
 0x1b7   : > { %v988_v28 = vmax.f32 %v732_v27, %v860_v59  ;;  %v10271_v61 = vsel %vm6793_vm0, 4294967295, %v10270_v61  ;;  %v855_v23 = vmul.f32 0.01, %v727_v30  ;;  %v981_v59 = vmax.f32 %v725_v44, %v853_v29 }
 0x1b8   : > { %10272 = vst [vmem:[#allocation144_spill] sm:$0xff] %v10271_v61  ;;  %v6801_v12 = vsel %vm6692_vm2, %v985_v50, -1e+30  ;;  %v6805_v46 = vsel %vm6698_vm12, %v986_v39, -1e+30  ;;  %v10275_v38 = vunpack.c.1.s8 %v6344_v16  ;;  %v10276_v53 = vmov 0 }
 0x1b9   : > { %10273 = vst [vmem:[#allocation145_spill] sm:$0xff] %v6801_v12  ;;  %10274 = vst [vmem:[#allocation146_spill] sm:$0xff] %v6805_v46  ;;  %v6815_v22 = vadd.f32 %v10259_v51, %v6786_v24  ;;  %v733_v27 = vadd.f32 %v10259_v51, %v569_v47  ;;  %v6818_v50 = vpop.permute.xlu1 %583  ;;  %v1862_v39 = vmax.f32 %v6801_v12, %v6805_v46  ;;  %v856_v41 = vmul.f32 0.01, %v728_v42 }
 0x1ba   : > { %vm6809_vm7 = vcmp.ne.s32.totalorder %v10275_v38, 0  ;;  %v734_v29 = vadd.f32 %v5394_v5, %v569_v47  ;;  %v6823_v44 = vpop.permute.xlu0 %578  ;;  %v6827_v15 = vsel %vm6722_vm8, %v987_v60, -1e+30  ;;  %v982_v38 = vmax.f32 %v726_v13, %v854_v52 }
 0x1bb   : > { %v10277_v53 = vsel %vm6809_vm7, 4294967295, %v10276_v53  ;;  %10279 = vst [vmem:[#allocation148_spill] sm:$0xff] %v6827_v15  ;;  %v983_v20 = vmax.f32 %v727_v30, %v855_v23  ;;  %vm6831_vm2 = vcmp.ne.s32.totalorder %v10280_v32, 0  ;;  %v6837_v2 = vadd.f32 %v5394_v5, %v6786_v24 }
 0x1bc   : > { %10278 = vst [vmem:[#allocation147_spill] sm:$0xff] %v10277_v53  ;;  %v10282_v58 = vsel %vm6831_vm2, 4294967295, %v10281_v58  ;;  %v6841_v54 = vsel %vm6737_vm9, %v988_v28, -1e+30  ;;  %v1863_v25 = vmax.f32 %v1862_v39, %v6827_v15  ;;  %v984_v60 = vmax.f32 %v728_v42, %v856_v41 }
 0x1bd   : > { %10283 = vst [vmem:[#allocation149_spill] sm:$0xff] %v10282_v58  ;;  %10284 = vst [vmem:[#allocation150_spill] sm:$0xff] %v6841_v54  ;;  %v6846_v52 = vadd.f32 %v10259_v51, %v6818_v50  ;;  %v6850_v32 = vsel %vm6747_vm6, %v981_v59, -1e+30  ;;  %v6854_v13 = vsel %vm6753_vm14, %v982_v38, -1e+30  ;;  %v735_v30 = vadd.f32 %v5396_v6, %v569_v47  ;;  %v6867_v39 = vpop.permute.xlu1 %593 }
 0x1be   : > { %10285 = vst [vmem:[#allocation151_spill] sm:$0xff] %v6850_v32  ;;  %10286 = vst [vmem:[#allocation152_spill] sm:$0xff] %v6854_v13  ;;  %v10287_v28 = vunpack.c.3.s8 %v6344_v16  ;;  %v10288_v23 = vmov 0  ;;  %v6865_v42 = vadd.f32 %v5394_v5, %v6818_v50  ;;  %v1864_v59 = vmax.f32 %v1863_v25, %v6841_v54  ;;  %v6889_v21 = vpop.permute.xlu0 %588 }
 0x1bf   : > { %v1857_v41 = vmax.f32 %v6850_v32, %v6854_v13  ;;  %v736_v38 = vadd.f32 %v5398_v7, %v569_v47  ;;  %vm6875_vm9 = vcmp.ne.s32.totalorder %v10291_v14, 0  ;;  %v10292_v16 = vmov 0 }
 0x1c0   : > { %vm6859_vm8 = vcmp.ne.s32.totalorder %v10287_v28, 0  ;;  %v10293_v16 = vsel %vm6875_vm9, 4294967295, %v10292_v16  ;;  %v10295_v28 = vunpack.c.1.s8 %v6372_v1  ;;  %v6887_v25 = vadd.f32 %v10259_v51, %v6823_v44  ;;  %1865 = vmax.xlane.f32.xlu1 %v1864_v59 }
 0x1c1   : > { %v10289_v23 = vsel %vm6859_vm8, 4294967295, %v10288_v23  ;;  %10294 = vst [vmem:[#allocation154_spill] sm:$0xff] %v10293_v16  ;;  %v6893_v47 = vsel %vm6774_vm1, %v983_v20, -1e+30  ;;  %v861_v14 = vmul.f32 0.01, %v733_v27  ;;  %v6897_v15 = vadd.f32 %v5394_v5, %v6823_v44  ;;  %v6913_v55 = vpop.permute.xlu1 %603 }
 0x1c2   : > { %10290 = vst [vmem:[#allocation153_spill] sm:$0xff] %v10289_v23  ;;  %vm6881_vm6 = vcmp.ne.s32.totalorder %v10295_v28, 0  ;;  %10299 = vst [vmem:[#allocation156_spill] sm:$0xff] %v6893_v47  ;;  %v862_v54 = vmul.f32 0.01, %v734_v29  ;;  %v1858_v46 = vmax.f32 %v1857_v41, %v6893_v47  ;;  %v10301_v13 = vunpack.c.2.s8 %v6372_v1 }
 0x1c3   : > { %v10297_v43 = vsel %vm6881_vm6, 4294967295, %v10296_v43  ;;  %v6901_v28 = vsel %vm6782_vm10, %v984_v60, -1e+30  ;;  %v863_v12 = vmul.f32 0.01, %v735_v30  ;;  %v989_v32 = vmax.f32 %v733_v27, %v861_v14 }
 0x1c4   : > { %10298 = vst [vmem:[#allocation155_spill] sm:$0xff] %v10297_v43  ;;  %10300 = vst [vmem:[#allocation157_spill] sm:$0xff] %v6901_v28  ;;  %vm6906_vm12 = vcmp.ne.s32.totalorder %v10301_v13, 0  ;;  %v864_v20 = vmul.f32 0.01, %v736_v38  ;;  %v990_v3 = vmax.f32 %v734_v29, %v862_v54  ;;  %v739_v56 = vadd.f32 %v5396_v6, %v6786_v24 }
 0x1c5   : > { %v10303_v40 = vsel %vm6906_vm12, 4294967295, %v10302_v40  ;;  %v1859_v59 = vmax.f32 %v1858_v46, %v6901_v28  ;;  %v991_v60 = vmax.f32 %v735_v30, %v863_v12  ;;  %v740_v41 = vadd.f32 %v5398_v7, %v6786_v24  ;;  %v6942_v46 = vpop.permute.xlu0 %598  ;;  %v6995_v31 = vpop.permute.xlu1 %613 }
 0x1c6   : > { %10304 = vst [vmem:[#allocation158_spill] sm:$0xff] %v10303_v40  ;;  %v865_v47 = vmul.f32 0.01, %v6815_v22  ;;  %v10305_v13 = vunpack.c.3.s8 %v6372_v1  ;;  %v10309_v54 = vunpack.c.0.s8 %v6377_v34  ;;  %v10310_v27 = vmov 0 }
 0x1c7   : > { %v6932_v12 = vadd.f32 %v10259_v51, %v6867_v39  ;;  %v6936_v24 = vadd.f32 %v5394_v5, %v6867_v39  ;;  %v6940_v1 = vadd.f32 %v10259_v51, %v6889_v21  ;;  %v6946_v29 = vsel %vm6793_vm0, %v989_v32, -1e+30  ;;  %1860 = vmax.xlane.f32.xlu0 %v1859_v59 }
 0x1c8   : > { %vm6920_vm1 = vcmp.ne.s32.totalorder %v10305_v13, 0  ;;  %vm6926_vm10 = vcmp.ne.s32.totalorder %v10309_v54, 0  ;;  %10313 = vst [vmem:[#allocation161_spill] sm:$0xff] %v6946_v29  ;;  %v10314_v30 = vunpack.c.1.s8 %v6377_v34  ;;  %v10315_v14 = vmov 0 }
 0x1c9   : > { %v10307_v37 = vsel %vm6920_vm1, 4294967295, %v10306_v37  ;;  %v10311_v27 = vsel %vm6926_vm10, 4294967295, %v10310_v27  ;;  %v6956_v13 = vadd.f32 %v5394_v5, %v6889_v21  ;;  %v6960_v54 = vadd.f32 %v10259_v51, %v6913_v55 }
 0x1ca   : > { %10308 = vst [vmem:[#allocation159_spill] sm:$0xff] %v10307_v37  ;;  %10312 = vst [vmem:[#allocation160_spill] sm:$0xff] %v10311_v27  ;;  %vm6950_vm14 = vcmp.ne.s32.totalorder %v10314_v30, 0  ;;  %v992_v28 = vmax.f32 %v736_v38, %v864_v20  ;;  %v6964_v32 = vsel %vm6809_vm7, %v990_v3, -1e+30  ;;  %v10319_v61 = vunpack.c.2.s8 %v6377_v34 }
 0x1cb   : > { %v10316_v14 = vsel %vm6950_vm14, 4294967295, %v10315_v14  ;;  %10318 = vst [vmem:[#allocation163_spill] sm:$0xff] %v6964_v32  ;;  %v10320_v30 = vmov 0  ;;  %v6980_v59 = vadd.f32 %v5394_v5, %v6913_v55  ;;  %v1867_v3 = vmax.f32 %v6946_v29, %v6964_v32 }
 0x1cc   : > { %10317 = vst [vmem:[#allocation162_spill] sm:$0xff] %v10316_v14  ;;  %vm6968_vm0 = vcmp.ne.s32.totalorder %v10319_v61, 0  ;;  %v866_v38 = vmul.f32 0.01, %v6837_v2  ;;  %v867_v20 = vmul.f32 0.01, %v739_v56  ;;  %v6987_v61 = vadd.f32 %v10259_v51, %v6942_v46 }
 0x1cd   : > { %v10321_v30 = vsel %vm6968_vm0, 4294967295, %v10320_v30  ;;  %v6991_v34 = vsel %vm6831_vm2, %v991_v60, -1e+30  ;;  %v868_v18 = vmul.f32 0.01, %v740_v41  ;;  %v993_v53 = vmax.f32 %v6815_v22, %v865_v47 }
 0x1ce   : > { %10322 = vst [vmem:[#allocation164_spill] sm:$0xff] %v10321_v30  ;;  %10327 = vst [vmem:[#allocation166_spill] sm:$0xff] %v6991_v34  ;;  %v1868_v63 = vmax.f32 %v1867_v3, %v6991_v34  ;;  %v994_v32 = vmax.f32 %v6837_v2, %v866_v38  ;;  %v743_v29 = vadd.f32 %v5396_v6, %v6823_v44  ;;  %v7008_v60 = vsel %vm6859_vm8, %v992_v28, -1e+30  ;;  %v7017_v34 = vpop.permute.xlu0 %608 }
 0x1cf   : > { %v744_v36 = vadd.f32 %v5398_v7, %v6823_v44  ;;  %v7004_v58 = vadd.f32 %v5394_v5, %v6942_v46  ;;  %10328 = vst [vmem:[#allocation167_spill] sm:$0xff] %v7008_v60  ;;  %v995_v22 = vmax.f32 %v739_v56, %v867_v20  ;;  %v996_v47 = vmax.f32 %v740_v41, %v868_v18 }
 0x1d0   : > { %v10329_v3 = vunpack.c.0.s8 %v6412_v4  ;;  %v10330_v2 = vmov 0  ;;  %v1869_v38 = vmax.f32 %v1868_v63, %v7008_v60  ;;  %v7021_v44 = vsel %vm6875_vm9, %v993_v53, -1e+30 }
 0x1d1   : > { %10333 = vst [vmem:[#allocation169_spill] sm:$0xff] %v7021_v44  ;;  %v7025_v28 = vsel %vm6881_vm6, %v994_v32, -1e+30  ;;  %v869_v56 = vmul.f32 0.01, %v6887_v25  ;;  %v10335_v41 = vunpack.c.1.s8 %v6412_v4  ;;  %v10336_v20 = vmov 0 }
 0x1d2   : > { %vm7012_vm2 = vcmp.ne.s32.totalorder %v10329_v3, 0  ;;  %10334 = vst [vmem:[#allocation170_spill] sm:$0xff] %v7025_v28  ;;  %v7036_v63 = vadd.f32 %v10259_v51, %v6995_v31  ;;  %v7040_v53 = vadd.f32 %v5394_v5, %v6995_v31  ;;  %v1872_v32 = vmax.f32 %v7021_v44, %v7025_v28  ;;  %1870 = vmax.xlane.f32.xlu0 %v1869_v38 }
 0x1d3   : > { %v10331_v2 = vsel %vm7012_vm2, 4294967295, %v10330_v2  ;;  %vm7030_vm8 = vcmp.ne.s32.totalorder %v10335_v41, 0  ;;  %v870_v18 = vmul.f32 0.01, %v6897_v15  ;;  %v7047_v3 = vsel %vm6906_vm12, %v995_v22, -1e+30 }
 0x1d4   : > { %10332 = vst [vmem:[#allocation168_spill] sm:$0xff] %v10331_v2  ;;  %v10337_v20 = vsel %vm7030_vm8, 4294967295, %v10336_v20  ;;  %10339 = vst [vmem:[#allocation172_spill] sm:$0xff] %v7047_v3  ;;  %v871_v41 = vmul.f32 0.01, %v743_v29  ;;  %v997_v16 = vmax.f32 %v6887_v25, %v869_v56  ;;  %v10340_v43 = vunpack.c.2.s8 %v6412_v4 }
 0x1d5   : > { %10338 = vst [vmem:[#allocation171_spill] sm:$0xff] %v10337_v20  ;;  %v872_v23 = vmul.f32 0.01, %v744_v36  ;;  %v10341_v60 = vmov 0  ;;  %vm7058_vm6 = vcmp.ne.s32.totalorder %v10344_v19, 0  ;;  %v10345_v28 = vmov 0 }
 0x1d6   : > { %vm7052_vm9 = vcmp.ne.s32.totalorder %v10340_v43, 0  ;;  %v10346_v28 = vsel %vm7058_vm6, 4294967295, %v10345_v28  ;;  %v7064_v22 = vadd.f32 %v10259_v51, %v7017_v34  ;;  %v7068_v38 = vadd.f32 %v5394_v5, %v7017_v34 }
 0x1d7   : > { %v10342_v60 = vsel %vm7052_vm9, 4294967295, %v10341_v60  ;;  %10347 = vst [vmem:[#allocation174_spill] sm:$0xff] %v10346_v28  ;;  %v1873_v25 = vmax.f32 %v1872_v32, %v7047_v3  ;;  %v998_v43 = vmax.f32 %v6897_v15, %v870_v18  ;;  %v10348_v56 = vunpack.c.3.s8 %v6412_v4 }
 0x1d8   : > { %10343 = vst [vmem:[#allocation173_spill] sm:$0xff] %v10342_v60  ;;  %v10349_v40 = vmov 0  ;;  %v10352_v19 = vunpack.c.1.s8 %v6442_v45  ;;  %v10353_v44 = vmov 0  ;;  %v10358_v10 = vsel %vm7086_vm3, 4294967295, %v10357_v10 }
 0x1d9   : > { %vm7074_vm12 = vcmp.ne.s32.totalorder %v10348_v56, 0  ;;  %10359 = vst [vmem:[#allocation177_spill] sm:$0xff] %v10358_v10  ;;  %v7092_v15 = vsel %vm6920_vm1, %v996_v47, -1e+30  ;;  %v999_v4 = vmax.f32 %v743_v29, %v871_v41  ;;  %v1000_v32 = vmax.f32 %v744_v36, %v872_v23 }
 0x1da   : > { %v10350_v40 = vsel %vm7074_vm12, 4294967295, %v10349_v40  ;;  %vm7080_vm7 = vcmp.ne.s32.totalorder %v10352_v19, 0  ;;  %10360 = vst [vmem:[#allocation178_spill] sm:$0xff] %v7092_v15  ;;  %v7096_v18 = vsel %vm6926_vm10, %v997_v16, -1e+30  ;;  %v10362_v56 = vunpack.c.3.s8 %v6442_v45 }
 0x1db   : > { %10351 = vst [vmem:[#allocation175_spill] sm:$0xff] %v10350_v40  ;;  %v10354_v44 = vsel %vm7080_vm7, 4294967295, %v10353_v44  ;;  %10361 = vst [vmem:[#allocation179_spill] sm:$0xff] %v7096_v18  ;;  %v10363_v19 = vmov 0  ;;  %v1874_v48 = vmax.f32 %v1873_v25, %v7092_v15  ;;  %v7107_v3 = vsel %vm6950_vm14, %v998_v43, -1e+30 }
 0x1dc   : > { %10355 = vst [vmem:[#allocation176_spill] sm:$0xff] %v10354_v44  ;;  %vm7100_vm4 = vcmp.ne.s32.totalorder %v10362_v56, 0  ;;  %10366 = vst [vmem:[#allocation181_spill] sm:$0xff] %v7107_v3  ;;  %v747_v29 = vadd.f32 %v5396_v6, %v6818_v50  ;;  %v748_v36 = vadd.f32 %v5398_v7, %v6818_v50  ;;  %v7115_v23 = vsel %vm6968_vm0, %v999_v4, -1e+30  ;;  %v7128_v56 = vpop.permute.xlu1 %623 }
 0x1dd   : > { %v10364_v19 = vsel %vm7100_vm4, 4294967295, %v10363_v19  ;;  %10367 = vst [vmem:[#allocation182_spill] sm:$0xff] %v7115_v23  ;;  %v7119_v45 = vsel %vm6974_vm5, %v1000_v32, -1e+30  ;;  %v1877_v16 = vmax.f32 %v7096_v18, %v7107_v3  ;;  %v873_v47 = vmul.f32 0.01, %v6846_v52  ;;  %1875 = vmax.xlane.f32.xlu0 %v1874_v48 }
 0x1de   : > { %10365 = vst [vmem:[#allocation180_spill] sm:$0xff] %v10364_v19  ;;  %10368 = vst [vmem:[#allocation183_spill] sm:$0xff] %v7119_v45  ;;  %v874_v41 = vmul.f32 0.01, %v6865_v42  ;;  %v875_v25 = vmul.f32 0.01, %v747_v29  ;;  %v751_v50 = vadd.f32 %v5396_v6, %v6889_v21  ;;  %v752_v30 = vadd.f32 %v5398_v7, %v6889_v21 }
 0x1df   : > { %v876_v43 = vmul.f32 0.01, %v748_v36  ;;  %v1878_v4 = vmax.f32 %v1877_v16, %v7115_v23  ;;  %v1001_v32 = vmax.f32 %v6846_v52, %v873_v47  ;;  %v877_v27 = vmul.f32 0.01, %v6940_v1  ;;  %v7149_v47 = vpop.permute.xlu0 %618  ;;  %v10684_v23 = vld [vmem:[#allocation36_spill] sm:$0xff]  ;;  %v10686_v18 = vld [vmem:[#allocation39_spill] sm:$0xff] }
 0x1e0   : > { %v1002_v48 = vmax.f32 %v6865_v42, %v874_v41  ;;  %v1003_v62 = vmax.f32 %v747_v29, %v875_v25  ;;  %v878_v37 = vmul.f32 0.01, %v6956_v13  ;;  %v10369_v3 = vunpack.c.0.s8 %v6519_v26  ;;  %v7254_v60 = vpop.permute.xlu1 %633 }
 0x1e1   : > { %v1004_v14 = vmax.f32 %v748_v36, %v876_v43  ;;  %v10370_v15 = vmov 0  ;;  %v10373_v16 = vunpack.c.1.s8 %v6519_v26  ;;  %v10374_v52 = vmov 0 }
 0x1e2   : > { %vm7138_vm0 = vcmp.ne.s32.totalorder %v10369_v3, 0  ;;  %v1879_v21 = vmax.f32 %v1878_v4, %v7119_v45  ;;  %v7153_v42 = vsel %vm7012_vm2, %v1001_v32, -1e+30  ;;  %v879_v29 = vmul.f32 0.01, %v751_v50 }
 0x1e3   : > { %v10371_v15 = vsel %vm7138_vm0, 4294967295, %v10370_v15  ;;  %vm7144_vm10 = vcmp.ne.s32.totalorder %v10373_v16, 0  ;;  %10377 = vst [vmem:[#allocation186_spill] sm:$0xff] %v7153_v42  ;;  %v880_v36 = vmul.f32 0.01, %v752_v30  ;;  %v7157_v3 = vadd.f32 %v10259_v51, %v7128_v56 }
 0x1e4   : > { %10372 = vst [vmem:[#allocation184_spill] sm:$0xff] %v10371_v15  ;;  %v10375_v52 = vsel %vm7144_vm10, 4294967295, %v10374_v52  ;;  %v7161_v41 = vadd.f32 %v5394_v5, %v7128_v56  ;;  %v7165_v25 = vsel %vm7030_vm8, %v1002_v48, -1e+30  ;;  %v1005_v43 = vmax.f32 %v6940_v1, %v877_v27  ;;  %1880 = vmax.xlane.f32.xlu1 %v1879_v21 }
 0x1e5   : > { %10376 = vst [vmem:[#allocation185_spill] sm:$0xff] %v10375_v52  ;;  %10378 = vst [vmem:[#allocation187_spill] sm:$0xff] %v7165_v25  ;;  %v10379_v4 = vunpack.c.2.s8 %v6519_v26  ;;  %v10380_v32 = vmov 0  ;;  %v10383_v16 = vunpack.c.0.s8 %v6572_v11  ;;  %v10384_v2 = vmov 0 }
 0x1e6   : > { %v1882_v20 = vmax.f32 %v7153_v42, %v7165_v25  ;;  %v1006_v48 = vmax.f32 %v6956_v13, %v878_v37  ;;  %v1007_v45 = vmax.f32 %v751_v50, %v879_v29  ;;  %v1008_v27 = vmax.f32 %v752_v30, %v880_v36 }
 0x1e7   : > { %vm7170_vm2 = vcmp.ne.s32.totalorder %v10379_v4, 0  ;;  %vm7176_vm5 = vcmp.ne.s32.totalorder %v10383_v16, 0  ;;  %v10387_v1 = vunpack.c.1.s8 %v6572_v11  ;;  %v10388_v4 = vmov 0 }
 0x1e8   : > { %v10381_v32 = vsel %vm7170_vm2, 4294967295, %v10380_v32  ;;  %v10385_v2 = vsel %vm7176_vm5, 4294967295, %v10384_v2  ;;  %v7191_v16 = vadd.f32 %v10259_v51, %v7149_v47  ;;  %v7195_v21 = vadd.f32 %v5394_v5, %v7149_v47 }
 0x1e9   : > { %10382 = vst [vmem:[#allocation188_spill] sm:$0xff] %v10381_v32  ;;  %10386 = vst [vmem:[#allocation189_spill] sm:$0xff] %v10385_v2  ;;  %vm7185_vm8 = vcmp.ne.s32.totalorder %v10387_v1, 0  ;;  %v7199_v42 = vsel %vm7052_vm9, %v1003_v62, -1e+30  ;;  %v10393_v13 = vunpack.c.3.s8 %v6519_v26  ;;  %v10394_v30 = vmov 0 }
 0x1ea   : > { %v10389_v4 = vsel %vm7185_vm8, 4294967295, %v10388_v4  ;;  %10391 = vst [vmem:[#allocation191_spill] sm:$0xff] %v7199_v42  ;;  %v7203_v37 = vsel %vm7058_vm6, %v1005_v43, -1e+30  ;;  %v10397_v50 = vunpack.c.2.s8 %v6572_v11  ;;  %v10398_v29 = vmov 0 }
 0x1eb   : > { %10390 = vst [vmem:[#allocation190_spill] sm:$0xff] %v10389_v4  ;;  %10392 = vst [vmem:[#allocation192_spill] sm:$0xff] %v7203_v37  ;;  %vm7207_vm14 = vcmp.ne.s32.totalorder %v10393_v13, 0  ;;  %v10401_v36 = vunpack.c.3.s8 %v6572_v11  ;;  %v10402_v62 = vmov 0  ;;  %v7225_v43 = vsel %vm7074_vm12, %v1004_v14, -1e+30 }
 0x1ec   : > { %v10395_v30 = vsel %vm7207_vm14, 4294967295, %v10394_v30  ;;  %vm7213_vm1 = vcmp.ne.s32.totalorder %v10397_v50, 0  ;;  %10405 = vst [vmem:[#allocation196_spill] sm:$0xff] %v7225_v43  ;;  %v1883_v26 = vmax.f32 %v1882_v20, %v7199_v42  ;;  %v7230_v1 = vsel %vm7080_vm7, %v1006_v48, -1e+30 }
 0x1ed   : > { %10396 = vst [vmem:[#allocation193_spill] sm:$0xff] %v10395_v30  ;;  %v10399_v29 = vsel %vm7213_vm1, 4294967295, %v10398_v29  ;;  %vm7219_vm9 = vcmp.ne.s32.totalorder %v10401_v36, 0  ;;  %10406 = vst [vmem:[#allocation197_spill] sm:$0xff] %v7230_v1  ;;  %v7234_v13 = vsel %vm7086_vm3, %v1007_v45, -1e+30  ;;  %v1887_v50 = vmax.f32 %v7203_v37, %v7230_v1 }
 0x1ee   : > { %10400 = vst [vmem:[#allocation194_spill] sm:$0xff] %v10399_v29  ;;  %v10403_v62 = vsel %vm7219_vm9, 4294967295, %v10402_v62  ;;  %10407 = vst [vmem:[#allocation198_spill] sm:$0xff] %v7234_v13  ;;  %v7238_v11 = vsel %vm7100_vm4, %v1008_v27, -1e+30  ;;  %v755_v14 = vadd.f32 %v5396_v6, %v6867_v39  ;;  %v756_v20 = vadd.f32 %v5398_v7, %v6867_v39 }
 0x1ef   : > { %10404 = vst [vmem:[#allocation195_spill] sm:$0xff] %v10403_v62  ;;  %10408 = vst [vmem:[#allocation199_spill] sm:$0xff] %v7238_v11  ;;  %v1884_v48 = vmax.f32 %v1883_v26, %v7225_v43  ;;  %v881_v36 = vmul.f32 0.01, %v6932_v12  ;;  %v882_v45 = vmul.f32 0.01, %v6936_v24  ;;  %v759_v10 = vadd.f32 %v5396_v6, %v6942_v46 }
 0x1f0   : > { %v1888_v27 = vmax.f32 %v1887_v50, %v7234_v13  ;;  %v883_v19 = vmul.f32 0.01, %v755_v14  ;;  %v884_v28 = vmul.f32 0.01, %v756_v20  ;;  %v760_v44 = vadd.f32 %v5398_v7, %v6942_v46 }
 0x1f1   : > { %1885 = vmax.xlane.f32.xlu0 %v1884_v48  ;;  %v1009_v39 = vmax.f32 %v6932_v12, %v881_v36  ;;  %v1010_v26 = vmax.f32 %v6936_v24, %v882_v45  ;;  %v885_v40 = vmul.f32 0.01, %v6987_v61  ;;  %v886_v1 = vmul.f32 0.01, %v7004_v58  ;;  %v7273_v24 = vpop.permute.xlu0 %628 }
 0x1f2   : > { %v10409_v42 = vunpack.c.0.s8 %v6604_v9  ;;  %v10410_v50 = vmov 0  ;;  %v1889_v13 = vmax.f32 %v1888_v27, %v7238_v11  ;;  %v1011_v46 = vmax.f32 %v755_v14, %v883_v19  ;;  %v10677_v11 = vld [vmem:[#allocation126_spill] sm:$0xff] }
 0x1f3   : > { %v1012_v48 = vmax.f32 %v756_v20, %v884_v28  ;;  %v887_v37 = vmul.f32 0.01, %v759_v10  ;;  %v10413_v43 = vunpack.c.1.s8 %v6604_v9  ;;  %v10414_v12 = vmov 0 }
 0x1f4   : > { %vm7262_vm3 = vcmp.ne.s32.totalorder %v10409_v42, 0  ;;  %v7277_v36 = vsel %vm7138_vm0, %v1009_v39, -1e+30  ;;  %v7281_v42 = vsel %vm7144_vm10, %v1010_v26, -1e+30  ;;  %v1013_v28 = vmax.f32 %v6987_v61, %v885_v40  ;;  %1890 = vmax.xlane.f32.xlu1 %v1889_v13 }
 0x1f5   : > { %v10411_v50 = vsel %vm7262_vm3, 4294967295, %v10410_v50  ;;  %vm7269_vm4 = vcmp.ne.s32.totalorder %v10413_v43, 0  ;;  %10417 = vst [vmem:[#allocation202_spill] sm:$0xff] %v7277_v36  ;;  %10418 = vst [vmem:[#allocation203_spill] sm:$0xff] %v7281_v42  ;;  %v888_v45 = vmul.f32 0.01, %v760_v44  ;;  %v7286_v19 = vadd.f32 %v10259_v51, %v7254_v60 }
 0x1f6   : > { %10412 = vst [vmem:[#allocation200_spill] sm:$0xff] %v10411_v50  ;;  %v10415_v12 = vsel %vm7269_vm4, 4294967295, %v10414_v12  ;;  %v7290_v43 = vadd.f32 %v5394_v5, %v7254_v60  ;;  %v1892_v14 = vmax.f32 %v7277_v36, %v7281_v42  ;;  %v1014_v20 = vmax.f32 %v7004_v58, %v886_v1 }
 0x1f7   : > { %10416 = vst [vmem:[#allocation201_spill] sm:$0xff] %v10415_v12  ;;  %v10419_v27 = vunpack.c.2.s8 %v6604_v9  ;;  %v10420_v39 = vmov 0  ;;  %v10423_v40 = vunpack.c.0.s8 %v6629_v49  ;;  %v10424_v61 = vmov 0 }
 0x1f8   : > { %v10427_v13 = vunpack.c.1.s8 %v6629_v49  ;;  %v10428_v26 = vmov 0  ;;  %v7315_v58 = vsel %vm7170_vm2, %v1011_v46, -1e+30  ;;  %v1015_v1 = vmax.f32 %v759_v10, %v887_v37 }
 0x1f9   : > { %vm7297_vm0 = vcmp.ne.s32.totalorder %v10419_v27, 0  ;;  %vm7303_vm6 = vcmp.ne.s32.totalorder %v10423_v40, 0  ;;  %10431 = vst [vmem:[#allocation207_spill] sm:$0xff] %v7315_v58  ;;  %v1016_v27 = vmax.f32 %v760_v44, %v888_v45  ;;  %v7319_v15 = vsel %vm7176_vm5, %v1013_v28, -1e+30 }
 0x1fa   : > { %v10421_v39 = vsel %vm7297_vm0, 4294967295, %v10420_v39  ;;  %v10425_v61 = vsel %vm7303_vm6, 4294967295, %v10424_v61  ;;  %vm7309_vm10 = vcmp.ne.s32.totalorder %v10427_v13, 0  ;;  %10432 = vst [vmem:[#allocation208_spill] sm:$0xff] %v7319_v15  ;;  %v10433_v40 = vunpack.c.3.s8 %v6604_v9 }
 0x1fb   : > { %10422 = vst [vmem:[#allocation204_spill] sm:$0xff] %v10421_v39  ;;  %10426 = vst [vmem:[#allocation205_spill] sm:$0xff] %v10425_v61  ;;  %v10429_v26 = vsel %vm7309_vm10, 4294967295, %v10428_v26  ;;  %v10434_v52 = vmov 0  ;;  %v7329_v13 = vadd.f32 %v10259_v51, %v7273_v24  ;;  %v7333_v46 = vadd.f32 %v5394_v5, %v7273_v24 }
 0x1fc   : > { %10430 = vst [vmem:[#allocation206_spill] sm:$0xff] %v10429_v26  ;;  %vm7323_vm7 = vcmp.ne.s32.totalorder %v10433_v40, 0  ;;  %v1893_v10 = vmax.f32 %v1892_v14, %v7315_v58  ;;  %v7338_v44 = vsel %vm7185_vm8, %v1014_v20, -1e+30  ;;  %v10438_v9 = vunpack.c.2.s8 %v6629_v49 }
 0x1fd   : > { %v10435_v52 = vsel %vm7323_vm7, 4294967295, %v10434_v52  ;;  %10437 = vst [vmem:[#allocation210_spill] sm:$0xff] %v7338_v44  ;;  %v10439_v37 = vmov 0  ;;  %v10442_v45 = vunpack.c.3.s8 %v6629_v49  ;;  %v10443_v28 = vmov 0 }
 0x1fe   : > { %10436 = vst [vmem:[#allocation209_spill] sm:$0xff] %v10435_v52  ;;  %vm7342_vm5 = vcmp.ne.s32.totalorder %v10438_v9, 0  ;;  %v7354_v40 = vsel %vm7207_vm14, %v1012_v48, -1e+30  ;;  %v7358_v14 = vsel %vm7213_vm1, %v1015_v1, -1e+30  ;;  %v1897_v9 = vmax.f32 %v7319_v15, %v7338_v44  ;;  %v7381_v44 = vpop.permute.xlu1 %643 }
 0x1ff   : > { %v10440_v37 = vsel %vm7342_vm5, 4294967295, %v10439_v37  ;;  %vm7348_vm2 = vcmp.ne.s32.totalorder %v10442_v45, 0  ;;  %10446 = vst [vmem:[#allocation213_spill] sm:$0xff] %v7354_v40  ;;  %10447 = vst [vmem:[#allocation214_spill] sm:$0xff] %v7358_v14  ;;  %v7362_v20 = vsel %vm7219_vm9, %v1016_v27, -1e+30  ;;  %v1894_v49 = vmax.f32 %v1893_v10, %v7354_v40 }
 0x200   : > { %10441 = vst [vmem:[#allocation211_spill] sm:$0xff] %v10440_v37  ;;  %v10444_v28 = vsel %vm7348_vm2, 4294967295, %v10443_v28  ;;  %10448 = vst [vmem:[#allocation215_spill] sm:$0xff] %v7362_v20  ;;  %v763_v45 = vadd.f32 %v5396_v6, %v6913_v55  ;;  %v764_v48 = vadd.f32 %v5398_v7, %v6913_v55  ;;  %v889_v2 = vmul.f32 0.01, %v6960_v54 }
 0x201   : > { %10445 = vst [vmem:[#allocation212_spill] sm:$0xff] %v10444_v28  ;;  %v1898_v1 = vmax.f32 %v1897_v9, %v7358_v14  ;;  %v890_v29 = vmul.f32 0.01, %v6980_v59  ;;  %v767_v27 = vadd.f32 %v5396_v6, %v7017_v34  ;;  %v768_v62 = vadd.f32 %v5398_v7, %v7017_v34  ;;  %1895 = vmax.xlane.f32.xlu0 %v1894_v49 }
 0x202   : > { %v891_v10 = vmul.f32 0.01, %v763_v45  ;;  %v892_v4 = vmul.f32 0.01, %v764_v48  ;;  %v1017_v32 = vmax.f32 %v6960_v54, %v889_v2  ;;  %v893_v30 = vmul.f32 0.01, %v7064_v22  ;;  %v7397_v2 = vpop.permute.xlu0 %638 }
 0x203   : > { %v1899_v55 = vmax.f32 %v1898_v1, %v7362_v20  ;;  %v1018_v9 = vmax.f32 %v6980_v59, %v890_v29  ;;  %v894_v14 = vmul.f32 0.01, %v7068_v38  ;;  %v895_v58 = vmul.f32 0.01, %v767_v27 }
 0x204   : > { %v10449_v15 = vunpack.c.0.s8 %v6642_v0  ;;  %v10450_v34 = vmov 0  ;;  %v10453_v49 = vunpack.c.1.s8 %v6642_v0  ;;  %v10454_v54 = vmov 0 }
 0x205   : > { %v1019_v1 = vmax.f32 %v763_v45, %v891_v10  ;;  %v1020_v20 = vmax.f32 %v764_v48, %v892_v4  ;;  %v7401_v59 = vsel %vm7262_vm3, %v1017_v32, -1e+30  ;;  %v896_v29 = vmul.f32 0.01, %v768_v62  ;;  %1900 = vmax.xlane.f32.xlu1 %v1899_v55 }
 0x206   : > { %vm7387_vm1 = vcmp.ne.s32.totalorder %v10449_v15, 0  ;;  %vm7393_vm9 = vcmp.ne.s32.totalorder %v10453_v49, 0  ;;  %10457 = vst [vmem:[#allocation218_spill] sm:$0xff] %v7401_v59  ;;  %v10458_v15 = vunpack.c.2.s8 %v6642_v0  ;;  %v10459_v40 = vmov 0 }
 0x207   : > { %v10451_v34 = vsel %vm7387_vm1, 4294967295, %v10450_v34  ;;  %v10455_v54 = vsel %vm7393_vm9, 4294967295, %v10454_v54  ;;  %v10462_v49 = vunpack.c.3.s8 %v6642_v0  ;;  %v10463_v36 = vmov 0 }
 0x208   : > { %10452 = vst [vmem:[#allocation216_spill] sm:$0xff] %v10451_v34  ;;  %10456 = vst [vmem:[#allocation217_spill] sm:$0xff] %v10455_v54  ;;  %vm7405_vm8 = vcmp.ne.s32.totalorder %v10458_v15, 0  ;;  %v7417_v4 = vsel %vm7269_vm4, %v1018_v9, -1e+30  ;;  %v1021_v32 = vmax.f32 %v7064_v22, %v893_v30  ;;  %v1022_v45 = vmax.f32 %v7068_v38, %v894_v14 }
 0x209   : > { %v10460_v40 = vsel %vm7405_vm8, 4294967295, %v10459_v40  ;;  %vm7411_vm14 = vcmp.ne.s32.totalorder %v10462_v49, 0  ;;  %10466 = vst [vmem:[#allocation221_spill] sm:$0xff] %v7417_v4  ;;  %v1023_v48 = vmax.f32 %v767_v27, %v895_v58  ;;  %v10467_v10 = vunpack.c.0.s8 %v6659_v57 }
 0x20a   : > { %10461 = vst [vmem:[#allocation219_spill] sm:$0xff] %v10460_v40  ;;  %v10464_v36 = vsel %vm7411_vm14, 4294967295, %v10463_v36  ;;  %v10468_v15 = vmov 0  ;;  %v7429_v0 = vadd.f32 %v10259_v51, %v7381_v44  ;;  %v7433_v55 = vadd.f32 %v5394_v5, %v7381_v44 }
 0x20b   : > { %10465 = vst [vmem:[#allocation220_spill] sm:$0xff] %v10464_v36  ;;  %vm7423_vm3 = vcmp.ne.s32.totalorder %v10467_v10, 0  ;;  %v1902_v22 = vmax.f32 %v7401_v59, %v7417_v4  ;;  %v1024_v30 = vmax.f32 %v768_v62, %v896_v29  ;;  %v10471_v38 = vunpack.c.1.s8 %v6659_v57 }
 0x20c   : > { %v10469_v15 = vsel %vm7423_vm3, 4294967295, %v10468_v15  ;;  %v10472_v58 = vmov 0  ;;  %v7445_v14 = vadd.f32 %v10259_v51, %v7397_v2  ;;  %v7449_v27 = vsel %vm7297_vm0, %v1019_v1, -1e+30 }
 0x20d   : > { %10470 = vst [vmem:[#allocation222_spill] sm:$0xff] %v10469_v15  ;;  %vm7439_vm4 = vcmp.ne.s32.totalorder %v10471_v38, 0  ;;  %10475 = vst [vmem:[#allocation224_spill] sm:$0xff] %v7449_v27  ;;  %v7453_v9 = vsel %vm7303_vm6, %v1021_v32, -1e+30  ;;  %v10478_v29 = vunpack.c.2.s8 %v6659_v57  ;;  %v10479_v49 = vmov 0 }
 0x20e   : > { %v10473_v58 = vsel %vm7439_vm4, 4294967295, %v10472_v58  ;;  %10476 = vst [vmem:[#allocation225_spill] sm:$0xff] %v7453_v9  ;;  %v7457_v62 = vsel %vm7309_vm10, %v1022_v45, -1e+30  ;;  %v10482_v10 = vunpack.c.3.s8 %v6659_v57  ;;  %v10483_v38 = vmov 0 }
 0x20f   : > { %10474 = vst [vmem:[#allocation223_spill] sm:$0xff] %v10473_v58  ;;  %10477 = vst [vmem:[#allocation226_spill] sm:$0xff] %v7457_v62  ;;  %vm7461_vm12 = vcmp.ne.s32.totalorder %v10478_v29, 0  ;;  %v7473_v1 = vadd.f32 %v5394_v5, %v7397_v2  ;;  %v7477_v32 = vsel %vm7323_vm7, %v1020_v20, -1e+30  ;;  %v1903_v45 = vmax.f32 %v1902_v22, %v7449_v27 }
 0x210   : > { %v10480_v49 = vsel %vm7461_vm12, 4294967295, %v10479_v49  ;;  %vm7467_vm13 = vcmp.ne.s32.totalorder %v10482_v10, 0  ;;  %10486 = vst [vmem:[#allocation229_spill] sm:$0xff] %v7477_v32  ;;  %v1907_v29 = vmax.f32 %v7453_v9, %v7457_v62  ;;  %v7484_v57 = vsel %vm7342_vm5, %v1023_v48, -1e+30 }
 0x211   : > { %10481 = vst [vmem:[#allocation227_spill] sm:$0xff] %v10480_v49  ;;  %v10484_v38 = vsel %vm7467_vm13, 4294967295, %v10483_v38  ;;  %10487 = vst [vmem:[#allocation230_spill] sm:$0xff] %v7484_v57  ;;  %v7488_v10 = vsel %vm7348_vm2, %v1024_v30, -1e+30  ;;  %v771_v61 = vadd.f32 %v5396_v6, %v6995_v31  ;;  %v772_v20 = vadd.f32 %v5398_v7, %v6995_v31 }
 0x212   : > { %10485 = vst [vmem:[#allocation228_spill] sm:$0xff] %v10484_v38  ;;  %10488 = vst [vmem:[#allocation231_spill] sm:$0xff] %v7488_v10  ;;  %v1904_v26 = vmax.f32 %v1903_v45, %v7477_v32  ;;  %v1908_v22 = vmax.f32 %v1907_v29, %v7484_v57  ;;  %v897_v39 = vmul.f32 0.01, %v7036_v63  ;;  %v898_v37 = vmul.f32 0.01, %v7040_v53 }
 0x213   : > { %v10489_v48 = vunpack.c.0.s8 %v6666_v35  ;;  %v10490_v28 = vmov 0  ;;  %v899_v30 = vmul.f32 0.01, %v771_v61  ;;  %v900_v50 = vmul.f32 0.01, %v772_v20 }
 0x214   : > { %v775_v52 = vadd.f32 %v5396_v6, %v7149_v47  ;;  %v776_v31 = vadd.f32 %v5398_v7, %v7149_v47  ;;  %v10493_v45 = vunpack.c.1.s8 %v6666_v35  ;;  %v10494_v29 = vmov 0  ;;  %1905 = vmax.xlane.f32.xlu0 %v1904_v26 }
 0x215   : > { %vm7500_vm5 = vcmp.ne.s32.totalorder %v10489_v48, 0  ;;  %v1909_v48 = vmax.f32 %v1908_v22, %v7488_v10  ;;  %v1025_v12 = vmax.f32 %v7036_v63, %v897_v39  ;;  %v1026_v57 = vmax.f32 %v7040_v53, %v898_v37 }
 0x216   : > { %v10491_v28 = vsel %vm7500_vm5, 4294967295, %v10490_v28  ;;  %vm7510_vm6 = vcmp.ne.s32.totalorder %v10493_v45, 0  ;;  %v901_v62 = vmul.f32 0.01, %v7191_v16  ;;  %v10497_v27 = vunpack.c.2.s8 %v6666_v35 }
 0x217   : > { %10492 = vst [vmem:[#allocation232_spill] sm:$0xff] %v10491_v28  ;;  %v10495_v29 = vsel %vm7510_vm6, 4294967295, %v10494_v29  ;;  %v10498_v9 = vmov 0  ;;  %v10501_v47 = vunpack.c.3.s8 %v6666_v35  ;;  %v10502_v45 = vmov 0  ;;  %1910 = vmax.xlane.f32.xlu1 %v1909_v48 }
 0x218   : > { %10496 = vst [vmem:[#allocation233_spill] sm:$0xff] %v10495_v29  ;;  %vm7520_vm2 = vcmp.ne.s32.totalorder %v10497_v27, 0  ;;  %v1027_v26 = vmax.f32 %v771_v61, %v899_v30  ;;  %v1028_v22 = vmax.f32 %v772_v20, %v900_v50  ;;  %v902_v63 = vmul.f32 0.01, %v7195_v21 }
 0x219   : > { %v10499_v9 = vsel %vm7520_vm2, 4294967295, %v10498_v9  ;;  %vm7526_vm10 = vcmp.ne.s32.totalorder %v10501_v47, 0  ;;  %v903_v39 = vmul.f32 0.01, %v775_v52  ;;  %v7533_v53 = vsel %vm7387_vm1, %v1025_v12, -1e+30 }
 0x21a   : > { %10500 = vst [vmem:[#allocation234_spill] sm:$0xff] %v10499_v9  ;;  %v10503_v45 = vsel %vm7526_vm10, 4294967295, %v10502_v45  ;;  %10505 = vst [vmem:[#allocation236_spill] sm:$0xff] %v7533_v53  ;;  %v7537_v37 = vsel %vm7393_vm9, %v1026_v57, -1e+30  ;;  %v1029_v35 = vmax.f32 %v7191_v16, %v901_v62  ;;  %v1030_v12 = vmax.f32 %v7195_v21, %v902_v63 }
 0x21b   : > { %10504 = vst [vmem:[#allocation235_spill] sm:$0xff] %v10503_v45  ;;  %10506 = vst [vmem:[#allocation237_spill] sm:$0xff] %v7537_v37  ;;  %v904_v27 = vmul.f32 0.01, %v776_v31  ;;  %v7542_v47 = vsel %vm7405_vm8, %v1027_v26, -1e+30  ;;  %v1912_v61 = vmax.f32 %v7533_v53, %v7537_v37  ;;  %v10509_v20 = vunpack.c.0.s8 %v6686_v33 }
 0x21c   : > { %10507 = vst [vmem:[#allocation238_spill] sm:$0xff] %v7542_v47  ;;  %v7546_v50 = vsel %vm7411_vm14, %v1028_v22, -1e+30  ;;  %v10510_v57 = vmov 0  ;;  %v10513_v16 = vunpack.c.1.s8 %v6686_v33  ;;  %v10514_v62 = vmov 0  ;;  %v8087_v37 = vld [vmem:[#allocation2 + $0xe8] sm:$0xff] }
 0x21d   : > { %10508 = vst [vmem:[#allocation239_spill] sm:$0xff] %v7546_v50  ;;  %vm7553_vm1 = vcmp.ne.s32.totalorder %v10509_v20, 0  ;;  %v10517_v30 = vunpack.c.2.s8 %v6686_v33  ;;  %v10518_v48 = vmov 0  ;;  %v1031_v26 = vmax.f32 %v775_v52, %v903_v39 }
 0x21e   : > { %v10511_v57 = vsel %vm7553_vm1, 4294967295, %v10510_v57  ;;  %vm7559_vm9 = vcmp.ne.s32.totalorder %v10513_v16, 0  ;;  %v1032_v21 = vmax.f32 %v776_v31, %v904_v27  ;;  %v7571_v22 = vsel %vm7423_vm3, %v1029_v35, -1e+30 }
 0x21f   : > { %10512 = vst [vmem:[#allocation240_spill] sm:$0xff] %v10511_v57  ;;  %v10515_v62 = vsel %vm7559_vm9, 4294967295, %v10514_v62  ;;  %vm7565_vm8 = vcmp.ne.s32.totalorder %v10517_v30, 0  ;;  %10521 = vst [vmem:[#allocation243_spill] sm:$0xff] %v7571_v22  ;;  %v779_v63 = vadd.f32 %v5396_v6, %v7128_v56  ;;  %v10522_v20 = vunpack.c.3.s8 %v6686_v33 }
 0x220   : > { %10516 = vst [vmem:[#allocation241_spill] sm:$0xff] %v10515_v62  ;;  %v10519_v48 = vsel %vm7565_vm8, 4294967295, %v10518_v48  ;;  %v10523_v16 = vmov 0  ;;  %v1913_v30 = vmax.f32 %v1912_v61, %v7542_v47  ;;  %v7584_v40 = vsel %vm7439_vm4, %v1030_v12, -1e+30  ;;  %v10668_v47 = vld [vmem:[#allocation110_spill] sm:$0xff] }
 0x221   : > { %10520 = vst [vmem:[#allocation242_spill] sm:$0xff] %v10519_v48  ;;  %vm7577_vm14 = vcmp.ne.s32.totalorder %v10522_v20, 0  ;;  %10526 = vst [vmem:[#allocation245_spill] sm:$0xff] %v7584_v40  ;;  %v780_v52 = vadd.f32 %v5398_v7, %v7128_v56  ;;  %v905_v31 = vmul.f32 0.01, %v7157_v3  ;;  %v1917_v27 = vmax.f32 %v7571_v22, %v7584_v40 }
 0x222   : > { %v10524_v16 = vsel %vm7577_vm14, 4294967295, %v10523_v16  ;;  %v7591_v39 = vsel %vm7461_vm12, %v1031_v26, -1e+30  ;;  %v7595_v33 = vsel %vm7467_vm13, %v1032_v21, -1e+30  ;;  %v1914_v61 = vmax.f32 %v1913_v30, %v7546_v50  ;;  %10672 = vst [vmem:[#allocation110_spill] sm:$0xff] %v8087_v37 }
 0x223   : > { %10525 = vst [vmem:[#allocation244_spill] sm:$0xff] %v10524_v16  ;;  %10527 = vst [vmem:[#allocation246_spill] sm:$0xff] %v7591_v39  ;;  %v906_v35 = vmul.f32 0.01, %v7161_v41  ;;  %v907_v12 = vmul.f32 0.01, %v779_v63  ;;  %v1033_v56 = vmax.f32 %v7157_v3, %v905_v31  ;;  %v10529_v15 = vunpack.c.0.s8 %v6708_v17 }
 0x224   : > { %10528 = vst [vmem:[#allocation247_spill] sm:$0xff] %v7595_v33  ;;  %v908_v20 = vmul.f32 0.01, %v780_v52  ;;  %v10530_v26 = vmov 0  ;;  %v1918_v21 = vmax.f32 %v1917_v27, %v7591_v39  ;;  %v783_v38 = vadd.f32 %v5396_v6, %v7273_v24  ;;  %1915 = vmax.xlane.f32.xlu0 %v1914_v61  ;;  %v10666_v39 = vld [vmem:[#allocation108_spill] sm:$0xff] }
 0x225   : > { %vm7604_vm3 = vcmp.ne.s32.totalorder %v10529_v15, 0  ;;  %v1034_v49 = vmax.f32 %v7161_v41, %v906_v35  ;;  %v784_v30 = vadd.f32 %v5398_v7, %v7273_v24  ;;  %v10533_v58 = vunpack.c.1.s8 %v6708_v17 }
 0x226   : > { %v10531_v26 = vsel %vm7604_vm3, 4294967295, %v10530_v26  ;;  %v10534_v3 = vmov 0  ;;  %v1035_v15 = vmax.f32 %v779_v63, %v907_v12  ;;  %v1036_v31 = vmax.f32 %v780_v52, %v908_v20 }
 0x227   : > { %10532 = vst [vmem:[#allocation248_spill] sm:$0xff] %v10531_v26  ;;  %vm7616_vm12 = vcmp.ne.s32.totalorder %v10533_v58, 0  ;;  %v7622_v27 = vsel %vm7500_vm5, %v1033_v56, -1e+30  ;;  %v909_v41 = vmul.f32 0.01, %v7329_v13  ;;  %v10538_v35 = vunpack.c.2.s8 %v6708_v17 }
 0x228   : > { %v10535_v3 = vsel %vm7616_vm12, 4294967295, %v10534_v3  ;;  %10537 = vst [vmem:[#allocation250_spill] sm:$0xff] %v7622_v27  ;;  %v10539_v34 = vmov 0  ;;  %v1919_v24 = vmax.f32 %v1918_v21, %v7595_v33  ;;  %v7634_v58 = vsel %vm7510_vm6, %v1034_v49, -1e+30  ;;  %v10611_v26 = vld [vmem:[#allocation116_spill] sm:$0xff] }
 0x229   : > { %10536 = vst [vmem:[#allocation249_spill] sm:$0xff] %v10535_v3  ;;  %vm7627_vm13 = vcmp.ne.s32.totalorder %v10538_v35, 0  ;;  %10542 = vst [vmem:[#allocation252_spill] sm:$0xff] %v7634_v58  ;;  %v910_v63 = vmul.f32 0.01, %v7333_v46  ;;  %v10543_v61 = vunpack.c.0.s8 %v6718_v8  ;;  %v10544_v12 = vmov 0 }
 0x22a   : > { %v10540_v34 = vsel %vm7627_vm13, 4294967295, %v10539_v34  ;;  %v911_v52 = vmul.f32 0.01, %v783_v38  ;;  %v7645_v20 = vsel %vm7520_vm2, %v1035_v15, -1e+30  ;;  %v1922_v49 = vmax.f32 %v7622_v27, %v7634_v58  ;;  %1920 = vmax.xlane.f32.xlu1 %v1919_v24  ;;  %v8061_v58 = vld [vmem:[#allocation2 + $0xe0] sm:$0xff] }
 0x22b   : > { %10541 = vst [vmem:[#allocation251_spill] sm:$0xff] %v10540_v34  ;;  %vm7639_vm5 = vcmp.ne.s32.totalorder %v10543_v61, 0  ;;  %10547 = vst [vmem:[#allocation254_spill] sm:$0xff] %v7645_v20  ;;  %v7649_v56 = vsel %vm7526_vm10, %v1036_v31, -1e+30  ;;  %v10549_v35 = vunpack.c.1.s8 %v6718_v8  ;;  %v10550_v28 = vmov 0  ;;  %v649_v34 = vpop.permute.xlu0 %648 }
 0x22c   : > { %v10545_v12 = vsel %vm7639_vm5, 4294967295, %v10544_v12  ;;  %10548 = vst [vmem:[#allocation255_spill] sm:$0xff] %v7649_v56  ;;  %v912_v21 = vmul.f32 0.01, %v784_v30  ;;  %v1037_v61 = vmax.f32 %v7329_v13, %v909_v41  ;;  %v1038_v15 = vmax.f32 %v7333_v46, %v910_v63  ;;  %10664 = vst [vmem:[#allocation286_spill] sm:$0xff] %v8061_v58  ;;  %v10675_v27 = vld [vmem:[#allocation123_spill] sm:$0xff] }
 0x22d   : > { %10546 = vst [vmem:[#allocation253_spill] sm:$0xff] %v10545_v12  ;;  %vm7655_vm6 = vcmp.ne.s32.totalorder %v10549_v35, 0  ;;  %v1039_v9 = vmax.f32 %v783_v38, %v911_v52  ;;  %v787_v31 = vadd.f32 %v5396_v6, %v7254_v60  ;;  %v10553_v45 = vunpack.c.3.s8 %v6708_v17  ;;  %v4703_v12 = vld [vmem:[#allocation5 + $0xe0] sm:$0xff]  }
 0x22e   : > { %v10551_v28 = vsel %vm7655_vm6, 4294967295, %v10550_v28  ;;  %v10554_v29 = vmov 0  ;;  %v10557_v35 = vunpack.c.2.s8 %v6718_v8  ;;  %v10558_v36 = vmov 0 }
 0x22f   : > { %10552 = vst [vmem:[#allocation256_spill] sm:$0xff] %v10551_v28  ;;  %vm7665_vm2 = vcmp.ne.s32.totalorder %v10553_v45, 0  ;;  %v1923_v13 = vmax.f32 %v1922_v49, %v7645_v20  ;;  %v1040_v41 = vmax.f32 %v784_v30, %v912_v21  ;;  %v788_v46 = vadd.f32 %v5398_v7, %v7254_v60  ;;  %v10610_v28 = vld [vmem:[#allocation118_spill] sm:$0xff] }
 0x230   : > { %v10555_v29 = vsel %vm7665_vm2, 4294967295, %v10554_v29  ;;  %vm7671_vm10 = vcmp.ne.s32.totalorder %v10557_v35, 0  ;;  %v913_v38 = vmul.f32 0.01, %v7286_v19  ;;  %v7681_v17 = vsel %vm7553_vm1, %v1037_v61, -1e+30 }
 0x231   : > { %10556 = vst [vmem:[#allocation257_spill] sm:$0xff] %v10555_v29  ;;  %v10559_v36 = vsel %vm7671_vm10, 4294967295, %v10558_v36  ;;  %10561 = vst [vmem:[#allocation259_spill] sm:$0xff] %v7681_v17  ;;  %v7685_v45 = vsel %vm7559_vm9, %v1038_v15, -1e+30  ;;  %v791_v30 = vadd.f32 %v5396_v6, %v7397_v2  ;;  %v1924_v63 = vmax.f32 %v1923_v13, %v7649_v56 }
 0x232   : > { %10560 = vst [vmem:[#allocation258_spill] sm:$0xff] %v10559_v36  ;;  %10562 = vst [vmem:[#allocation260_spill] sm:$0xff] %v7685_v45  ;;  %v7689_v24 = vsel %vm7565_vm8, %v1039_v9, -1e+30  ;;  %v7696_v60 = vsel %vm7577_vm14, %v1040_v41, -1e+30  ;;  %v1927_v52 = vmax.f32 %v7681_v17, %v7685_v45  ;;  %v10565_v21 = vunpack.c.3.s8 %v6718_v8 }
 0x233   : > { %10563 = vst [vmem:[#allocation261_spill] sm:$0xff] %v7689_v24  ;;  %10564 = vst [vmem:[#allocation262_spill] sm:$0xff] %v7696_v60  ;;  %v914_v49 = vmul.f32 0.01, %v7290_v43  ;;  %v10566_v61 = vmov 0  ;;  %v10569_v9 = vld [vmem:[#allocation11_spill] sm:$0xff]  ;;  %v1041_v48 = vmax.f32 %v7286_v19, %v913_v38  ;;  %v792_v57 = vadd.f32 %v5398_v7, %v7397_v2  ;;  %1925 = vmax.xlane.f32.xlu0 %v1924_v63 }
 0x234   : > { %vm7703_vm1 = vcmp.ne.s32.totalorder %v10565_v21, 0  ;;  %v10570_v15 = vunpack.c.0.s8 %v10569_v9  ;;  %v10571_v35 = vmov 0  ;;  %v915_v13 = vmul.f32 0.01, %v787_v31  ;;  %v4699_v36 = vld [vmem:[#allocation5 + $0xd8] sm:$0xff]   ;;  %v8044_v17 = vld [vmem:[#allocation2 + $0xd0] sm:$0xff] }
 0x235   : > { %v10567_v61 = vsel %vm7703_vm1, 4294967295, %v10566_v61  ;;  %v916_v41 = vmul.f32 0.01, %v788_v46  ;;  %v1928_v8 = vmax.f32 %v1927_v52, %v7689_v24  ;;  %v1042_v21 = vmax.f32 %v7290_v43, %v914_v49  ;;  %10660 = vst [vmem:[#allocation283_spill] sm:$0xff] %v8044_v17 }
 0x236   : > { %10568 = vst [vmem:[#allocation263_spill] sm:$0xff] %v10567_v61  ;;  %vm7709_vm8 = vcmp.ne.s32.totalorder %v10570_v15, 0  ;;  %v917_v16 = vmul.f32 0.01, %v7445_v14  ;;  %v918_v62 = vmul.f32 0.01, %v7473_v1  ;;  %v1043_v15 = vmax.f32 %v787_v31, %v915_v13 }
 0x237   : > { %v10572_v35 = vsel %vm7709_vm8, 4294967295, %v10571_v35  ;;  %v1044_v54 = vmax.f32 %v788_v46, %v916_v41  ;;  %v7722_v45 = vsel %vm7604_vm3, %v1041_v48, -1e+30  ;;  %v919_v20 = vmul.f32 0.01, %v791_v30  ;;  %v10608_v61 = vld [vmem:[#allocation131_spill] sm:$0xff] }
 0x238   : > { %10573 = vst [vmem:[#allocation11_spill] sm:$0xff] %v10572_v35  ;;  %10574 = vst [vmem:[#allocation264_spill] sm:$0xff] %v7722_v45  ;;  %v1929_v19 = vmax.f32 %v1928_v8, %v7696_v60  ;;  %v7727_v2 = vsel %vm7616_vm12, %v1042_v21, -1e+30  ;;  %v920_v38 = vmul.f32 0.01, %v792_v57  ;;  %v1045_v43 = vmax.f32 %v7445_v14, %v917_v16 }
 0x239   : > { %10575 = vst [vmem:[#allocation265_spill] sm:$0xff] %v7727_v2  ;;  %v7732_v63 = vsel %vm7627_vm13, %v1043_v15, -1e+30  ;;  %v1932_v31 = vmax.f32 %v7722_v45, %v7727_v2  ;;  %v1046_v48 = vmax.f32 %v7473_v1, %v918_v62  ;;  %v10577_v46 = vunpack.c.1.s8 %v10569_v9  ;;  %v10605_v35 = vld [vmem:[#allocation122_spill] sm:$0xff] }
 0x23a   : > { %10576 = vst [vmem:[#allocation266_spill] sm:$0xff] %v7732_v63  ;;  %v10578_v52 = vmov 0  ;;  %1930 = vmax.xlane.f32.xlu1 %v1929_v19  ;;  %v1047_v49 = vmax.f32 %v791_v30, %v919_v20  ;;  %v1048_v13 = vmax.f32 %v792_v57, %v920_v38  ;;  %v7745_v14 = vsel %vm7639_vm5, %v1045_v43, -1e+30 }
 0x23b   : > { %vm7739_vm3 = vcmp.ne.s32.totalorder %v10577_v46, 0  ;;  %10581 = vst [vmem:[#allocation268_spill] sm:$0xff] %v7745_v14  ;;  %v795_v16 = vadd.f32 %v5396_v6, %v7381_v44  ;;  %v1933_v41 = vmax.f32 %v1932_v31, %v7732_v63  ;;  %v7752_v1 = vsel %vm7655_vm6, %v1046_v48, -1e+30 }
 0x23c   : > { %v10579_v52 = vsel %vm7739_vm3, 4294967295, %v10578_v52  ;;  %10582 = vst [vmem:[#allocation269_spill] sm:$0xff] %v7752_v1  ;;  %v796_v62 = vadd.f32 %v5398_v7, %v7381_v44  ;;  %v921_v8 = vmul.f32 0.01, %v7429_v0  ;;  %v7759_v57 = vsel %vm7665_vm2, %v1044_v54, -1e+30 }
 0x23d   : > { %10580 = vst [vmem:[#allocation267_spill] sm:$0xff] %v10579_v52  ;;  %10583 = vst [vmem:[#allocation270_spill] sm:$0xff] %v7759_v57  ;;  %v7763_v20 = vsel %vm7671_vm10, %v1047_v49, -1e+30  ;;  %v1937_v30 = vmax.f32 %v7745_v14, %v7752_v1  ;;  %v922_v21 = vmul.f32 0.01, %v7433_v55  ;;  %v1934_v15 = vmax.f32 %v1933_v41, %v7759_v57 }
 0x23e   : > { %10584 = vst [vmem:[#allocation271_spill] sm:$0xff] %v7763_v20  ;;  %v923_v19 = vmul.f32 0.01, %v795_v16  ;;  %v924_v38 = vmul.f32 0.01, %v796_v62  ;;  %v1049_v44 = vmax.f32 %v7429_v0, %v921_v8  ;;  %v10586_v46 = vunpack.c.2.s8 %v10569_v9  ;;  %v10609_v52 = vld [vmem:[#allocation137_spill] sm:$0xff] }
 0x23f   : > { %v1938_v43 = vmax.f32 %v1937_v30, %v7763_v20  ;;  %v1050_v54 = vmax.f32 %v7433_v55, %v922_v21  ;;  %1935 = vmax.xlane.f32.xlu0 %v1934_v15  ;;  %v7774_v31 = vsel %vm7703_vm1, %v1048_v13, -1e+30  ;;  %v10587_v49 = vmov 0  ;;  %v4710_v20 = vld [vmem:[#allocation5 + $0x70] sm:$0xff]  }
 0x240   : > { %10585 = vst [vmem:[#allocation272_spill] sm:$0xff] %v7774_v31  ;;  %v1051_v48 = vmax.f32 %v795_v16, %v923_v19  ;;  %vm7778_vm10 = vcmp.ne.s32.totalorder %v10586_v46, 0  ;;  %v7784_v41 = vsel %vm7709_vm8, %v1049_v44, -1e+30  ;;  %v1052_v8 = vmax.f32 %v796_v62, %v924_v38  ;;  %v4686_v19 = vld [vmem:[#allocation5 + $0x40] sm:$0xff]   ;;  %v4691_v46 = vld [vmem:[#allocation5 + $0xc8] sm:$0xff]  }
 0x241   : > { %v10588_v49 = vsel %vm7778_vm10, 4294967295, %v10587_v49  ;;  %10590 = vst [vmem:[#allocation274_spill] sm:$0xff] %v7784_v41  ;;  %v1939_v0 = vmax.f32 %v1938_v43, %v7774_v31  ;;  %v7789_v55 = vsel %vm7739_vm3, %v1050_v54, -1e+30  ;;  %v10592_v13 = vunpack.c.3.s8 %v10569_v9  ;;  %v4687_v38 = vld [vmem:[#allocation5 + $0xc0] sm:$0xff]   ;;  %4387 = vmatprep.subr.bf16.mxu0 %v4686_v19  ;;  %v10598_v54 = vld [vmem:[#allocation109_spill] sm:$0xff]  ;;  %vm10733_vm3 = vmpackc.low %vm5607_vm15, %vm5553_vm11 }
 0x242   : > { %10589 = vst [vmem:[#allocation273_spill] sm:$0xff] %v10588_v49  ;;  %10591 = vst [vmem:[#allocation275_spill] sm:$0xff] %v7789_v55  ;;  %v10593_v16 = vmov 0  ;;  %v1942_v30 = vmax.f32 %v7784_v41, %v7789_v55  ;;  %v7801_v21 = vsel %vm7778_vm10, %v1051_v48, -1e+30  ;;  %v4688_v44 = vld [vmem:[#allocation5] sm:$0xff]   ;;  %4499 = vmatprep.subr.bf16.mxu1 %v4687_v38  ;;  %v10612_v29 = vpack.c.b8 %v10610_v28, %v10611_v26 }
 0x243   : > { %vm7793_vm5 = vcmp.ne.s32.totalorder %v10592_v13, 0  ;;  %1940 = vmax.xlane.f32.xlu1 %v1939_v0  ;;  %10596 = vst [vmem:[#allocation277_spill] sm:$0xff] %v7801_v21  ;;  %v4689_v43 = vld [vmem:[#allocation5 + $0x80] sm:$0xff]   ;;  %4388 = vmatpush3.bf16.msra.mxu0 %v4688_v44  ;;  %v4690_v48 = vld [vmem:[#allocation5 + $0x48] sm:$0xff]   ;;  %v10599_v0 = vld [vmem:[#allocation113_spill] sm:$0xff]  ;;  %v799_v1 = vadd.f32 %v5396_v6, %v649_v34  ;;  %v10617_v45 = vmov 0 }
 0x244   : > { %v10594_v16 = vsel %vm7793_vm5, 4294967295, %v10593_v16  ;;  %v1943_v62 = vmax.f32 %v1942_v30, %v7801_v21  ;;  %v7806_v15 = vsel %vm7793_vm5, %v1052_v8, -1e+30  ;;  %4500 = vmatpush3.bf16.msra.mxu1 %v4689_v43  ;;  %v4692_v13 = vld [vmem:[#allocation5 + $0x8] sm:$0xff]   ;;  %4389 = vmatprep.subr.bf16.mxu0 %v4690_v48  ;;  %v4696_v19 = vld [vmem:[#allocation5 + $0x10] sm:$0xff]   ;;  %v4698_v49 = vld [vmem:[#allocation5 + $0x58] sm:$0xff]   ;;  %vm1347_vm10 = vnez %v10612_v29 }
 0x245   : > { %10595 = vst [vmem:[#allocation276_spill] sm:$0xff] %v10594_v16  ;;  %10597 = vst [vmem:[#allocation278_spill] sm:$0xff] %v7806_v15  ;;  %v4693_v8 = vld [vmem:[#allocation5 + $0x88] sm:$0xff]   ;;  %4501 = vmatprep.subr.bf16.mxu1 %v4691_v46  ;;  %v4697_v44 = vld [vmem:[#allocation5 + $0x90] sm:$0xff]  }
 0x246   : > { %v1944_v9 = vmax.f32 %v1943_v62, %v7806_v15  ;;  %v10600_v30 = vld [vmem:[#allocation120_spill] sm:$0xff]  ;;  %v4694_v62 = vld [vmem:[#allocation5 + $0x50] sm:$0xff]   ;;  %v4700_v48 = vld [vmem:[#allocation5 + $0x18] sm:$0xff]  }
 0x247   : > { %4390 = vmatpush3.bf16.msra.mxu0 %v4692_v13  ;;  %v10601_v38 = vld [vmem:[#allocation112_spill] sm:$0xff]  ;;  %v10602_v43 = vld [vmem:[#allocation125_spill] sm:$0xff]  ;;  %v10603_v46 = vld [vmem:[#allocation115_spill] sm:$0xff] }
 0x248   : > { %1945 = vmax.xlane.f32.xlu0 %v1944_v9  ;;  %4502 = vmatpush3.bf16.msra.mxu1 %v4693_v8  ;;  %v4695_v9 = vld [vmem:[#allocation5 + $0xd0] sm:$0xff]   ;;  %v4701_v13 = vld [vmem:[#allocation5 + $0x98] sm:$0xff]   ;;  %v10607_v16 = vld [vmem:[#allocation127_spill] sm:$0xff]  ;;  %v1990_v22 = vsub.f32 %v10668_v47, %v10601_v38  ;;  %v1995_v59 = vsub.f32 %v10675_v27, %v10602_v43 }
 0x249   : > { %4391 = vmatprep.subr.bf16.mxu0 %v4694_v62  ;;  %4503 = vmatprep.subr.bf16.mxu1 %v4695_v9  ;;  %v10604_v8 = vld [vmem:[#allocation130_spill] sm:$0xff]  ;;  %v10606_v62 = vld [vmem:[#allocation133_spill] sm:$0xff]  ;;  %v4702_v9 = vld [vmem:[#allocation5 + $0x60] sm:$0xff]  }
 0x24a   : > { %v4711_v21 = vld [vmem:[#allocation5 + $0xf0] sm:$0xff]   ;;  %v10615_v41 = vld [vmem:[#allocation119_spill] sm:$0xff]  ;;  %v2023_v32 = vmul.f32 1.442695, %v1990_v22  ;;  %v10680_v27 = vld [vmem:[#allocation24_spill] sm:$0xff] }
 0x24b   : > { %4392 = vmatpush3.bf16.msra.mxu0 %v4696_v19  ;;  %v4704_v19 = vld [vmem:[#allocation5 + $0x20] sm:$0xff]  }
 0x24c   : > { %4504 = vmatpush3.bf16.msra.mxu1 %v4697_v44  ;;  %4393 = vmatprep.subr.bf16.mxu0 %v4698_v49  ;;  %v4705_v44 = vld [vmem:[#allocation5 + $0xa0] sm:$0xff]   ;;  %v4706_v49 = vld [vmem:[#allocation5 + $0x68] sm:$0xff]  }
 0x24d   : > { %4505 = vmatprep.subr.bf16.mxu1 %v4699_v36  ;;  %v4707_v36 = vld [vmem:[#allocation5 + $0xe8] sm:$0xff]  }
 0x24f   : > { %4394 = vmatpush3.bf16.msra.mxu0 %v4700_v48  ;;  %v4708_v48 = vld [vmem:[#allocation5 + $0x28] sm:$0xff]  }
 0x250   : > { %4506 = vmatpush3.bf16.msra.mxu1 %v4701_v13  ;;  %4395 = vmatprep.subr.bf16.mxu0 %v4702_v9  ;;  %v4709_v13 = vld [vmem:[#allocation5 + $0xa8] sm:$0xff]   ;;  %v798_v9 = vadd.f32 %v5394_v5, %v649_v34 }
 0x251   : > { %4507 = vmatprep.subr.bf16.mxu1 %v4703_v12  ;;  %v797_v12 = vadd.f32 %v10259_v51, %v649_v34 }
 0x253   : > { %4396 = vmatpush3.bf16.msra.mxu0 %v4704_v19  ;;  %v654_v19 = vpop.permute.xlu1 %653  ;;  %v925_v14 = vmul.f32 0.01, %v797_v12 }
 0x254   : > { %2087 = vperm.xlu1 %4685, %v10598_v54   ;;  %4508 = vmatpush3.bf16.msra.mxu1 %v4705_v44  ;;  %v10613_v44 = vmov 0   ;;  %v801_v28 = vadd.f32 %v10259_v51, %v654_v19  ;;  %v802_v29 = vadd.f32 %v5394_v5, %v654_v19 }
 0x255   : > { %4397 = vmatprep.subr.bf16.mxu0 %v4706_v49  ;;  %4509 = vmatprep.subr.bf16.mxu1 %v4707_v36  ;;  %v1379_v3 = vsel %vm1347_vm10, 16843009, %v10613_v44  ;;  %v4712_v49 = vld [vmem:[#allocation5 + $0x30] sm:$0xff]   ;;  %v1053_v63 = vmax.f32 %v797_v12, %v925_v14  ;;  %v803_v14 = vadd.f32 %v5396_v6, %v654_v19  ;;  %v4716_v12 = vld [vmem:[#allocation5 + $0x38] sm:$0xff]   ;;  %v10625_v6 = vmov 0 }
 0x256   : > { %v4713_v36 = vld [vmem:[#allocation5 + $0xb0] sm:$0xff]   ;;  %v1501_v26 = vunpack.c.0.s8 %v1379_v3  ;;  %v1502_v15 = vunpack.c.1.s8 %v1379_v3  ;;  %v929_v51 = vmul.f32 0.01, %v801_v28  ;;  %v930_v5 = vmul.f32 0.01, %v802_v29 }
 0x257   : > { %4398 = vmatpush3.bf16.msra.mxu0 %v4708_v48  ;;  %v926_v48 = vmul.f32 0.01, %v798_v9 }
 0x258   : > { %2097 = vperm.xlu1 %4685, %v10599_v0   ;;  %4510 = vmatpush3.bf16.msra.mxu1 %v4709_v13  ;;  %v10614_v13 = vld [vmem:[#allocation124_spill] sm:$0xff]  ;;  %vm7834_vm10 = vcmp.ne.s32.totalorder %v1501_v26, 0  ;;  %vm7838_vm5 = vcmp.ne.s32.totalorder %v1502_v15, 0  ;;  %v1057_v26 = vmax.f32 %v801_v28, %v929_v51  ;;  %v1058_v2 = vmax.f32 %v802_v29, %v930_v5 }
 0x259   : > { %v10616_v31 = vpack.c.b8 %v10614_v13, %v10615_v41  ;;  %4399 = vmatprep.subr.bf16.mxu0 %v4710_v20  ;;  %4511 = vmatprep.subr.bf16.mxu1 %v4711_v21  ;;  %v1054_v57 = vmax.f32 %v798_v9, %v926_v48  ;;  %v10618_v45 = vsel %vm7834_vm10, 4294967295, %v10617_v45  ;;  %v10620_v20 = vmov 0  ;;  %v4715_v13 = vld [vmem:[#allocation5 + $0xf8] sm:$0xff]  }
 0x25a   : > { %10619 = vst [vmem:[#allocation109_spill] sm:$0xff] %v10618_v45  ;;  %v10621_v20 = vsel %vm7838_vm5, 4294967295, %v10620_v20  ;;  %v927_v41 = vmul.f32 0.01, %v799_v1  ;;  %v4717_v9 = vld [vmem:[#allocation5 + $0xb8] sm:$0xff]   ;;  %v804_v28 = vadd.f32 %v5398_v7, %v654_v19  ;;  %v1866_v19 = vpop.xlane.xlu1 %1865 }
 0x25b   : > { %vm1348_vm8 = vnez %v10616_v31  ;;  %4400 = vmatpush3.bf16.msra.mxu0 %v4712_v49  ;;  %10622 = vst [vmem:[#allocation113_spill] sm:$0xff] %v10621_v20  ;;  %v800_v31 = vadd.f32 %v5398_v7, %v649_v34  ;;  %v7846_v15 = vsel %vm7834_vm10, %v1053_v63, -1e+30  ;;  %v7850_v48 = vsel %vm7838_vm5, %v1054_v57, -1e+30 }
 0x25c   : > { %2107 = vperm.xlu1 %4685, %v10600_v30   ;;  %4512 = vmatpush3.bf16.msra.mxu1 %v4713_v36  ;;  %v1380_v55 = vsel %vm1348_vm8, 16843009, %v10613_v44  ;;  %v4714_v36 = vld [vmem:[#allocation5 + $0x78] sm:$0xff]   ;;  %v1503_v44 = vunpack.c.2.s8 %v1379_v3  ;;  %10623 = vst [vmem:[#allocation120_spill] sm:$0xff] %v7846_v15  ;;  %10624 = vst [vmem:[#allocation112_spill] sm:$0xff] %v7850_v48  ;;  %v1504_v34 = vunpack.c.3.s8 %v1379_v3  ;;  %v1055_v24 = vmax.f32 %v799_v1, %v927_v41  ;;  %v7867_v1 = vld [vmem:[#allocation2 + $0x68] sm:$0xff] }
 0x25d   : > { %v1505_v21 = vunpack.c.0.s8 %v1380_v55  ;;  %v1506_v49 = vunpack.c.1.s8 %v1380_v55  ;;  %4401 = vmatprep.subr.bf16.mxu0 %v4714_v36  ;;  %4513 = vmatprep.subr.bf16.mxu1 %v4715_v13  ;;  %v928_v60 = vmul.f32 0.01, %v800_v31  ;;  %v10628_v63 = vmov 0 }
 0x25e   : > { %2092 = vperm.xlu0 %4684, %v10601_v38   ;;  %vm7860_vm10 = vcmp.ne.s32.totalorder %v1503_v44, 0  ;;  %v10631_v57 = vmov 0  ;;  %v1947_v3 = vmax.f32 %v7846_v15, %v7850_v48  ;;  %v931_v29 = vmul.f32 0.01, %v803_v14 }
 0x25f   : > { %4402 = vmatpush3.bf16.msra.mxu0 %v4716_v12  ;;  %vm7852_vm8 = vcmp.ne.s32.totalorder %v1505_v21, 0  ;;  %vm7856_vm1 = vcmp.ne.s32.totalorder %v1506_v49, 0  ;;  %v10632_v57 = vsel %vm7860_vm10, 4294967295, %v10631_v57  ;;  %v1507_v51 = vunpack.c.2.s8 %v1380_v55 }
 0x260   : > { %2117 = vperm.xlu1 %4685, %v10602_v43   ;;  %4514 = vmatpush3.bf16.msra.mxu1 %v4717_v9  ;;  %v10626_v6 = vsel %vm7852_vm8, 4294967295, %v10625_v6  ;;  %v10629_v63 = vsel %vm7856_vm1, 4294967295, %v10628_v63  ;;  %10633 = vst [vmem:[#allocation130_spill] sm:$0xff] %v10632_v57  ;;  %v7871_v5 = vsel %vm7852_vm8, %v1057_v26, -1e+30  ;;  %v1056_v21 = vmax.f32 %v800_v31, %v928_v60  ;;  %v7895_v31 = vld [vmem:[#allocation2 + $0x60] sm:$0xff] }
 0x261   : > { %10627 = vst [vmem:[#allocation125_spill] sm:$0xff] %v10626_v6  ;;  %10630 = vst [vmem:[#allocation115_spill] sm:$0xff] %v10629_v63  ;;  %v7875_v41 = vsel %vm7856_vm1, %v1058_v2, -1e+30  ;;  %vm7877_vm5 = vcmp.ne.s32.totalorder %v1504_v34, 0  ;;  %v10636_v49 = vmov 0  ;;  %v1059_v44 = vmax.f32 %v803_v14, %v931_v29 }
 0x262   : > { %2102 = vperm.xlu0 %4684, %v10603_v46   ;;  %10634 = vst [vmem:[#allocation122_spill] sm:$0xff] %v7871_v5  ;;  %10635 = vst [vmem:[#allocation133_spill] sm:$0xff] %v7875_v41  ;;  %v10637_v49 = vsel %vm7877_vm5, 4294967295, %v10636_v49  ;;  %v7883_v7 = vsel %vm7860_vm10, %v1055_v24, -1e+30  ;;  %v7887_v12 = vmax.f32 %v7867_v1, %v1866_v19  ;;  %v1508_v9 = vunpack.c.3.s8 %v1380_v55  ;;  %v1861_v55 = vpop.xlane.xlu0 %1860  ;;  %v7998_v63 = vld [vmem:[#allocation2 + $0xa8] sm:$0xff] }
 0x263   : > { %10638 = vst [vmem:[#allocation127_spill] sm:$0xff] %v10637_v49  ;;  %10639 = vst [vmem:[#allocation131_spill] sm:$0xff] %v7883_v7  ;;  %v1948_v36 = vmax.f32 %v1947_v3, %v7883_v7  ;;  %v932_v13 = vmul.f32 0.01, %v804_v28  ;;  %vm7889_vm8 = vcmp.ne.s32.totalorder %v1507_v51, 0  ;;  %v10640_v2 = vmov 0 }
 0x264   : > { %2127 = vperm.xlu1 %4685, %v10604_v8   ;;  %v10641_v2 = vsel %vm7889_vm8, 4294967295, %v10640_v2  ;;  %v1952_v60 = vmax.f32 %v7871_v5, %v7875_v41  ;;  %vm10643_vm10 = vcmask 7168   ;;  %v7903_v14 = vsel %vm7877_vm5, %v1056_v21, -1e+30  ;;  %v7941_v21 = vld [vmem:[#allocation2 + $0x80] sm:$0xff] }
 0x265   : > { %10642 = vst [vmem:[#allocation137_spill] sm:$0xff] %v10641_v2  ;;  %3701 = vst.msk [vmem:[#allocation2 + $0x68] sm:$0xff] %vm10643_vm10, %v7887_v12  ;;  %v1949_v34 = vmax.f32 %v1948_v36, %v7903_v14  ;;  %v1060_v26 = vmax.f32 %v804_v28, %v932_v13  ;;  %v7908_v3 = vsel %vm7889_vm8, %v1059_v44, -1e+30  ;;  %v7911_v29 = vmax.f32 %v7895_v31, %v1861_v55  ;;  %v7926_v36 = vld [vmem:[#allocation2 + $0x70] sm:$0xff]  ;;  %v7936_v55 = vld [vmem:[#allocation2 + $0x78] sm:$0xff] }
 0x266   : > { %2112 = vperm.xlu0 %4684, %v10605_v35   ;;  %10644 = vst [vmem:[#allocation118_spill] sm:$0xff] %v7903_v14  ;;  %10645 = vst [vmem:[#allocation116_spill] sm:$0xff] %v7908_v3  ;;  %vm7913_vm1 = vcmp.ne.s32.totalorder %v1508_v9, 0  ;;  %v10646_v51 = vmov 0  ;;  %v1953_v19 = vmax.f32 %v1952_v60, %v7908_v3  ;;  %v1871_v44 = vpop.xlane.xlu0 %1870  ;;  %v7979_v49 = vld [vmem:[#allocation2 + $0xa0] sm:$0xff] }
 0x267   : > { %v10647_v51 = vsel %vm7913_vm1, 4294967295, %v10646_v51  ;;  %3700 = vst.msk [vmem:[#allocation2 + $0x60] sm:$0xff] %vm10643_vm10, %v7911_v29  ;;  %v7924_v28 = vsel %vm7913_vm1, %v1060_v26, -1e+30  ;;  %v7930_v9 = vmax.f32 %v7926_v36, %v1871_v44  ;;  %vm10650_vm8 = vmmov %vm10643_vm10  ;;  %v8021_v5 = vld [vmem:[#allocation2 + $0xc0] sm:$0xff] }
 0x268   : > { %2137 = vperm.xlu1 %4685, %v10606_v62   ;;  %10648 = vst [vmem:[#allocation124_spill] sm:$0xff] %v10647_v51  ;;  %10649 = vst [vmem:[#allocation119_spill] sm:$0xff] %v7924_v28  ;;  %v1954_v13 = vmax.f32 %v1953_v19, %v7924_v28  ;;  %v7958_v19 = vld [vmem:[#allocation2 + $0x90] sm:$0xff] }
 0x269   : > { %3702 = vst.msk [vmem:[#allocation2 + $0x70] sm:$0xff] %vm10650_vm8, %v7930_v9  ;;  %vm10651_vm10 = vmmov %vm10650_vm8  ;;  %v8001_v51 = vld [vmem:[#allocation2 + $0xb0] sm:$0xff] }
 0x26a   : > { %2122 = vperm.xlu0 %4684, %v10607_v16   ;;  %10655 = vst [vmem:[#allocation279_spill] sm:$0xff] %v8021_v5 }
 0x26e   : > { %2132 = vperm.xlu0 %4684, %v10608_v61  }
 0x272   : > { %2142 = vperm.xlu0 %4684, %v10609_v52  }
 0x28c   : > { %1950 = vmax.xlane.f32.xlu1 %v1949_v34  ;;  %v1876_v34 = vpop.xlane.xlu0 %1875 }
 0x28d   : > { %v7939_v26 = vmax.f32 %v7936_v55, %v1876_v34  ;;  %v7955_v34 = vld [vmem:[#allocation2 + $0x88] sm:$0xff] }
 0x28f   : > { %3703 = vst.msk [vmem:[#allocation2 + $0x78] sm:$0xff] %vm10651_vm10, %v7939_v26  ;;  %vm10652_vm10 = vmmov %vm10650_vm8 }
 0x290   : > { %v1886_v24 = vpop.xlane.xlu0 %1885 }
 0x291   : > { %1955 = vmax.xlane.f32.xlu0 %v1954_v13  ;;  %v1881_v13 = vpop.xlane.xlu1 %1880  ;;  %v7961_v2 = vmax.f32 %v7955_v34, %v1886_v24  ;;  %v7976_v24 = vld [vmem:[#allocation2 + $0x98] sm:$0xff] }
 0x292   : > { %v7948_v44 = vmax.f32 %v7941_v21, %v1881_v13 }
 0x293   : > { %3705 = vst.msk [vmem:[#allocation2 + $0x88] sm:$0xff] %vm10652_vm10, %v7961_v2  ;;  %vm10653_vm10 = vmmov %vm10650_vm8 }
 0x294   : > { %3704 = vst.msk [vmem:[#allocation2 + $0x80] sm:$0xff] %vm10650_vm8, %v7948_v44  ;;  %v1896_v57 = vpop.xlane.xlu0 %1895 }
 0x295   : > { %v1891_v13 = vpop.xlane.xlu1 %1890 }
 0x296   : > { %v7968_v60 = vmax.f32 %v7958_v19, %v1891_v13  ;;  %v7982_v13 = vmax.f32 %v7976_v24, %v1896_v57 }
 0x298   : > { %3706 = vst.msk [vmem:[#allocation2 + $0x90] sm:$0xff] %vm10650_vm8, %v7968_v60 }
 0x299   : > { %v1901_v6 = vpop.xlane.xlu1 %1900  ;;  %3707 = vst.msk [vmem:[#allocation2 + $0x98] sm:$0xff] %vm10653_vm10, %v7982_v13  ;;  %vm10654_vm10 = vmmov %vm10650_vm8 }
 0x29a   : > { %v7990_v45 = vmax.f32 %v7979_v49, %v1901_v6 }
 0x29c   : > { %3708 = vst.msk [vmem:[#allocation2 + $0xa0] sm:$0xff] %vm10650_vm8, %v7990_v45 }
 0x29d   : > { %2147 = vperm.xlu1 %4685, %v7911_v29  }
 0x2a1   : > { %2157 = vperm.xlu1 %4685, %v7930_v9   ;;  %v1906_v20 = vpop.xlane.xlu0 %1905 }
 0x2a2   : > { %v8004_v6 = vmax.f32 %v7998_v63, %v1906_v20  ;;  %v8019_v20 = vld [vmem:[#allocation2 + $0xb8] sm:$0xff] }
 0x2a4   : > { %v1911_v28 = vpop.xlane.xlu1 %1910  ;;  %3709 = vst.msk [vmem:[#allocation2 + $0xa8] sm:$0xff] %vm10654_vm10, %v8004_v6  ;;  %vm10656_vm10 = vmmov %vm10650_vm8 }
 0x2a5   : > { %2162 = vperm.xlu1 %4685, %v7939_v26   ;;  %v8007_v3 = vmax.f32 %v8001_v51, %v1911_v28 }
 0x2a7   : > { %2152 = vperm.xlu0 %4684, %v7887_v12   ;;  %3710 = vst.msk [vmem:[#allocation2 + $0xb0] sm:$0xff] %vm10650_vm8, %v8007_v3 }
 0x2a9   : > { %2172 = vperm.xlu1 %4685, %v7961_v2  }
 0x2ab   : > { %2167 = vperm.xlu0 %4684, %v7948_v44  }
 0x2ad   : > { %2182 = vperm.xlu1 %4685, %v7982_v13  }
 0x2af   : > { %2177 = vperm.xlu0 %4684, %v7968_v60  }
 0x2b1   : > { %2192 = vperm.xlu1 %4685, %v8004_v6   ;;  %v1916_v28 = vpop.xlane.xlu0 %1915 }
 0x2b2   : > { %v8024_v57 = vmax.f32 %v8019_v20, %v1916_v28  ;;  %v8039_v28 = vld [vmem:[#allocation2 + $0xc8] sm:$0xff] }
 0x2b3   : > { %2187 = vperm.xlu0 %4684, %v7990_v45   ;;  %10658 = vst [vmem:[#allocation281_spill] sm:$0xff] %v8039_v28 }
 0x2b4   : > { %3711 = vst.msk [vmem:[#allocation2 + $0xb8] sm:$0xff] %vm10656_vm10, %v8024_v57  ;;  %vm10661_vm10 = vmmov %vm10650_vm8 }
 0x2b5   : > { %2202 = vperm.xlu1 %4685, %v8024_v57  }
 0x2b7   : > { %2197 = vperm.xlu0 %4684, %v8007_v3   ;;  %v1921_v14 = vpop.xlane.xlu1 %1920 }
 0x2b8   : > { %v8032_v41 = vmax.f32 %v8021_v5, %v1921_v14  ;;  %v10728_v5 = vld [vmem:[#allocation14_spill] sm:$0xff] }
 0x2b9   : > { %vm10729_vm5 = vnez %v10728_v5  ;;  %v10748_v5 = vld [vmem:[#allocation90_spill] sm:$0xff] }
 0x2ba   : > { %10657 = vst [vmem:[#allocation280_spill] sm:$0xff] %v8032_v41  ;;  %3712 = vst.msk [vmem:[#allocation2 + $0xc0] sm:$0xff] %vm10650_vm8, %v8032_v41 }
 0x2bb   : > { %2207 = vperm.xlu0 %4684, %v8032_v41  }
 0x2c0   : > { %v1926_v15 = vpop.xlane.xlu0 %1925 }
 0x2c1   : > { %v8042_v7 = vmax.f32 %v8039_v28, %v1926_v15  ;;  %v8059_v15 = vld [vmem:[#allocation2 + $0xd8] sm:$0xff] }
 0x2c2   : > { %10663 = vst [vmem:[#allocation285_spill] sm:$0xff] %v8059_v15 }
 0x2c3   : > { %10659 = vst [vmem:[#allocation282_spill] sm:$0xff] %v8042_v7  ;;  %3713 = vst.msk [vmem:[#allocation2 + $0xc8] sm:$0xff] %vm10661_vm10, %v8042_v7  ;;  %2212 = vperm.xlu1 %4685, %v8042_v7   ;;  %v10723_v7 = vld [vmem:[#allocation12_spill] sm:$0xff] }
 0x2c4   : > { %vm10667_vm10 = vmmov %vm10650_vm8 }
 0x2c7   : > { %v1931_v48 = vpop.xlane.xlu1 %1930 }
 0x2c8   : > { %v8052_v56 = vmax.f32 %v8044_v17, %v1931_v48  ;;  %v1989_v48 = vsub.f32 %v10666_v39, %v10598_v54  ;;  %v10671_v39 = vld [vmem:[#allocation114_spill] sm:$0xff] }
 0x2c9   : > { %v1992_v54 = vsub.f32 %v10671_v39, %v10603_v46 }
 0x2ca   : > { %10662 = vst [vmem:[#allocation284_spill] sm:$0xff] %v8052_v56  ;;  %3714 = vst.msk [vmem:[#allocation2 + $0xd0] sm:$0xff] %vm10650_vm8, %v8052_v56  ;;  %2217 = vperm.xlu0 %4684, %v8052_v56   ;;  %v2021_v47 = vmul.f32 1.442695, %v1989_v48  ;;  %v1996_v48 = vsub.f32 %v10677_v11, %v10607_v16  ;;  %v10681_v11 = vld [vmem:[#allocation25_spill] sm:$0xff] }
 0x2cb   : > { %v2027_v42 = vmul.f32 1.442695, %v1992_v54  ;;  %v2033_v54 = vmul.f32 1.442695, %v1995_v59 }
 0x2cc   : > { %v1936_v14 = vpop.xlane.xlu0 %1935  ;;  %4718 = vpow2.f32 %v2021_v47 }
 0x2cd   : > { %v8064_v33 = vmax.f32 %v8059_v15, %v1936_v14  ;;  %v10670_v14 = vld [vmem:[#allocation111_spill] sm:$0xff]  ;;  %4720 = vpow2.f32 %v2023_v32 }
 0x2ce   : > { %v1991_v53 = vsub.f32 %v10670_v14, %v10599_v0  ;;  %v10674_v0 = vld [vmem:[#allocation121_spill] sm:$0xff] }
 0x2cf   : > { %10665 = vst [vmem:[#allocation287_spill] sm:$0xff] %v8064_v33  ;;  %3715 = vst.msk [vmem:[#allocation2 + $0xd8] sm:$0xff] %vm10667_vm10, %v8064_v33  ;;  %2222 = vperm.xlu1 %4685, %v8064_v33   ;;  %v1994_v14 = vsub.f32 %v10674_v0, %v10605_v35 }
 0x2d0   : > { %v1941_v40 = vpop.xlane.xlu1 %1940  ;;  %v2025_v39 = vmul.f32 1.442695, %v1991_v53  ;;  %vm10679_vm10 = vmmov %vm10650_vm8 }
 0x2d1   : > { %v8076_v50 = vmax.f32 %v8061_v58, %v1941_v40  ;;  %v10673_v40 = vld [vmem:[#allocation117_spill] sm:$0xff]  ;;  %v2031_v53 = vmul.f32 1.442695, %v1994_v14 }
 0x2d2   : > { %v1993_v38 = vsub.f32 %v10673_v40, %v10600_v30  ;;  %v10678_v30 = vld [vmem:[#allocation128_spill] sm:$0xff]  ;;  %4722 = vpow2.f32 %v2025_v39  ;;  %v2035_v40 = vmul.f32 1.442695, %v1996_v48  ;;  %v10685_v39 = vld [vmem:[#allocation33_spill] sm:$0xff] }
 0x2d3   : > { %10669 = vst [vmem:[#allocation108_spill] sm:$0xff] %v8076_v50  ;;  %3716 = vst.msk [vmem:[#allocation2 + $0xe0] sm:$0xff] %vm10650_vm8, %v8076_v50  ;;  %2227 = vperm.xlu0 %4684, %v8076_v50   ;;  %v1997_v22 = vsub.f32 %v10678_v30, %v10604_v8  ;;  %4724 = vpow2.f32 %v2027_v42  ;;  %v10682_v8 = vld [vmem:[#allocation26_spill] sm:$0xff]  ;;  %v10712_v50 = vld [vmem:[#allocation65_spill] sm:$0xff]  ;;  %vm10724_vm8 = vnez %v10723_v7 }
 0x2d4   : > { %v2088_v10 = vpop.permute.xlu1 %2087  ;;  %v2029_v25 = vmul.f32 1.442695, %v1993_v38 }
 0x2d5   : > { %v1946_v46 = vpop.xlane.xlu0 %1945  ;;  %v2245_v43 = vsub.f32 %v10680_v27, %v2088_v10  ;;  %v2246_v16 = vsub.f32 %v10681_v11, %v2088_v10  ;;  %v2247_v38 = vsub.f32 %v10682_v8, %v2088_v10  ;;  %v2037_v0 = vmul.f32 1.442695, %v1997_v22  ;;  %v10687_v8 = vld [vmem:[#allocation32_spill] sm:$0xff] }
 0x2d6   : > { %v8096_v4 = vmax.f32 %v8087_v37, %v1946_v46  ;;  %4726 = vpow2.f32 %v2029_v25  ;;  %v10683_v46 = vld [vmem:[#allocation28_spill] sm:$0xff] }
 0x2d7   : > { %v2248_v30 = vsub.f32 %v10683_v46, %v2088_v10  ;;  %4728 = vpow2.f32 %v2031_v53  ;;  %v2373_v35 = vmul.f32 1.442695, %v2245_v43  ;;  %v2375_v27 = vmul.f32 1.442695, %v2246_v16  ;;  %v10688_v10 = vld [vmem:[#allocation35_spill] sm:$0xff]  ;;  %v8116_v46 = vpop.eup %4718 }
 0x2d8   : > { %10676 = vst [vmem:[#allocation111_spill] sm:$0xff] %v8096_v4  ;;  %3717 = vst.msk [vmem:[#allocation2 + $0xe8] sm:$0xff] %vm10679_vm10, %v8096_v4  ;;  %2232 = vperm.xlu1 %4685, %v8096_v4   ;;  %v2098_v47 = vpop.permute.xlu1 %2097  ;;  %4730 = vpow2.f32 %v2033_v54  ;;  %v2377_v11 = vmul.f32 1.442695, %v2247_v38 }
 0x2d9   : > { %v2253_v32 = vsub.f32 %v10684_v23, %v2098_v47  ;;  %4732 = vpow2.f32 %v2035_v40  ;;  %v2379_v48 = vmul.f32 1.442695, %v2248_v30  ;;  %10689 = vst [vmem:[#allocation114_spill] sm:$0xff] %v8116_v46  ;;  %v10690_v23 = vld [vmem:[#allocation37_spill] sm:$0xff] }
 0x2da   : > { %4734 = vpow2.f32 %v2037_v0  ;;  %v2254_v54 = vsub.f32 %v10690_v23, %v2098_v47 }
 0x2db   : > { %4736 = vpow2.f32 %v2373_v35  ;;  %v2389_v22 = vmul.f32 1.442695, %v2253_v32  ;;  %v10694_v35 = vld [vmem:[#allocation45_spill] sm:$0xff] }
 0x2dc   : > { %4738 = vpow2.f32 %v2375_v27  ;;  %v2256_v30 = vsub.f32 %v10694_v35, %v2098_v47 }
 0x2dd   : > { %v2093_v14 = vpop.permute.xlu0 %2092  ;;  %4740 = vpow2.f32 %v2377_v11 }
 0x2de   : > { %v2250_v59 = vsub.f32 %v10685_v39, %v2093_v14  ;;  %v2252_v42 = vsub.f32 %v10686_v18, %v2093_v14  ;;  %v2249_v25 = vsub.f32 %v10687_v8, %v2093_v14  ;;  %v2251_v53 = vsub.f32 %v10688_v10, %v2093_v14  ;;  %v8119_v39 = vpop.eup %4720  ;;  %v10692_v18 = vld [vmem:[#allocation51_spill] sm:$0xff]  ;;  %v2108_v14 = vpop.permute.xlu1 %2107  ;;  %v10696_v10 = vld [vmem:[#allocation53_spill] sm:$0xff] }
 0x2df   : > { %10691 = vst [vmem:[#allocation117_spill] sm:$0xff] %v8119_v39  ;;  %v8122_v0 = vpop.eup %4722  ;;  %4742 = vpow2.f32 %v2379_v48  ;;  %v10698_v39 = vld [vmem:[#allocation42_spill] sm:$0xff]  ;;  %v10700_v48 = vld [vmem:[#allocation57_spill] sm:$0xff]  ;;  %v2395_v4 = vmul.f32 1.442695, %v2256_v30  ;;  %v10707_v30 = vld [vmem:[#allocation67_spill] sm:$0xff] }
 0x2e0   : > { %v2383_v16 = vmul.f32 1.442695, %v2250_v59  ;;  %v2387_v40 = vmul.f32 1.442695, %v2252_v42  ;;  %10693 = vst [vmem:[#allocation121_spill] sm:$0xff] %v8122_v0  ;;  %v8125_v8 = vpop.eup %4724  ;;  %4744 = vpow2.f32 %v2389_v22  ;;  %v2255_v11 = vsub.f32 %v10698_v39, %v2098_v47  ;;  %v10702_v22 = vld [vmem:[#allocation50_spill] sm:$0xff] }
 0x2e1   : > { %v2103_v43 = vpop.permute.xlu0 %2102  ;;  %v2381_v32 = vmul.f32 1.442695, %v2249_v25  ;;  %10695 = vst [vmem:[#allocation123_spill] sm:$0xff] %v8125_v8  ;;  %v2385_v27 = vmul.f32 1.442695, %v2251_v53  ;;  %v8128_v59 = vpop.eup %4726  ;;  %v2261_v0 = vsub.f32 %v10700_v48, %v2108_v14 }
 0x2e2   : > { %v2258_v38 = vsub.f32 %v10692_v18, %v2103_v43  ;;  %v2260_v23 = vsub.f32 %v10696_v10, %v2103_v43  ;;  %10697 = vst [vmem:[#allocation126_spill] sm:$0xff] %v8128_v59  ;;  %v2391_v42 = vmul.f32 1.442695, %v2254_v54  ;;  %4746 = vpow2.f32 %v2383_v16  ;;  %v8131_v18 = vpop.eup %4728  ;;  %v10704_v59 = vld [vmem:[#allocation52_spill] sm:$0xff]  ;;  %v8147_v37 = vpop.permute.xlu1 %2117 }
 0x2e3   : > { %10699 = vst [vmem:[#allocation128_spill] sm:$0xff] %v8131_v18  ;;  %4748 = vpow2.f32 %v2387_v40  ;;  %v8134_v25 = vpop.eup %4730  ;;  %v2257_v53 = vsub.f32 %v10702_v22, %v2103_v43  ;;  %v2259_v47 = vsub.f32 %v10704_v59, %v2103_v43  ;;  %v2393_v39 = vmul.f32 1.442695, %v2255_v11  ;;  %v10706_v40 = vld [vmem:[#allocation59_spill] sm:$0xff]  ;;  %v10709_v59 = vld [vmem:[#allocation69_spill] sm:$0xff] }
 0x2e4   : > { %v2399_v35 = vmul.f32 1.442695, %v2258_v38  ;;  %10701 = vst [vmem:[#allocation24_spill] sm:$0xff] %v8134_v25  ;;  %4750 = vpow2.f32 %v2381_v32  ;;  %v8137_v10 = vpop.eup %4732  ;;  %v2403_v54 = vmul.f32 1.442695, %v2260_v23  ;;  %v2262_v48 = vsub.f32 %v10706_v40, %v2108_v14  ;;  %v10708_v25 = vld [vmem:[#allocation61_spill] sm:$0xff] }
 0x2e5   : > { %v2113_v8 = vpop.permute.xlu0 %2112  ;;  %10703 = vst [vmem:[#allocation25_spill] sm:$0xff] %v8137_v10  ;;  %4752 = vpow2.f32 %v2385_v27  ;;  %v8140_v16 = vpop.eup %4734  ;;  %v2405_v18 = vmul.f32 1.442695, %v2261_v0  ;;  %v2264_v10 = vsub.f32 %v10708_v25, %v2108_v14  ;;  %v2397_v27 = vmul.f32 1.442695, %v2257_v53  ;;  %v10710_v40 = vld [vmem:[#allocation60_spill] sm:$0xff] }
 0x2e6   : > { %10705 = vst [vmem:[#allocation26_spill] sm:$0xff] %v8140_v16  ;;  %4754 = vpow2.f32 %v2391_v42  ;;  %v8143_v38 = vpop.eup %4736  ;;  %v2266_v32 = vsub.f32 %v10707_v30, %v2113_v8  ;;  %v2401_v23 = vmul.f32 1.442695, %v2259_v47  ;;  %v2268_v11 = vsub.f32 %v10709_v59, %v2113_v8 }
 0x2e7   : > { %4756 = vpow2.f32 %v2399_v35  ;;  %v4739_v22 = vpop.eup %4738  ;;  %v2263_v0 = vsub.f32 %v10710_v40, %v2108_v14  ;;  %v2407_v35 = vmul.f32 1.442695, %v2262_v48  ;;  %v2411_v46 = vmul.f32 1.442695, %v2264_v10 }
 0x2e8   : > { %4758 = vpow2.f32 %v2395_v4  ;;  %v8149_v43 = vpop.eup %4740  ;;  %v10711_v4 = vld [vmem:[#allocation73_spill] sm:$0xff]  ;;  %v2415_v53 = vmul.f32 1.442695, %v2266_v32  ;;  %v2265_v47 = vsub.f32 %v10712_v50, %v2113_v8  ;;  %v2419_v14 = vmul.f32 1.442695, %v2268_v11  ;;  %v10717_v50 = vld [vmem:[#allocation78_spill] sm:$0xff] }
 0x2e9   : > { %4760 = vpow2.f32 %v2403_v54  ;;  %v4743_v42 = vpop.eup %4742  ;;  %v2269_v25 = vsub.f32 %v10711_v4, %v8147_v37  ;;  %v8158_v54 = vpop.permute.xlu0 %2122  ;;  %v2409_v40 = vmul.f32 1.442695, %v2263_v0  ;;  %v10719_v11 = vld [vmem:[#allocation16_spill] sm:$0xff]  ;;  %v10721_v0 = vld [vmem:[#allocation22_spill] sm:$0xff] }
 0x2ea   : > { %4762 = vpow2.f32 %v2393_v39  ;;  %v8153_v16 = vpop.eup %4744  ;;  %v10713_v39 = vld [vmem:[#allocation68_spill] sm:$0xff]  ;;  %vm10720_vm10 = vnez %v10719_v11  ;;  %vm10722_vm1 = vnez %v10721_v0 }
 0x2eb   : > { %4764 = vpow2.f32 %v2405_v18  ;;  %v2267_v58 = vsub.f32 %v10713_v39, %v2113_v8  ;;  %v10714_v18 = vld [vmem:[#allocation74_spill] sm:$0xff]  ;;  %v2421_v15 = vmul.f32 1.442695, %v2269_v25  ;;  %v2413_v39 = vmul.f32 1.442695, %v2265_v47  ;;  %vm10734_vm14 = vmpackc.low %vm10722_vm1, %vm10720_vm10 }
 0x2ec   : > { %v4747_v30 = vpop.eup %4746  ;;  %4766 = vpow2.f32 %v2397_v27  ;;  %v2270_v33 = vsub.f32 %v10714_v18, %v8147_v37  ;;  %v2272_v27 = vsub.f32 %v10717_v50, %v8147_v37  ;;  %v10718_v8 = vld [vmem:[#allocation82_spill] sm:$0xff]  ;;  %v8175_v18 = vpop.permute.xlu1 %2127  ;;  %v10725_v50 = vld [vmem:[#allocation17_spill] sm:$0xff] }
 0x2ed   : > { %v4749_v59 = vpop.eup %4748  ;;  %4768 = vpow2.f32 %v2401_v23  ;;  %v2274_v23 = vsub.f32 %v10718_v8, %v8158_v54  ;;  %v4189_v56 = vpack.c.bf16 %v4747_v30, %v4739_v22  ;;  %vm10726_vm13 = vnez %v10725_v50  ;;  %v10727_v8 = vld [vmem:[#allocation84_spill] sm:$0xff]  ;;  %v10749_v50 = vld [vmem:[#allocation94_spill] sm:$0xff] }
 0x2ee   : > { %v4751_v48 = vpop.eup %4750  ;;  %4770 = vpow2.f32 %v2407_v35  ;;  %v4285_v17 = vpack.c.bf16 %v4749_v59, %v4743_v42  ;;  %v2276_v28 = vsub.f32 %v10727_v8, %v8158_v54  ;;  %v10732_v42 = vld [vmem:[#allocation76_spill] sm:$0xff]  ;;  %v2423_v47 = vmul.f32 1.442695, %v2270_v33  ;;  %v10737_v59 = vld [vmem:[#allocation30_spill] sm:$0xff]  ;;  %vm10740_vm11 = vmpackc.low %vm10726_vm13, %vm10724_vm8 }
 0x2ef   : > { %v4753_v10 = vpop.eup %4752  ;;  %4772 = vpow2.f32 %v2415_v53  ;;  %v2417_v53 = vmul.f32 1.442695, %v2267_v58  ;;  %v4192_v41 = vpack.c.bf16 %v4751_v48, %v8143_v38  ;;  %v2271_v30 = vsub.f32 %v10732_v42, %v8147_v37  ;;  %4190 = vmatprep.mubr.msk.bf16.mxu0 %vm10733_vm3, %v4189_v56  ;;  %v10735_v38 = vld [vmem:[#allocation21_spill] sm:$0xff]  ;;  %v10739_v33 = vld [vmem:[#allocation88_spill] sm:$0xff] }
 0x2f0   : > { %v4755_v35 = vpop.eup %4754  ;;  %4774 = vpow2.f32 %v2411_v46  ;;  %v10730_v46 = vld [vmem:[#allocation19_spill] sm:$0xff]  ;;  %4286 = vmatprep.mubr.msk.bf16.mxu1 %vm10734_vm14, %v4285_v17  ;;  %v4288_v58 = vpack.c.bf16 %v4753_v10, %v8149_v43  ;;  %vm10736_vm2 = vnez %v10735_v38  ;;  %vm10738_vm12 = vnez %v10737_v59  ;;  %v10743_v43 = vld [vmem:[#allocation34_spill] sm:$0xff]  ;;  %v8218_v10 = vpop.permute.xlu0 %2132  ;;  %v10752_v8 = vld [vmem:[#allocation29_spill] sm:$0xff] }
 0x2f1   : > { %v4757_v25 = vpop.eup %4756  ;;  %4776 = vpow2.f32 %v2419_v14  ;;  %vm10731_vm6 = vnez %v10730_v46  ;;  %vm4194_vm9 = vmpackc.low %vm10738_vm12, %vm10736_vm2  ;;  %v2277_v14 = vsub.f32 %v10739_v33, %v8175_v18  ;;  %v2431_v48 = vmul.f32 1.442695, %v2274_v23  ;;  %4193 = vmatmul.mubr.msk.bf16.vlgmr.msra.gmra.mrb[0].mxu0 %vm10740_vm11, %v4192_v41  ;;  %v10741_v17 = vld [vmem:[#allocation27_spill] sm:$0xff] }
 0x2f2   : > { %v4759_v22 = vpop.eup %4758  ;;  %4778 = vpow2.f32 %v2409_v40  ;;  %v4195_v56 = vpack.c.bf16 %v4757_v25, %v4755_v35  ;;  %vm10742_vm15 = vnez %v10741_v17  ;;  %vm10744_vm1 = vnez %v10743_v43  ;;  %vm10746_vm13 = vmpackc.low %vm10731_vm6, %vm10729_vm5  ;;  %v10747_v23 = vld [vmem:[#allocation83_spill] sm:$0xff]  ;;  %v10761_v17 = vld [vmem:[#allocation40_spill] sm:$0xff] }
 0x2f3   : > { %v4761_v37 = vpop.eup %4760  ;;  %4780 = vpow2.f32 %v2421_v15  ;;  %vm4290_vm3 = vmpackc.low %vm10744_vm1, %vm10742_vm15  ;;  %v2427_v4 = vmul.f32 1.442695, %v2272_v27  ;;  %v10745_v15 = vld [vmem:[#allocation81_spill] sm:$0xff]  ;;  %4289 = vmatmul.mubr.msk.bf16.vlgmr.msra.gmra.mrb[0].mxu1 %vm10746_vm13, %v4288_v58  ;;  %v2275_v11 = vsub.f32 %v10747_v23, %v8158_v54  ;;  %v2435_v27 = vmul.f32 1.442695, %v2276_v28  ;;  %v10756_v38 = vld [vmem:[#allocation23_spill] sm:$0xff] }
 0x2f4   : > { %v4763_v40 = vpop.eup %4762  ;;  %4782 = vpow2.f32 %v2413_v39  ;;  %v2273_v32 = vsub.f32 %v10745_v15, %v8158_v54  ;;  %v4291_v41 = vpack.c.bf16 %v4761_v37, %v4759_v22  ;;  %4196 = vmatprep.mubr.msk.bf16.mxu0 %vm4194_vm9, %v4195_v56  ;;  %v2425_v35 = vmul.f32 1.442695, %v2271_v30  ;;  %v10754_v22 = vld [vmem:[#allocation91_spill] sm:$0xff]  ;;  %v8262_v15 = vpop.permute.xlu0 %2142 }
 0x2f5   : > { %v8225_v7 = vpop.eup %4764  ;;  %4784 = vpow2.f32 %v2417_v53  ;;  %v2278_v39 = vsub.f32 %v10748_v5, %v8175_v18  ;;  %v2437_v28 = vmul.f32 1.442695, %v2277_v14  ;;  %v2282_v25 = vsub.f32 %v10749_v50, %v8218_v10  ;;  %v10750_v53 = vld [vmem:[#allocation20_spill] sm:$0xff]  ;;  %v10755_v30 = vld [vmem:[#allocation95_spill] sm:$0xff]  ;;  %v10760_v14 = vld [vmem:[#allocation97_spill] sm:$0xff] }
 0x2f6   : > { %v4767_v0 = vpop.eup %4766  ;;  %4786 = vpow2.f32 %v2423_v47  ;;  %4292 = vmatprep.mubr.msk.bf16.mxu1 %vm4290_vm3, %v4291_v41  ;;  %vm10751_vm5 = vnez %v10750_v53  ;;  %vm10753_vm6 = vnez %v10752_v8  ;;  %v2279_v42 = vsub.f32 %v10754_v22, %v8175_v18  ;;  %v10758_v59 = vld [vmem:[#allocation31_spill] sm:$0xff] }
 0x2f7   : > { %v4769_v54 = vpop.eup %4768  ;;  %4788 = vpow2.f32 %v2431_v48  ;;  %vm4197_vm2 = vmpackc.low %vm10753_vm6, %vm10751_vm5  ;;  %v2280_v47 = vsub.f32 %v10755_v30, %v8175_v18  ;;  %v2429_v58 = vmul.f32 1.442695, %v2273_v32  ;;  %vm10757_vm12 = vnez %v10756_v38  ;;  %v10763_v43 = vld [vmem:[#allocation47_spill] sm:$0xff]  ;;  %v10773_v38 = vld [vmem:[#allocation46_spill] sm:$0xff] }
 0x2f8   : > { %v4771_v46 = vpop.eup %4770  ;;  %4790 = vpow2.f32 %v2427_v4  ;;  %vm10759_vm9 = vnez %v10758_v59  ;;  %v2433_v33 = vmul.f32 1.442695, %v2275_v11  ;;  %v2284_v48 = vsub.f32 %v10760_v14, %v8218_v10  ;;  %v10765_v11 = vld [vmem:[#allocation92_spill] sm:$0xff]  ;;  %v10771_v8 = vld [vmem:[#allocation103_spill] sm:$0xff] }
 0x2f9   : > { %vm4293_vm14 = vmpackc.low %vm10759_vm9, %vm10757_vm12  ;;  %v4773_v37 = vpop.eup %4772  ;;  %4792 = vpow2.f32 %v2435_v27  ;;  %v4198_v56 = vpack.c.bf16 %v4767_v0, %v8153_v16  ;;  %vm10762_vm8 = vnez %v10761_v17  ;;  %vm10764_vm10 = vnez %v10763_v43  ;;  %v10766_v16 = vld [vmem:[#allocation43_spill] sm:$0xff]  ;;  %v10768_v0 = vld [vmem:[#allocation49_spill] sm:$0xff] }
 0x2fa   : > { %vm4200_vm11 = vmpackc.low %vm10764_vm10, %vm10762_vm8  ;;  %v4775_v18 = vpop.eup %4774  ;;  %4794 = vpow2.f32 %v2425_v35  ;;  %v2439_v4 = vmul.f32 1.442695, %v2278_v39  ;;  %v4294_v32 = vpack.c.bf16 %v4769_v54, %v4763_v40  ;;  %v4201_v41 = vpack.c.bf16 %v4773_v37, %v4771_v46  ;;  %v8275_v39 = vpop.permute.xlu1 %2137  ;;  %v10770_v54 = vld [vmem:[#allocation96_spill] sm:$0xff]  ;;  %v10772_v30 = vld [vmem:[#allocation107_spill] sm:$0xff] }
 0x2fb   : > { %v4777_v23 = vpop.eup %4776  ;;  %4796 = vpow2.f32 %v2437_v28  ;;  %v2281_v27 = vsub.f32 %v10765_v11, %v8218_v10  ;;  %v2447_v5 = vmul.f32 1.442695, %v2282_v25  ;;  %4199 = vmatmul.mubr.msk.bf16.gmra.mrb[4].mxu0 %vm4197_vm2, %v4198_v56  ;;  %vm10767_vm15 = vnez %v10766_v16  ;;  %v10776_v14 = vld [vmem:[#allocation44_spill] sm:$0xff]  ;;  %v10785_v16 = vld [vmem:[#allocation55_spill] sm:$0xff] }
 0x2fc   : > { %vm10769_vm1 = vnez %v10768_v0  ;;  %v4779_v35 = vpop.eup %4778  ;;  %v2443_v40 = vmul.f32 1.442695, %v2280_v47  ;;  %4798 = vpow2.f32 %v2429_v58  ;;  %v2283_v28 = vsub.f32 %v10770_v54, %v8218_v10  ;;  %4295 = vmatmul.mubr.msk.bf16.gmra.mrb[4].mxu1 %vm4293_vm14, %v4294_v32  ;;  %4202 = vmatprep.mubr.msk.bf16.mxu0 %vm4200_vm11, %v4201_v41  ;;  %v10779_v17 = vld [vmem:[#allocation104_spill] sm:$0xff] }
 0x2fd   : > { %vm4296_vm3 = vmpackc.low %vm10769_vm1, %vm10767_vm15  ;;  %v4297_v50 = vpack.c.bf16 %v4777_v23, %v4775_v18  ;;  %v8289_v25 = vpop.eup %4780  ;;  %4800 = vpow2.f32 %v2433_v33  ;;  %v2451_v53 = vmul.f32 1.442695, %v2284_v48  ;;  %v2290_v10 = vsub.f32 %v10771_v8, %v8262_v15  ;;  %v10774_v33 = vld [vmem:[#allocation38_spill] sm:$0xff]  ;;  %v10778_v48 = vld [vmem:[#allocation129_spill] sm:$0xff] }
 0x2fe   : > { %v4783_v46 = vpop.eup %4782  ;;  %4802 = vpow2.f32 %v2439_v4  ;;  %v2441_v22 = vmul.f32 1.442695, %v2279_v42  ;;  %v2292_v47 = vsub.f32 %v10772_v30, %v8262_v15  ;;  %v2286_v59 = vsub.f32 %v10773_v38, %v8275_v39  ;;  %v10780_v4 = vld [vmem:[#allocation41_spill] sm:$0xff]  ;;  %v10782_v32 = vld [vmem:[#allocation48_spill] sm:$0xff]  ;;  %v10789_v8 = vld [vmem:[#allocation134_spill] sm:$0xff] }
 0x2ff   : > { %4298 = vmatprep.mubr.msk.bf16.mxu1 %vm4296_vm3, %v4297_v50  ;;  %v4785_v58 = vpop.eup %4784  ;;  %v2445_v37 = vmul.f32 1.442695, %v2281_v27  ;;  %4804 = vpow2.f32 %v2447_v5  ;;  %vm10775_vm13 = vnez %v10774_v33  ;;  %vm10777_vm5 = vnez %v10776_v14  ;;  %v10784_v23 = vld [vmem:[#allocation132_spill] sm:$0xff]  ;;  %v10796_v14 = vld [vmem:[#allocation98_spill] sm:$0xff] }
 0x300   : > { %vm4203_vm6 = vmpackc.low %vm10777_vm5, %vm10775_vm13  ;;  %v4787_v42 = vpop.eup %4786  ;;  %v1998_v56 = vsub.f32 %v10778_v48, %v10608_v61  ;;  %4806 = vpow2.f32 %v2443_v40  ;;  %v2288_v43 = vsub.f32 %v10779_v17, %v8275_v39  ;;  %v2449_v18 = vmul.f32 1.442695, %v2283_v28  ;;  %v10787_v61 = vld [vmem:[#allocation63_spill] sm:$0xff] }
 0x301   : > { %vm10781_vm2 = vnez %v10780_v4  ;;  %vm10783_vm12 = vnez %v10782_v32  ;;  %v4789_v41 = vpop.eup %4788  ;;  %v1999_v11 = vsub.f32 %v10784_v23, %v10606_v62  ;;  %4808 = vpow2.f32 %v2451_v53  ;;  %v10790_v62 = vld [vmem:[#allocation58_spill] sm:$0xff]  ;;  %v10804_v23 = vld [vmem:[#allocation64_spill] sm:$0xff] }
 0x302   : > { %vm4299_vm9 = vmpackc.low %vm10783_vm12, %vm10781_vm2  ;;  %v2463_v27 = vmul.f32 1.442695, %v2290_v10  ;;  %v4204_v5 = vpack.c.bf16 %v4783_v46, %v8225_v7  ;;  %vm10786_vm14 = vnez %v10785_v16  ;;  %vm10788_vm8 = vnez %v10787_v61  ;;  %v4791_v0 = vpop.eup %4790  ;;  %v10792_v7 = vld [vmem:[#allocation66_spill] sm:$0xff]  ;;  %v10808_v16 = vld [vmem:[#allocation77_spill] sm:$0xff] }
 0x303   : > { %vm4206_vm10 = vmpackc.low %vm10788_vm8, %vm10786_vm14  ;;  %4810 = vpow2.f32 %v2441_v22  ;;  %v2467_v40 = vmul.f32 1.442695, %v2292_v47  ;;  %v4300_v54 = vpack.c.bf16 %v4785_v58, %v4779_v35  ;;  %v4207_v28 = vpack.c.bf16 %v4789_v41, %v4787_v42  ;;  %v4793_v50 = vpop.eup %4792  ;;  %v10794_v10 = vld [vmem:[#allocation102_spill] sm:$0xff]  ;;  %v10802_v41 = vld [vmem:[#allocation56_spill] sm:$0xff] }
 0x304   : > { %v2000_v30 = vsub.f32 %v10789_v8, %v10609_v52  ;;  %v2455_v38 = vmul.f32 1.442695, %v2286_v59  ;;  %4812 = vpow2.f32 %v2445_v37  ;;  %4205 = vmatmul.mubr.msk.bf16.gmra.mrb[8].mxu0 %vm4203_vm6, %v4204_v5  ;;  %vm10791_vm11 = vnez %v10790_v62  ;;  %v4795_v53 = vpop.eup %4794  ;;  %v10795_v58 = vld [vmem:[#allocation106_spill] sm:$0xff]  ;;  %v10812_v8 = vld [vmem:[#allocation85_spill] sm:$0xff] }
 0x305   : > { %vm10793_vm15 = vnez %v10792_v7  ;;  %v2459_v35 = vmul.f32 1.442695, %v2288_v43  ;;  %4814 = vpow2.f32 %v2449_v18  ;;  %v2289_v46 = vsub.f32 %v10794_v10, %v8262_v15  ;;  %4301 = vmatmul.mubr.msk.bf16.gmra.mrb[8].mxu1 %vm4299_vm9, %v4300_v54  ;;  %4208 = vmatprep.mubr.msk.bf16.mxu0 %vm4206_vm10, %v4207_v28  ;;  %v8344_v22 = vpop.eup %4796  ;;  %v10800_v18 = vld [vmem:[#allocation62_spill] sm:$0xff] }
 0x306   : > { %vm4302_vm1 = vmpackc.low %vm10793_vm15, %vm10791_vm11  ;;  %v4303_v52 = vpack.c.bf16 %v4793_v50, %v4791_v0  ;;  %v2039_v47 = vmul.f32 1.442695, %v1998_v56  ;;  %v2291_v59 = vsub.f32 %v10795_v58, %v8262_v15  ;;  %4816 = vpow2.f32 %v2463_v27  ;;  %v4799_v37 = vpop.eup %4798  ;;  %v10797_v56 = vld [vmem:[#allocation100_spill] sm:$0xff]  ;;  %v10798_v15 = vld [vmem:[#allocation54_spill] sm:$0xff] }
 0x307   : > { %v2041_v33 = vmul.f32 1.442695, %v1999_v11  ;;  %v2285_v42 = vsub.f32 %v10796_v14, %v8275_v39  ;;  %4818 = vpow2.f32 %v2467_v40  ;;  %v4801_v48 = vpop.eup %4800  ;;  %v2043_v17 = vmul.f32 1.442695, %v2000_v30 }
 0x308   : > { %4304 = vmatprep.mubr.msk.bf16.mxu1 %vm4302_vm1, %v4303_v52  ;;  %v2287_v43 = vsub.f32 %v10797_v56, %v8275_v39  ;;  %4820 = vpow2.f32 %v2455_v38  ;;  %vm10799_vm3 = vnez %v10798_v15  ;;  %vm10801_vm13 = vnez %v10800_v18  ;;  %v4803_v4 = vpop.eup %4802  ;;  %v10806_v39 = vld [vmem:[#allocation71_spill] sm:$0xff]  ;;  %v10833_v18 = vld [vmem:[#allocation93_spill] sm:$0xff] }
 0x309   : > { %vm4209_vm5 = vmpackc.low %vm10801_vm13, %vm10799_vm3  ;;  %4822 = vpow2.f32 %v2459_v35  ;;  %v2461_v32 = vmul.f32 1.442695, %v2289_v46  ;;  %vm10803_vm6 = vnez %v10802_v41  ;;  %vm10805_vm2 = vnez %v10804_v23  ;;  %v4805_v11 = vpop.eup %4804 }
 0x30a   : > { %vm4305_vm12 = vmpackc.low %vm10805_vm2, %vm10803_vm6  ;;  %4824 = vpow2.f32 %v2039_v47  ;;  %v2465_v27 = vmul.f32 1.442695, %v2291_v59  ;;  %v4210_v5 = vpack.c.bf16 %v4799_v37, %v8289_v25  ;;  %vm10807_vm9 = vnez %v10806_v39  ;;  %v4807_v61 = vpop.eup %4806  ;;  %v10810_v25 = vld [vmem:[#allocation79_spill] sm:$0xff]  ;;  %v10818_v59 = vld [vmem:[#allocation70_spill] sm:$0xff] }
 0x30b   : > { %vm10809_vm14 = vnez %v10808_v16  ;;  %4826 = vpow2.f32 %v2041_v33  ;;  %v2453_v0 = vmul.f32 1.442695, %v2285_v42  ;;  %v4306_v40 = vpack.c.bf16 %v4801_v48, %v4795_v53  ;;  %v4809_v28 = vpop.eup %4808  ;;  %v10820_v37 = vld [vmem:[#allocation75_spill] sm:$0xff]  ;;  %v10825_v33 = vld [vmem:[#allocation80_spill] sm:$0xff] }
 0x30c   : > { %vm4212_vm8 = vmpackc.low %vm10809_vm14, %vm10807_vm9  ;;  %v4213_v54 = vpack.c.bf16 %v4805_v11, %v4803_v4  ;;  %4828 = vpow2.f32 %v2043_v17  ;;  %v2457_v50 = vmul.f32 1.442695, %v2287_v43  ;;  %4211 = vmatmul.mubr.msk.bf16.gmra.mrb[12].mxu0 %vm4209_vm5, %v4210_v5  ;;  %vm10811_vm10 = vnez %v10810_v25  ;;  %v10828_v48 = vld [vmem:[#allocation87_spill] sm:$0xff]  ;;  %v10835_v4 = vld [vmem:[#allocation105_spill] sm:$0xff] }
 0x30d   : > { %vm10813_vm11 = vnez %v10812_v8  ;;  %v4811_v30 = vpop.eup %4810  ;;  %v10814_v38 = vsub.f32 %v7867_v1, %v7887_v12  ;;  %4830 = vpow2.f32 %v2461_v32  ;;  %4307 = vmatmul.mubr.msk.bf16.gmra.mrb[12].mxu1 %vm4305_vm12, %v4306_v40  ;;  %v4309_v7 = vpack.c.bf16 %v4809_v28, %v4807_v61  ;;  %v10830_v17 = vld [vmem:[#allocation99_spill] sm:$0xff] }
 0x30e   : > { %vm4308_vm15 = vmpackc.low %vm10813_vm11, %vm10811_vm10  ;;  %4214 = vmatprep.mubr.msk.bf16.mxu0 %vm4212_vm8, %v4213_v54  ;;  %v4813_v53 = vpop.eup %4812  ;;  %v10815_v35 = vsub.f32 %v7895_v31, %v7911_v29  ;;  %4832 = vpow2.f32 %v2465_v27  ;;  %v10816_v1 = vsub.f32 %v7926_v36, %v7930_v9  ;;  %v10817_v47 = vsub.f32 %v7936_v55, %v7939_v26  ;;  %v10823_v9 = vld [vmem:[#allocation72_spill] sm:$0xff]  ;;  %v10847_v25 = vld [vmem:[#allocation15_spill] sm:$0xff] }
 0x30f   : > { %v2047_v62 = vmul.f32 1.442695, %v10814_v38  ;;  %v4815_v46 = vpop.eup %4814  ;;  %4834 = vpow2.f32 %v2453_v0  ;;  %4310 = vmatprep.mubr.msk.bf16.mxu1 %vm4308_vm15, %v4309_v7  ;;  %vm10819_vm1 = vnez %v10818_v59  ;;  %vm10821_vm3 = vnez %v10820_v37  ;;  %v10855_v7 = vld [vmem:[#allocation101_spill] sm:$0xff] }
 0x310   : > { %v2045_v10 = vmul.f32 1.442695, %v10815_v35  ;;  %v2049_v12 = vmul.f32 1.442695, %v10816_v1  ;;  %v4817_v52 = vpop.eup %4816  ;;  %v2051_v58 = vmul.f32 1.442695, %v10817_v47  ;;  %4836 = vpow2.f32 %v2457_v50  ;;  %vm4215_vm13 = vmpackc.low %vm10821_vm3, %vm10819_vm1 }
 0x311   : > { %v4819_v31 = vpop.eup %4818  ;;  %4838 = vpow2.f32 %v2047_v62  ;;  %v10822_v29 = vsub.f32 %v7941_v21, %v7948_v44  ;;  %vm10824_vm5 = vnez %v10823_v9  ;;  %vm10826_vm6 = vnez %v10825_v33  ;;  %v10845_v50 = vld [vmem:[#allocation86_spill] sm:$0xff]  ;;  %v10853_v62 = vld [vmem:[#allocation89_spill] sm:$0xff] }
 0x312   : > { %vm4311_vm2 = vmpackc.low %vm10826_vm6, %vm10824_vm5  ;;  %v4821_v14 = vpop.eup %4820  ;;  %4840 = vpow2.f32 %v2045_v10  ;;  %v10827_v55 = vsub.f32 %v7955_v34, %v7961_v2  ;;  %v4216_v42 = vpack.c.bf16 %v4813_v53, %v8344_v22  ;;  %vm10829_vm12 = vnez %v10828_v48  ;;  %v10857_v10 = vld [vmem:[#allocation283_spill] sm:$0xff] }
 0x313   : > { %v2053_v36 = vmul.f32 1.442695, %v10822_v29  ;;  %vm10831_vm9 = vnez %v10830_v17  ;;  %v4823_v21 = vpop.eup %4822  ;;  %4842 = vpow2.f32 %v2049_v12  ;;  %v10832_v44 = vsub.f32 %v7958_v19, %v7968_v60  ;;  %v8432_v19 = vld [vmem:[#allocation2 + $0xf0] sm:$0xff]  ;;  %v10862_v29 = vld [vmem:[#allocation287_spill] sm:$0xff]  ;;  %v10867_v17 = vld [vmem:[#allocation114_spill] sm:$0xff] }
 0x314   : > { %v2055_v26 = vmul.f32 1.442695, %v10827_v55  ;;  %vm4218_vm14 = vmpackc.low %vm10831_vm9, %vm10829_vm12  ;;  %v4312_v43 = vpack.c.bf16 %v4815_v46, %v4811_v30  ;;  %v4219_v15 = vpack.c.bf16 %v4817_v52, %v4821_v14  ;;  %vm10834_vm8 = vnez %v10833_v18  ;;  %v8422_v2 = vpop.eup %4824  ;;  %4217 = vmatmul.mubr.msk.bf16.gmra.mrb[16].mxu0 %vm4215_vm13, %v4216_v42  ;;  %v10858_v46 = vld [vmem:[#allocation284_spill] sm:$0xff]  ;;  %v10864_v55 = vld [vmem:[#allocation286_spill] sm:$0xff] }
 0x315   : > { %v2057_v56 = vmul.f32 1.442695, %v10832_v44  ;;  %vm10836_vm10 = vnez %v10835_v4  ;;  %4844 = vpow2.f32 %v2051_v58  ;;  %v10837_v34 = vsub.f32 %v7976_v24, %v7982_v13  ;;  %v8434_v32 = vpop.eup %4826  ;;  %v10860_v58 = vld [vmem:[#allocation151_spill] sm:$0xff] }
 0x316   : > { %vm4314_vm11 = vmpackc.low %vm10836_vm10, %vm10834_vm8  ;;  %v4315_v60 = vpack.c.bf16 %v4819_v31, %v4823_v21  ;;  %4846 = vpow2.f32 %v2053_v36  ;;  %v10838_v41 = vsub.f32 %v7979_v49, %v7990_v45  ;;  %4313 = vmatmul.mubr.msk.bf16.gmra.mrb[16].mxu1 %vm4311_vm2, %v4312_v43  ;;  %4220 = vmatprep.mubr.msk.bf16.mxu0 %vm4218_vm14, %v4219_v15  ;;  %v8449_v24 = vpop.eup %4828  ;;  %v10839_v13 = vsub.f32 %v7998_v63, %v8004_v6  ;;  %v10842_v63 = vld [vmem:[#allocation279_spill] sm:$0xff]  ;;  %v10843_v6 = vld [vmem:[#allocation280_spill] sm:$0xff] }
 0x317   : > { %v2059_v22 = vmul.f32 1.442695, %v10837_v34  ;;  %4848 = vpow2.f32 %v2055_v26  ;;  %v4831_v11 = vpop.eup %4830  ;;  %v10840_v27 = vsub.f32 %v8001_v51, %v8007_v3  ;;  %v10841_v61 = vsub.f32 %v8019_v20, %v8024_v57  ;;  %v8473_v3 = vld [vmem:[#allocation2 + $0xf8] sm:$0xff]  ;;  %v10850_v57 = vld [vmem:[#allocation281_spill] sm:$0xff]  ;;  %v10865_v26 = vld [vmem:[#allocation108_spill] sm:$0xff] }
 0x318   : > { %v2061_v23 = vmul.f32 1.442695, %v10838_v41  ;;  %v2063_v45 = vmul.f32 1.442695, %v10839_v13  ;;  %4316 = vmatprep.mubr.msk.bf16.mxu1 %vm4314_vm11, %v4315_v60  ;;  %4850 = vpow2.f32 %v2057_v56  ;;  %v4833_v16 = vpop.eup %4832  ;;  %v10844_v54 = vsub.f32 %v10842_v63, %v10843_v6  ;;  %v10851_v20 = vld [vmem:[#allocation282_spill] sm:$0xff]  ;;  %v10861_v31 = vld [vmem:[#allocation285_spill] sm:$0xff] }
 0x319   : > { %v1951_v49 = vpop.xlane.xlu1 %1950  ;;  %v2065_v5 = vmul.f32 1.442695, %v10840_v27  ;;  %4852 = vpow2.f32 %v2059_v22  ;;  %v2067_v0 = vmul.f32 1.442695, %v10841_v61  ;;  %v4835_v40 = vpop.eup %4834  ;;  %vm10846_vm15 = vnez %v10845_v50  ;;  %v10868_v21 = vld [vmem:[#allocation152_spill] sm:$0xff]  ;;  %v10869_v43 = vld [vmem:[#allocation110_spill] sm:$0xff] }
 0x31a   : > { %v8458_v39 = vmax.f32 %v8432_v19, %v1951_v49  ;;  %4854 = vpow2.f32 %v2061_v23  ;;  %v2069_v28 = vmul.f32 1.442695, %v10844_v54  ;;  %vm10848_vm1 = vnez %v10847_v25  ;;  %v4837_v51 = vpop.eup %4836  ;;  %v10870_v15 = vld [vmem:[#allocation111_spill] sm:$0xff]  ;;  %v10873_v34 = vld [vmem:[#allocation156_spill] sm:$0xff]  ;;  %v10874_v41 = vld [vmem:[#allocation157_spill] sm:$0xff] }
 0x31b   : > { %vm4221_vm3 = vmpackc.low %vm10848_vm1, %vm10846_vm15  ;;  %vm10849_vm13 = vcmask 7168   ;;  %4856 = vpow2.f32 %v2063_v45  ;;  %v10852_v8 = vsub.f32 %v10850_v57, %v10851_v20  ;;  %v4222_v38 = vpack.c.bf16 %v4831_v11, %v4835_v40  ;;  %v8482_v35 = vpop.eup %4838  ;;  %v10875_v27 = vld [vmem:[#allocation121_spill] sm:$0xff]  ;;  %v10879_v20 = vld [vmem:[#allocation148_spill] sm:$0xff] }
 0x31c   : > { %3718 = vst.msk [vmem:[#allocation2 + $0xf0] sm:$0xff] %vm10849_vm13, %v8458_v39  ;;  %2237 = vperm.xlu0 %4684, %v8458_v39   ;;  %vm10854_vm5 = vnez %v10853_v62  ;;  %vm10856_vm6 = vnez %v10855_v7  ;;  %4858 = vpow2.f32 %v2065_v5  ;;  %v10859_v1 = vsub.f32 %v10857_v10, %v10858_v46  ;;  %v8488_v37 = vpop.eup %4840  ;;  %vm10872_vm12 = vmmov %vm10849_vm13  ;;  %v10876_v61 = vld [vmem:[#allocation117_spill] sm:$0xff]  ;;  %v10883_v46 = vld [vmem:[#allocation123_spill] sm:$0xff] }
 0x31d   : > { %v2071_v30 = vmul.f32 1.442695, %v10852_v8  ;;  %vm4317_vm2 = vmpackc.low %vm10856_vm6, %vm10854_vm5  ;;  %v2148_v53 = vpop.permute.xlu1 %2147  ;;  %v4318_v52 = vpack.c.bf16 %v4833_v16, %v4837_v51  ;;  %4860 = vpow2.f32 %v2067_v0  ;;  %v10863_v36 = vsub.f32 %v10861_v31, %v10862_v29  ;;  %4223 = vmatmul.mubr.msk.bf16.gmra.mrb[20].mxu0 %vm4221_vm3, %v4222_v38  ;;  %v8499_v14 = vpop.eup %4842  ;;  %v10877_v50 = vld [vmem:[#allocation145_spill] sm:$0xff]  ;;  %v10878_v51 = vld [vmem:[#allocation146_spill] sm:$0xff] }
 0x31e   : > { %v2073_v12 = vmul.f32 1.442695, %v10859_v1  ;;  %v1956_v47 = vpop.xlane.xlu0 %1955  ;;  %v2293_v59 = vsub.f32 %v10860_v58, %v2148_v53  ;;  %4862 = vpow2.f32 %v2069_v28  ;;  %v10866_v42 = vsub.f32 %v10864_v55, %v10865_v26 }
 0x31f   : > { %v2075_v9 = vmul.f32 1.442695, %v10863_v36  ;;  %v1988_v33 = vmax.f32 %v8473_v3, %v1956_v47  ;;  %4319 = vmatmul.mubr.msk.bf16.gmra.mrb[20].mxu1 %vm4317_vm2, %v4318_v52  ;;  %v2294_v44 = vsub.f32 %v10868_v21, %v2148_v53  ;;  %v8511_v56 = vpop.eup %4844  ;;  %4864 = vpow2.f32 %v2071_v30  ;;  %v10880_v30 = vld [vmem:[#allocation150_spill] sm:$0xff] }
 0x320   : > { %v2077_v48 = vmul.f32 1.442695, %v10866_v42  ;;  %2791 = vperm.xlu0 %4684, %v10867_v17   ;;  %v10871_v18 = vsub.f32 %v10869_v43, %v10870_v15  ;;  %v2295_v22 = vsub.f32 %v10873_v34, %v2148_v53  ;;  %v8518_v60 = vpop.eup %4846  ;;  %4866 = vpow2.f32 %v2073_v12  ;;  %v10886_v42 = vld [vmem:[#allocation24_spill] sm:$0xff]  ;;  %v10887_v17 = vld [vmem:[#allocation169_spill] sm:$0xff] }
 0x321   : > { %3719 = vst.msk [vmem:[#allocation2 + $0xf8] sm:$0xff] %vm10872_vm12, %v1988_v33  ;;  %2242 = vperm.xlu1 %4685, %v1988_v33   ;;  %v2296_v23 = vsub.f32 %v10874_v41, %v2148_v53  ;;  %v2469_v13 = vmul.f32 1.442695, %v2293_v59  ;;  %v8521_v45 = vpop.eup %4848  ;;  %4868 = vpow2.f32 %v2075_v9  ;;  %v8523_v49 = vpop.permute.xlu1 %2157  ;;  %v2471_v5 = vmul.f32 1.442695, %v2294_v44  ;;  %v10881_v53 = vld [vmem:[#allocation126_spill] sm:$0xff] }
 0x322   : > { %v2079_v4 = vmul.f32 1.442695, %v10871_v18  ;;  %v8525_v11 = vpop.eup %4850  ;;  %4870 = vpow2.f32 %v2077_v48  ;;  %v2473_v0 = vmul.f32 1.442695, %v2295_v22  ;;  %v2019_v63 = vsub.f32 %v8432_v19, %v8458_v39  ;;  %v10882_v19 = vld [vmem:[#allocation161_spill] sm:$0xff]  ;;  %v10885_v9 = vld [vmem:[#allocation166_spill] sm:$0xff] }
 0x323   : > { %v8528_v16 = vpop.eup %4852  ;;  %v2475_v54 = vmul.f32 1.442695, %v2296_v23  ;;  %v2020_v7 = vsub.f32 %v8473_v3, %v1988_v33  ;;  %v2301_v39 = vsub.f32 %v10882_v19, %v8523_v49  ;;  %v10884_v3 = vld [vmem:[#allocation163_spill] sm:$0xff]  ;;  %v2303_v33 = vsub.f32 %v10885_v9, %v8523_v49  ;;  %v10888_v43 = vld [vmem:[#allocation128_spill] sm:$0xff]  ;;  %v10889_v18 = vld [vmem:[#allocation170_spill] sm:$0xff] }
 0x324   : > { %2801 = vperm.xlu0 %4684, %v10875_v27   ;;  %4872 = vpow2.f32 %v2079_v4  ;;  %v8531_v40 = vpop.eup %4854  ;;  %v2302_v31 = vsub.f32 %v10884_v3, %v8523_v49  ;;  %v2081_v36 = vmul.f32 1.442695, %v2019_v63  ;;  %v10890_v22 = vld [vmem:[#allocation167_spill] sm:$0xff]  ;;  %v10892_v63 = vld [vmem:[#allocation26_spill] sm:$0xff] }
 0x325   : > { %2796 = vperm.xlu1 %4685, %v10876_v61   ;;  %4874 = vpow2.f32 %v2469_v13  ;;  %v8535_v28 = vpop.eup %4856  ;;  %v2163_v47 = vpop.permute.xlu1 %2162  ;;  %v2083_v26 = vmul.f32 1.442695, %v2020_v7  ;;  %v2485_v15 = vmul.f32 1.442695, %v2301_v39  ;;  %v2304_v41 = vsub.f32 %v10890_v22, %v8523_v49  ;;  %v10897_v7 = vld [vmem:[#allocation182_spill] sm:$0xff]  ;;  %v10906_v22 = vld [vmem:[#allocation140_spill] sm:$0xff] }
 0x326   : > { %v2153_v6 = vpop.permute.xlu0 %2152  ;;  %v8541_v62 = vpop.eup %4858  ;;  %4876 = vpow2.f32 %v2471_v5  ;;  %v2305_v21 = vsub.f32 %v10887_v17, %v2163_v47  ;;  %v2306_v4 = vsub.f32 %v10889_v18, %v2163_v47  ;;  %v2487_v23 = vmul.f32 1.442695, %v2302_v31  ;;  %v10891_v5 = vld [vmem:[#allocation179_spill] sm:$0xff]  ;;  %v10900_v17 = vld [vmem:[#allocation186_spill] sm:$0xff] }
 0x327   : > { %v2297_v25 = vsub.f32 %v10877_v50, %v2153_v6  ;;  %v2298_v57 = vsub.f32 %v10878_v51, %v2153_v6  ;;  %v2299_v8 = vsub.f32 %v10879_v20, %v2153_v6  ;;  %v2300_v38 = vsub.f32 %v10880_v30, %v2153_v6  ;;  %v8547_v10 = vpop.eup %4860  ;;  %v10893_v6 = vld [vmem:[#allocation178_spill] sm:$0xff]  ;;  %v10895_v51 = vld [vmem:[#allocation172_spill] sm:$0xff]  ;;  %v10896_v30 = vld [vmem:[#allocation181_spill] sm:$0xff] }
 0x328   : > { %2811 = vperm.xlu0 %4684, %v10881_v53   ;;  %4878 = vpow2.f32 %v2473_v0  ;;  %v8550_v58 = vpop.eup %4862  ;;  %v2489_v27 = vmul.f32 1.442695, %v2303_v33  ;;  %v2493_v50 = vmul.f32 1.442695, %v2305_v21  ;;  %v2495_v49 = vmul.f32 1.442695, %v2306_v4 }
 0x329   : > { %2806 = vperm.xlu1 %4685, %v10883_v46   ;;  %v2477_v1 = vmul.f32 1.442695, %v2297_v25  ;;  %v2479_v12 = vmul.f32 1.442695, %v2298_v57  ;;  %v2481_v52 = vmul.f32 1.442695, %v2299_v8  ;;  %4880 = vpow2.f32 %v2475_v54  ;;  %v8554_v29 = vpop.eup %4864  ;;  %v2173_v19 = vpop.permute.xlu1 %2172 }
 0x32a   : > { %v2483_v59 = vmul.f32 1.442695, %v2300_v38  ;;  %v8558_v55 = vpop.eup %4866  ;;  %v2168_v48 = vpop.permute.xlu0 %2167  ;;  %v2308_v54 = vsub.f32 %v10893_v6, %v2163_v47  ;;  %v10894_v25 = vld [vmem:[#allocation25_spill] sm:$0xff]  ;;  %v2307_v57 = vsub.f32 %v10895_v51, %v2163_v47  ;;  %v2491_v8 = vmul.f32 1.442695, %v2304_v41  ;;  %v10898_v46 = vld [vmem:[#allocation183_spill] sm:$0xff] }
 0x32b   : > { %4882 = vpow2.f32 %v2477_v1  ;;  %v8562_v44 = vpop.eup %4868  ;;  %v2309_v61 = vsub.f32 %v10891_v5, %v2168_v48  ;;  %v2310_v38 = vsub.f32 %v10896_v30, %v2168_v48  ;;  %v2311_v53 = vsub.f32 %v10897_v7, %v2168_v48  ;;  %v10901_v21 = vld [vmem:[#allocation141_spill] sm:$0xff]  ;;  %v10908_v41 = vld [vmem:[#allocation135_spill] sm:$0xff] }
 0x32c   : > { %2821 = vperm.xlu0 %4684, %v10886_v42   ;;  %4884 = vpow2.f32 %v2479_v12  ;;  %v8566_v34 = vpop.eup %4870  ;;  %v2312_v1 = vsub.f32 %v10898_v46, %v2168_v48  ;;  %v2497_v3 = vmul.f32 1.442695, %v2307_v57  ;;  %v2313_v48 = vsub.f32 %v10900_v17, %v2173_v19  ;;  %v10912_v6 = vld [vmem:[#allocation143_spill] sm:$0xff]  ;;  %v10916_v57 = vld [vmem:[#allocation142_spill] sm:$0xff] }
 0x32d   : > { %2816 = vperm.xlu1 %4685, %v10888_v43   ;;  %4886 = vpow2.f32 %v2481_v52  ;;  %v2501_v12 = vmul.f32 1.442695, %v2309_v61  ;;  %v2505_v42 = vmul.f32 1.442695, %v2311_v53  ;;  %vm10902_vm9 = vnez %v10901_v21  ;;  %v10903_v43 = vld [vmem:[#allocation136_spill] sm:$0xff]  ;;  %v10911_v61 = vld [vmem:[#allocation191_spill] sm:$0xff] }
 0x32e   : > { %4888 = vpow2.f32 %v2483_v59  ;;  %v8570_v13 = vpop.eup %4872  ;;  %v2499_v59 = vmul.f32 1.442695, %v2308_v54  ;;  %v2178_v31 = vpop.permute.xlu0 %2177  ;;  %vm10904_vm14 = vnez %v10903_v43  ;;  %vm10907_vm10 = vnez %v10906_v22  ;;  %v10914_v54 = vld [vmem:[#allocation139_spill] sm:$0xff]  ;;  %v10921_v53 = vld [vmem:[#allocation198_spill] sm:$0xff] }
 0x32f   : > { %4890 = vpow2.f32 %v2081_v36  ;;  %v4875_v0 = vpop.eup %4874  ;;  %v10899_v36 = vld [vmem:[#allocation187_spill] sm:$0xff]  ;;  %vm4224_vm8 = vmpackc.low %vm10904_vm14, %vm10902_vm9  ;;  %vm10909_vm11 = vnez %v10908_v41  ;;  %vm10913_vm1 = vnez %v10912_v6  ;;  %vm10915_vm3 = vnez %v10914_v54  ;;  %v10936_v6 = vld [vmem:[#allocation210_spill] sm:$0xff] }
 0x330   : > { %4892 = vpow2.f32 %v2083_v26  ;;  %2831 = vperm.xlu0 %4684, %v10892_v63   ;;  %v4877_v20 = vpop.eup %4876  ;;  %v2314_v9 = vsub.f32 %v10899_v36, %v2173_v19  ;;  %v2503_v26 = vmul.f32 1.442695, %v2310_v38  ;;  %vm4227_vm15 = vmpackc.low %vm10909_vm11, %vm10907_vm10  ;;  %v2315_v63 = vsub.f32 %v10911_v61, %v2173_v19  ;;  %v2183_v38 = vpop.permute.xlu1 %2182  ;;  %v10923_v36 = vld [vmem:[#allocation203_spill] sm:$0xff]  ;;  %v10934_v61 = vld [vmem:[#allocation154_spill] sm:$0xff] }
 0x331   : > { %2826 = vperm.xlu1 %4685, %v10894_v25   ;;  %4894 = vpow2.f32 %v2485_v15  ;;  %v2507_v15 = vmul.f32 1.442695, %v2312_v1  ;;  %vm4320_vm13 = vmpackc.low %vm10915_vm3, %vm10913_vm1  ;;  %vm10917_vm5 = vnez %v10916_v57  ;;  %v2509_v30 = vmul.f32 1.442695, %v2313_v48  ;;  %v10922_v1 = vld [vmem:[#allocation199_spill] sm:$0xff]  ;;  %v10925_v48 = vld [vmem:[#allocation213_spill] sm:$0xff] }
 0x332   : > { %4896 = vpow2.f32 %v2487_v23  ;;  %v4879_v39 = vpop.eup %4878  ;;  %v2511_v51 = vmul.f32 1.442695, %v2314_v9  ;;  %v2322_v9 = vsub.f32 %v10923_v36, %v2183_v38  ;;  %v2324_v21 = vsub.f32 %v10925_v48, %v2183_v38  ;;  %v10930_v22 = vld [vmem:[#allocation155_spill] sm:$0xff]  ;;  %v10937_v57 = vld [vmem:[#allocation214_spill] sm:$0xff] }
 0x333   : > { %4898 = vpow2.f32 %v2489_v27  ;;  %v4881_v52 = vpop.eup %4880  ;;  %v10910_v27 = vld [vmem:[#allocation192_spill] sm:$0xff]  ;;  %vm10931_vm9 = vnez %v10930_v22  ;;  %vm10935_vm10 = vnez %v10934_v61  ;;  %v10948_v36 = vld [vmem:[#allocation218_spill] sm:$0xff]  ;;  %v10958_v22 = vld [vmem:[#allocation175_spill] sm:$0xff] }
 0x334   : > { %2841 = vperm.xlu0 %4684, %v8434_v32   ;;  %4900 = vpow2.f32 %v2493_v50  ;;  %v2317_v5 = vsub.f32 %v10910_v27, %v2178_v31 }
 0x335   : > { %v4883_v47 = vpop.eup %4882  ;;  %2836 = vperm.xlu1 %4685, %v8422_v2   ;;  %4902 = vpow2.f32 %v2495_v49  ;;  %v10905_v2 = vld [vmem:[#allocation196_spill] sm:$0xff]  ;;  %v10918_v49 = vld [vmem:[#allocation138_spill] sm:$0xff] }
 0x336   : > { %v4885_v33 = vpop.eup %4884  ;;  %4904 = vpow2.f32 %v2491_v8  ;;  %v2316_v18 = vsub.f32 %v10905_v2, %v2173_v19  ;;  %v4228_v50 = vpack.c.bf16 %v4883_v47, %v4875_v0  ;;  %vm10919_vm6 = vnez %v10918_v49  ;;  %v10920_v8 = vld [vmem:[#allocation197_spill] sm:$0xff]  ;;  %v10927_v2 = vld [vmem:[#allocation207_spill] sm:$0xff] }
 0x337   : > { %v4887_v32 = vpop.eup %4886  ;;  %4906 = vpow2.f32 %v2501_v12  ;;  %v4225_v4 = vpack.c.bf16 %v4885_v33, %v4877_v20  ;;  %vm4323_vm2 = vmpackc.low %vm10919_vm6, %vm10917_vm5  ;;  %v2319_v19 = vsub.f32 %v10921_v53, %v2178_v31  ;;  %v2320_v12 = vsub.f32 %v10922_v1, %v2178_v31 }
 0x338   : > { %v4889_v23 = vpop.eup %4888  ;;  %2851 = vperm.xlu0 %4684, %v8488_v37   ;;  %4908 = vpow2.f32 %v2499_v59  ;;  %v4324_v20 = vpack.c.bf16 %v4887_v32, %v4879_v39  ;;  %v2515_v46 = vmul.f32 1.442695, %v2316_v18  ;;  %v2513_v47 = vmul.f32 1.442695, %v2315_v63 }
 0x339   : > { %v8600_v25 = vpop.eup %4890  ;;  %2846 = vperm.xlu1 %4685, %v8449_v24   ;;  %4910 = vpow2.f32 %v2497_v3  ;;  %4226 = vmatprep.mubr.msk.bf16.mxu0 %vm4224_vm8, %v4225_v4  ;;  %v4321_v37 = vpack.c.bf16 %v4889_v23, %v4881_v52  ;;  %v2318_v24 = vsub.f32 %v10920_v8, %v2178_v31  ;;  %v2517_v52 = vmul.f32 1.442695, %v2317_v5  ;;  %v2188_v3 = vpop.permute.xlu0 %2187  ;;  %v10924_v31 = vld [vmem:[#allocation202_spill] sm:$0xff]  ;;  %v10928_v4 = vld [vmem:[#allocation147_spill] sm:$0xff]  ;;  %v10932_v5 = vld [vmem:[#allocation144_spill] sm:$0xff] }
 0x33a   : > { %v8612_v0 = vpop.eup %4892  ;;  %4912 = vpow2.f32 %v2503_v26  ;;  %4229 = vmatmul.mubr.msk.bf16.gmra.mrb[24].mxu0 %vm4227_vm15, %v4228_v50  ;;  %v2321_v26 = vsub.f32 %v10924_v31, %v2183_v38  ;;  %v2521_v17 = vmul.f32 1.442695, %v2319_v19  ;;  %v2523_v32 = vmul.f32 1.442695, %v2320_v12  ;;  %v10938_v8 = vld [vmem:[#allocation215_spill] sm:$0xff]  ;;  %v10944_v12 = vld [vmem:[#allocation149_spill] sm:$0xff] }
 0x33b   : > { %v4895_v7 = vpop.eup %4894  ;;  %4914 = vpow2.f32 %v2505_v42  ;;  %4322 = vmatprep.mubr.msk.bf16.mxu1 %vm4320_vm13, %v4321_v37  ;;  %v2323_v18 = vsub.f32 %v10927_v2, %v2183_v38  ;;  %vm10929_vm12 = vnez %v10928_v4  ;;  %v2527_v23 = vmul.f32 1.442695, %v2322_v9  ;;  %v10939_v38 = vld [vmem:[#allocation153_spill] sm:$0xff] }
 0x33c   : > { %v4897_v39 = vpop.eup %4896  ;;  %4916 = vpow2.f32 %v2507_v15  ;;  %2861 = vperm.xlu0 %4684, %v8499_v14   ;;  %4325 = vmatmul.mubr.msk.bf16.gmra.mrb[24].mxu1 %vm4323_vm2, %v4324_v20  ;;  %v2519_v14 = vmul.f32 1.442695, %v2318_v24  ;;  %vm4230_vm14 = vmpackc.low %vm10931_vm9, %vm10929_vm12  ;;  %vm10933_vm8 = vnez %v10932_v5  ;;  %v2326_v54 = vsub.f32 %v10936_v6, %v2188_v3  ;;  %v10949_v31 = vld [vmem:[#allocation229_spill] sm:$0xff] }
 0x33d   : > { %v8633_v59 = vpop.eup %4898  ;;  %2856 = vperm.xlu1 %4685, %v8482_v35   ;;  %4918 = vpow2.f32 %v2511_v51  ;;  %v10926_v35 = vld [vmem:[#allocation208_spill] sm:$0xff]  ;;  %vm4233_vm11 = vmpackc.low %vm10935_vm10, %vm10933_vm8  ;;  %v2525_v50 = vmul.f32 1.442695, %v2321_v26  ;;  %v8654_v51 = vpop.permute.xlu1 %2192  ;;  %v2327_v49 = vsub.f32 %v10937_v57, %v2188_v3  ;;  %v2328_v24 = vsub.f32 %v10938_v8, %v2188_v3  ;;  %v10956_v4 = vld [vmem:[#allocation165_spill] sm:$0xff] }
 0x33e   : > { %v4901_v33 = vpop.eup %4900  ;;  %4920 = vpow2.f32 %v2509_v30  ;;  %v2325_v15 = vsub.f32 %v10926_v35, %v2188_v3  ;;  %vm10940_vm15 = vnez %v10939_v38  ;;  %v2529_v19 = vmul.f32 1.442695, %v2323_v18 }
 0x33f   : > { %v4903_v42 = vpop.eup %4902  ;;  %4922 = vpow2.f32 %v2515_v46  ;;  %v8676_v46 = vpop.permute.xlu0 %2197  ;;  %vm10945_vm13 = vnez %v10944_v12  ;;  %v2535_v3 = vmul.f32 1.442695, %v2326_v54  ;;  %v2329_v9 = vsub.f32 %v10948_v36, %v8654_v51  ;;  %v10965_v54 = vld [vmem:[#allocation230_spill] sm:$0xff] }
 0x340   : > { %v4905_v43 = vpop.eup %4904  ;;  %4924 = vpow2.f32 %v2517_v52  ;;  %2871 = vperm.xlu0 %4684, %v8518_v60   ;;  %v4231_v27 = vpack.c.bf16 %v4903_v42, %v4897_v39  ;;  %v4234_v60 = vpack.c.bf16 %v4901_v33, %v4895_v7  ;;  %v2533_v30 = vmul.f32 1.442695, %v2325_v15  ;;  %v10941_v7 = vld [vmem:[#allocation159_spill] sm:$0xff]  ;;  %v10946_v52 = vld [vmem:[#allocation158_spill] sm:$0xff]  ;;  %v10955_v15 = vld [vmem:[#allocation224_spill] sm:$0xff] }
 0x341   : > { %v8646_v41 = vpop.eup %4906  ;;  %4926 = vpow2.f32 %v2513_v47  ;;  %2866 = vperm.xlu1 %4685, %v8511_v56   ;;  %v2531_v56 = vmul.f32 1.442695, %v2324_v21  ;;  %vm10942_vm1 = vnez %v10941_v7  ;;  %vm10947_vm5 = vnez %v10946_v52  ;;  %v10950_v42 = vld [vmem:[#allocation162_spill] sm:$0xff]  ;;  %v10954_v21 = vld [vmem:[#allocation225_spill] sm:$0xff]  ;;  %v8717_v61 = vpop.permute.xlu1 %2202  ;;  %v10973_v52 = vld [vmem:[#allocation239_spill] sm:$0xff] }
 0x342   : > { %v4909_v63 = vpop.eup %4908  ;;  %4928 = vpow2.f32 %v2519_v14  ;;  %4232 = vmatprep.mubr.msk.bf16.mxu0 %vm4230_vm14, %v4231_v27  ;;  %vm4326_vm3 = vmpackc.low %vm10942_vm1, %vm10940_vm15  ;;  %v2537_v14 = vmul.f32 1.442695, %v2327_v49  ;;  %v2332_v26 = vsub.f32 %v10949_v31, %v8654_v51  ;;  %vm10951_vm2 = vnez %v10950_v42  ;;  %v10966_v49 = vld [vmem:[#allocation231_spill] sm:$0xff]  ;;  %v10970_v7 = vld [vmem:[#allocation173_spill] sm:$0xff] }
 0x343   : > { %v4911_v37 = vpop.eup %4910  ;;  %4930 = vpow2.f32 %v2521_v17  ;;  %4235 = vmatmul.mubr.msk.bf16.gmra.mrb[28].mxu0 %vm4233_vm11, %v4234_v60  ;;  %v4327_v1 = vpack.c.bf16 %v4909_v63, %v4905_v43  ;;  %vm4329_vm6 = vmpackc.low %vm10947_vm5, %vm10945_vm13  ;;  %v10952_v17 = vld [vmem:[#allocation171_spill] sm:$0xff]  ;;  %v2333_v43 = vsub.f32 %v10954_v21, %v8676_v46  ;;  %v2331_v2 = vsub.f32 %v10955_v15, %v8654_v51  ;;  %v10961_v60 = vld [vmem:[#allocation160_spill] sm:$0xff] }
 0x344   : > { %v4913_v20 = vpop.eup %4912  ;;  %4932 = vpow2.f32 %v2523_v32  ;;  %2881 = vperm.xlu0 %4684, %v8525_v11   ;;  %v10943_v11 = vld [vmem:[#allocation221_spill] sm:$0xff]  ;;  %v4330_v33 = vpack.c.bf16 %v4911_v37, %v8633_v59  ;;  %vm10953_vm12 = vnez %v10952_v17  ;;  %v2539_v59 = vmul.f32 1.442695, %v2328_v24  ;;  %v10963_v63 = vld [vmem:[#allocation168_spill] sm:$0xff]  ;;  %v10979_v31 = vld [vmem:[#allocation238_spill] sm:$0xff] }
 0x345   : > { %v8673_v53 = vpop.eup %4914  ;;  %4934 = vpow2.f32 %v2527_v23  ;;  %2876 = vperm.xlu1 %4685, %v8521_v45   ;;  %v2330_v39 = vsub.f32 %v10943_v11, %v8654_v51  ;;  %4328 = vmatprep.mubr.msk.bf16.mxu1 %vm4326_vm3, %v4327_v1  ;;  %vm4236_vm9 = vmpackc.low %vm10953_vm12, %vm10951_vm2  ;;  %vm10957_vm14 = vnez %v10956_v4  ;;  %vm10959_vm8 = vnez %v10958_v22  ;;  %v10960_v23 = vld [vmem:[#allocation226_spill] sm:$0xff]  ;;  %v10972_v11 = vld [vmem:[#allocation236_spill] sm:$0xff] }
 0x346   : > { %v4917_v47 = vpop.eup %4916  ;;  %4936 = vpow2.f32 %v2525_v50  ;;  %4331 = vmatmul.mubr.msk.bf16.gmra.mrb[28].mxu1 %vm4329_vm6, %v4330_v33  ;;  %vm4332_vm10 = vmpackc.low %vm10959_vm8, %vm10957_vm14  ;;  %v2334_v27 = vsub.f32 %v10960_v23, %v8676_v46  ;;  %v2541_v5 = vmul.f32 1.442695, %v2329_v9  ;;  %vm10962_vm11 = vnez %v10961_v60  ;;  %v10974_v9 = vld [vmem:[#allocation243_spill] sm:$0xff]  ;;  %v10986_v4 = vld [vmem:[#allocation180_spill] sm:$0xff] }
 0x347   : > { %v4919_v45 = vpop.eup %4918  ;;  %4938 = vpow2.f32 %v2531_v56  ;;  %v2543_v18 = vmul.f32 1.442695, %v2330_v39  ;;  %vm10964_vm15 = vnez %v10963_v63  ;;  %v2335_v50 = vsub.f32 %v10965_v54, %v8676_v46  ;;  %v10988_v22 = vld [vmem:[#allocation193_spill] sm:$0xff] }
 0x348   : > { %v4921_v48 = vpop.eup %4920  ;;  %4940 = vpow2.f32 %v2533_v30  ;;  %2891 = vperm.xlu0 %4684, %v8531_v40   ;;  %v4237_v32 = vpack.c.bf16 %v4919_v45, %v4913_v20  ;;  %vm4239_vm1 = vmpackc.low %vm10964_vm15, %vm10962_vm11  ;;  %v2547_v51 = vmul.f32 1.442695, %v2332_v26  ;;  %v2336_v56 = vsub.f32 %v10966_v49, %v8676_v46  ;;  %v8741_v30 = vpop.permute.xlu0 %2207  ;;  %v10975_v45 = vld [vmem:[#allocation176_spill] sm:$0xff]  ;;  %v10996_v49 = vld [vmem:[#allocation250_spill] sm:$0xff] }
 0x349   : > { %v4923_v35 = vpop.eup %4922  ;;  %4942 = vpow2.f32 %v2529_v19  ;;  %2886 = vperm.xlu1 %4685, %v8528_v16   ;;  %v4240_v37 = vpack.c.bf16 %v4921_v48, %v8646_v41  ;;  %v2549_v20 = vmul.f32 1.442695, %v2333_v43  ;;  %v2545_v24 = vmul.f32 1.442695, %v2331_v2  ;;  %v10967_v41 = vld [vmem:[#allocation237_spill] sm:$0xff]  ;;  %v8774_v43 = vpop.permute.xlu1 %2212  ;;  %v10985_v2 = vld [vmem:[#allocation246_spill] sm:$0xff] }
 0x34a   : > { %v8713_v40 = vpop.eup %4924  ;;  %4944 = vpow2.f32 %v2535_v3  ;;  %4238 = vmatprep.mubr.msk.bf16.mxu0 %vm4236_vm9, %v4237_v32  ;;  %v4333_v16 = vpack.c.bf16 %v4923_v35, %v4917_v47  ;;  %v2338_v38 = vsub.f32 %v10967_v41, %v8717_v61  ;;  %vm10971_vm13 = vnez %v10970_v7  ;;  %v10981_v32 = vld [vmem:[#allocation174_spill] sm:$0xff]  ;;  %v10983_v35 = vld [vmem:[#allocation184_spill] sm:$0xff]  ;;  %v10998_v7 = vld [vmem:[#allocation259_spill] sm:$0xff] }
 0x34b   : > { %v4927_v6 = vpop.eup %4926  ;;  %4946 = vpow2.f32 %v2537_v14  ;;  %4241 = vmatmul.mubr.msk.bf16.gmra.mrb[32].mxu0 %vm4239_vm1, %v4240_v37  ;;  %v2551_v46 = vmul.f32 1.442695, %v2334_v27  ;;  %v2337_v39 = vsub.f32 %v10972_v11, %v8717_v61  ;;  %v2553_v12 = vmul.f32 1.442695, %v2335_v50  ;;  %v10977_v14 = vld [vmem:[#allocation185_spill] sm:$0xff]  ;;  %v10991_v50 = vld [vmem:[#allocation252_spill] sm:$0xff] }
 0x34c   : > { %v4929_v57 = vpop.eup %4928  ;;  %4948 = vpow2.f32 %v2539_v59  ;;  %2901 = vperm.xlu0 %4684, %v8541_v62   ;;  %4334 = vmatprep.mubr.msk.bf16.mxu1 %vm4332_vm10, %v4333_v16  ;;  %v10968_v62 = vld [vmem:[#allocation164_spill] sm:$0xff]  ;;  %v4336_v1 = vpack.c.bf16 %v4927_v6, %v8673_v53  ;;  %v2340_v47 = vsub.f32 %v10973_v52, %v8717_v61  ;;  %v2555_v36 = vmul.f32 1.442695, %v2336_v56  ;;  %v8797_v54 = vpop.permute.xlu0 %2217  ;;  %v11001_v11 = vld [vmem:[#allocation201_spill] sm:$0xff] }
 0x34d   : > { %v8739_v8 = vpop.eup %4930  ;;  %4950 = vpow2.f32 %v2543_v18  ;;  %2896 = vperm.xlu1 %4685, %v8535_v28   ;;  %vm10969_vm3 = vnez %v10968_v62  ;;  %v2341_v33 = vsub.f32 %v10974_v9, %v8741_v30  ;;  %vm10976_vm6 = vnez %v10975_v45  ;;  %v11005_v9 = vld [vmem:[#allocation195_spill] sm:$0xff] }
 0x34e   : > { %vm4335_vm5 = vmpackc.low %vm10971_vm13, %vm10969_vm3  ;;  %v4933_v19 = vpop.eup %4932  ;;  %4952 = vpow2.f32 %v2541_v5  ;;  %vm10978_vm2 = vnez %v10977_v14  ;;  %v2339_v26 = vsub.f32 %v10979_v31, %v8717_v61  ;;  %v2559_v42 = vmul.f32 1.442695, %v2338_v38  ;;  %v10990_v5 = vld [vmem:[#allocation247_spill] sm:$0xff]  ;;  %v11008_v14 = vld [vmem:[#allocation261_spill] sm:$0xff] }
 0x34f   : > { %v4935_v28 = vpop.eup %4934  ;;  %4954 = vpow2.f32 %v2547_v51  ;;  %4337 = vmatmul.mubr.msk.bf16.gmra.mrb[32].mxu1 %vm4335_vm5, %v4336_v1  ;;  %vm4242_vm12 = vmpackc.low %vm10978_vm2, %vm10976_vm6  ;;  %v2557_v21 = vmul.f32 1.442695, %v2337_v39  ;;  %vm10982_vm9 = vnez %v10981_v32  ;;  %vm10984_vm14 = vnez %v10983_v35  ;;  %v11003_v1 = vld [vmem:[#allocation254_spill] sm:$0xff] }
 0x350   : > { %v4937_v3 = vpop.eup %4936  ;;  %4956 = vpow2.f32 %v2549_v20  ;;  %2911 = vperm.xlu0 %4684, %v8550_v58   ;;  %v4243_v17 = vpack.c.bf16 %v4935_v28, %v4929_v57  ;;  %v10980_v58 = vld [vmem:[#allocation245_spill] sm:$0xff]  ;;  %vm4245_vm8 = vmpackc.low %vm10984_vm14, %vm10982_vm9  ;;  %v2563_v18 = vmul.f32 1.442695, %v2340_v47  ;;  %vm10987_vm10 = vnez %v10986_v4  ;;  %v11004_v47 = vld [vmem:[#allocation260_spill] sm:$0xff] }
 0x351   : > { %v4939_v53 = vpop.eup %4938  ;;  %4958 = vpow2.f32 %v2545_v24  ;;  %2906 = vperm.xlu1 %4685, %v8547_v10   ;;  %v2342_v59 = vsub.f32 %v10980_v58, %v8741_v30  ;;  %v2343_v10 = vsub.f32 %v10985_v2, %v8741_v30  ;;  %vm10989_vm11 = vnez %v10988_v22  ;;  %v11013_v58 = vld [vmem:[#allocation262_spill] sm:$0xff]  ;;  %v11018_v4 = vld [vmem:[#allocation264_spill] sm:$0xff] }
 0x352   : > { %v8770_v48 = vpop.eup %4940  ;;  %4960 = vpow2.f32 %v2551_v46  ;;  %4244 = vmatprep.mubr.msk.bf16.mxu0 %vm4242_vm12, %v4243_v17  ;;  %vm4338_vm15 = vmpackc.low %vm10989_vm11, %vm10987_vm10  ;;  %v4246_v23 = vpack.c.bf16 %v4937_v3, %v8713_v40  ;;  %v2344_v61 = vsub.f32 %v10990_v5, %v8741_v30  ;;  %v2565_v16 = vmul.f32 1.442695, %v2341_v33  ;;  %v10992_v40 = vld [vmem:[#allocation177_spill] sm:$0xff]  ;;  %v10997_v30 = vld [vmem:[#allocation255_spill] sm:$0xff]  ;;  %v8823_v46 = vpop.permute.xlu1 %2222 }
 0x353   : > { %v4943_v15 = vpop.eup %4942  ;;  %4962 = vpow2.f32 %v2553_v12  ;;  %v4339_v60 = vpack.c.bf16 %v4939_v53, %v4933_v19  ;;  %v2561_v6 = vmul.f32 1.442695, %v2339_v26  ;;  %v2346_v51 = vsub.f32 %v10991_v50, %v8774_v43  ;;  %v11009_v26 = vld [vmem:[#allocation189_spill] sm:$0xff] }
 0x354   : > { %v4945_v27 = vpop.eup %4944  ;;  %4964 = vpow2.f32 %v2555_v36  ;;  %2921 = vperm.xlu0 %4684, %v8558_v55   ;;  %4247 = vmatmul.mubr.msk.bf16.gmra.mrb[36].mxu0 %vm4245_vm8, %v4246_v23  ;;  %vm10993_vm1 = vnez %v10992_v40  ;;  %v10994_v55 = vld [vmem:[#allocation188_spill] sm:$0xff]  ;;  %v2567_v57 = vmul.f32 1.442695, %v2342_v59  ;;  %v2345_v56 = vsub.f32 %v10996_v49, %v8774_v43  ;;  %v11024_v40 = vld [vmem:[#allocation266_spill] sm:$0xff]  ;;  %v11025_v49 = vld [vmem:[#allocation275_spill] sm:$0xff] }
 0x355   : > { %v8795_v63 = vpop.eup %4946  ;;  %4966 = vpow2.f32 %v2559_v42  ;;  %2916 = vperm.xlu1 %4685, %v8554_v29   ;;  %vm10995_vm3 = vnez %v10994_v55  ;;  %4340 = vmatprep.mubr.msk.bf16.mxu1 %vm4338_vm15, %v4339_v60  ;;  %v4342_v29 = vpack.c.bf16 %v4943_v15, %v8739_v8  ;;  %v2569_v24 = vmul.f32 1.442695, %v2343_v10  ;;  %v10999_v8 = vld [vmem:[#allocation190_spill] sm:$0xff]  ;;  %v11011_v42 = vld [vmem:[#allocation200_spill] sm:$0xff]  ;;  %v11014_v15 = vld [vmem:[#allocation265_spill] sm:$0xff] }
 0x356   : > { %vm4341_vm13 = vmpackc.low %vm10995_vm3, %vm10993_vm1  ;;  %v4949_v37 = vpop.eup %4948  ;;  %4968 = vpow2.f32 %v2557_v21  ;;  %v2348_v41 = vsub.f32 %v10997_v30, %v8774_v43  ;;  %v2571_v62 = vmul.f32 1.442695, %v2344_v61  ;;  %v2349_v19 = vsub.f32 %v10998_v7, %v8797_v54  ;;  %v11015_v10 = vld [vmem:[#allocation194_spill] sm:$0xff]  ;;  %v8885_v61 = vpop.permute.xlu0 %2227  ;;  %v11030_v30 = vld [vmem:[#allocation269_spill] sm:$0xff] }
 0x357   : > { %v4951_v20 = vpop.eup %4950  ;;  %4970 = vpow2.f32 %v2563_v18  ;;  %4343 = vmatmul.mubr.msk.bf16.gmra.mrb[36].mxu1 %vm4341_vm13, %v4342_v29  ;;  %vm11000_vm5 = vnez %v10999_v8  ;;  %vm11002_vm6 = vnez %v11001_v11  ;;  %v2347_v28 = vsub.f32 %v11003_v1, %v8774_v43  ;;  %v8877_v23 = vpop.permute.xlu1 %2232  ;;  %v11026_v29 = vld [vmem:[#allocation212_spill] sm:$0xff]  ;;  %v11032_v8 = vld [vmem:[#allocation205_spill] sm:$0xff] }
 0x358   : > { %v4953_v38 = vpop.eup %4952  ;;  %4972 = vpow2.f32 %v2565_v16  ;;  %2931 = vperm.xlu0 %4684, %v8566_v34   ;;  %vm4248_vm2 = vmpackc.low %vm11002_vm6, %vm11000_vm5  ;;  %v2575_v12 = vmul.f32 1.442695, %v2346_v51  ;;  %v4249_v34 = vpack.c.bf16 %v4951_v20, %v4945_v27  ;;  %v2350_v3 = vsub.f32 %v11004_v47, %v8797_v54  ;;  %v11019_v16 = vld [vmem:[#allocation270_spill] sm:$0xff]  ;;  %v11028_v20 = vld [vmem:[#allocation220_spill] sm:$0xff] }
 0x359   : > { %v4955_v39 = vpop.eup %4954  ;;  %4974 = vpow2.f32 %v2561_v6  ;;  %2926 = vperm.xlu1 %4685, %v8562_v44   ;;  %v2573_v36 = vmul.f32 1.442695, %v2345_v56  ;;  %vm11006_vm12 = vnez %v11005_v9  ;;  %v2351_v53 = vsub.f32 %v11008_v14, %v8797_v54  ;;  %v11020_v6 = vld [vmem:[#allocation206_spill] sm:$0xff]  ;;  %v11034_v11 = vld [vmem:[#allocation216_spill] sm:$0xff]  ;;  %v11039_v9 = vld [vmem:[#allocation219_spill] sm:$0xff] }
 0x35a   : > { %v8838_v52 = vpop.eup %4956  ;;  %4976 = vpow2.f32 %v2567_v57  ;;  %vm4344_vm9 = vmpackc.low %vm7323_vm7, %vm11006_vm12  ;;  %v2579_v31 = vmul.f32 1.442695, %v2348_v41  ;;  %4250 = vmatprep.mubr.msk.bf16.mxu0 %vm4248_vm2, %v4249_v34  ;;  %v4345_v44 = vpack.c.bf16 %v4955_v39, %v4949_v37  ;;  %vm11010_vm14 = vnez %v11009_v26  ;;  %v11036_v1 = vld [vmem:[#allocation272_spill] sm:$0xff]  ;;  %v11090_v26 = vld [vmem:[#allocation273_spill] sm:$0xff] }
 0x35b   : > { %v4959_v45 = vpop.eup %4958  ;;  %4978 = vpow2.f32 %v2569_v24  ;;  %vm11012_vm8 = vnez %v11011_v42  ;;  %v2352_v59 = vsub.f32 %v11013_v58, %v8797_v54  ;;  %v2581_v21 = vmul.f32 1.442695, %v2349_v19  ;;  %v11022_v54 = vld [vmem:[#allocation217_spill] sm:$0xff]  ;;  %v11031_v19 = vld [vmem:[#allocation278_spill] sm:$0xff]  ;;  %v11045_v58 = vld [vmem:[#allocation268_spill] sm:$0xff] }
 0x35c   : > { %vm4251_vm10 = vmpackc.low %vm11012_vm8, %vm11010_vm14  ;;  %v4961_v17 = vpop.eup %4960  ;;  %4980 = vpow2.f32 %v2571_v62  ;;  %2941 = vperm.xlu0 %4684, %v8600_v25   ;;  %v4252_v43 = vpack.c.bf16 %v4953_v38, %v8770_v48  ;;  %v2577_v35 = vmul.f32 1.442695, %v2347_v28  ;;  %v2354_v2 = vsub.f32 %v11014_v15, %v8823_v46  ;;  %4346 = vmatprep.mubr.msk.bf16.mxu1 %vm4344_vm9, %v4345_v44  ;;  %v11043_v42 = vld [vmem:[#allocation233_spill] sm:$0xff] }
 0x35d   : > { %v8861_v32 = vpop.eup %4962  ;;  %4982 = vpow2.f32 %v2575_v12  ;;  %2936 = vperm.xlu1 %4685, %v8570_v13   ;;  %vm11016_vm11 = vnez %v11015_v10  ;;  %v2583_v18 = vmul.f32 1.442695, %v2350_v3  ;;  %v2353_v22 = vsub.f32 %v11018_v4, %v8823_v46  ;;  %v11049_v10 = vld [vmem:[#allocation235_spill] sm:$0xff] }
 0x35e   : > { %vm4347_vm15 = vmpackc.low %vm7297_vm0, %vm11016_vm11  ;;  %v4965_v48 = vpop.eup %4964  ;;  %4984 = vpow2.f32 %v2573_v36  ;;  %4253 = vmatmul.mubr.msk.bf16.gmra.mrb[40].mxu0 %vm4251_vm10, %v4252_v43  ;;  %v4348_v13 = vpack.c.bf16 %v4959_v45, %v8795_v63  ;;  %v2585_v5 = vmul.f32 1.442695, %v2351_v53  ;;  %v2356_v60 = vsub.f32 %v11019_v16, %v8823_v46  ;;  %v11037_v36 = vld [vmem:[#allocation211_spill] sm:$0xff] }
 0x35f   : > { %v4967_v27 = vpop.eup %4966  ;;  %4986 = vpow2.f32 %v2579_v31  ;;  %vm11021_vm7 = vnez %v11020_v6  ;;  %vm11023_vm1 = vnez %v11022_v54  ;;  %v2587_v51 = vmul.f32 1.442695, %v2352_v59  ;;  %v11041_v31 = vld [vmem:[#allocation274_spill] sm:$0xff]  ;;  %v11051_v4 = vld [vmem:[#allocation271_spill] sm:$0xff] }
 0x360   : > { %vm4254_vm3 = vmpackc.low %vm11023_vm1, %vm11021_vm7  ;;  %v4969_v50 = vpop.eup %4968  ;;  %4988 = vpow2.f32 %v2581_v21  ;;  %v2355_v55 = vsub.f32 %v11024_v40, %v8823_v46  ;;  %4349 = vmatmul.mubr.msk.bf16.gmra.mrb[40].mxu1 %vm4347_vm15, %v4348_v13  ;;  %v4255_v63 = vpack.c.bf16 %v4967_v27, %v4961_v17  ;;  %v2591_v57 = vmul.f32 1.442695, %v2354_v2  ;;  %v11047_v2 = vld [vmem:[#allocation228_spill] sm:$0xff]  ;;  %v11052_v27 = vld [vmem:[#allocation222_spill] sm:$0xff] }
 0x361   : > { %v4971_v37 = vpop.eup %4970  ;;  %4990 = vpow2.f32 %v2577_v35  ;;  %v2362_v56 = vsub.f32 %v11025_v49, %v8877_v23  ;;  %2946 = vperm.xlu1 %4685, %v8612_v0   ;;  %vm11027_vm13 = vnez %v11026_v29  ;;  %vm11029_vm5 = vnez %v11028_v20  ;;  %v11046_v35 = vld [vmem:[#allocation277_spill] sm:$0xff]  ;;  %v11064_v20 = vld [vmem:[#allocation244_spill] sm:$0xff] }
 0x362   : > { %vm4350_vm6 = vmpackc.low %vm11029_vm5, %vm11027_vm13  ;;  %v4973_v24 = vpop.eup %4972  ;;  %4992 = vpow2.f32 %v2583_v18  ;;  %v2358_v41 = vsub.f32 %v11030_v30, %v8885_v61  ;;  %v2589_v38 = vmul.f32 1.442695, %v2353_v22  ;;  %4256 = vmatprep.mubr.msk.bf16.mxu0 %vm4254_vm3, %v4255_v63  ;;  %v4351_v62 = vpack.c.bf16 %v4971_v37, %v4965_v48  ;;  %v11060_v37 = vld [vmem:[#allocation241_spill] sm:$0xff] }
 0x363   : > { %v4975_v7 = vpop.eup %4974  ;;  %4994 = vpow2.f32 %v2585_v5  ;;  %v2595_v0 = vmul.f32 1.442695, %v2356_v60  ;;  %v2364_v46 = vsub.f32 %v11031_v19, %v8877_v23  ;;  %vm11033_vm0 = vnez %v11032_v8  ;;  %v11054_v5 = vld [vmem:[#allocation232_spill] sm:$0xff]  ;;  %v11074_v8 = vld [vmem:[#allocation267_spill] sm:$0xff] }
 0x364   : > { %vm11035_vm2 = vnez %v11034_v11  ;;  %v4977_v39 = vpop.eup %4976  ;;  %4996 = vpow2.f32 %v2587_v51  ;;  %v2360_v28 = vsub.f32 %v11036_v1, %v8885_v61  ;;  %v2593_v12 = vmul.f32 1.442695, %v2355_v55  ;;  %4352 = vmatprep.mubr.msk.bf16.mxu1 %vm4350_vm6, %v4351_v62  ;;  %v11058_v51 = vld [vmem:[#allocation234_spill] sm:$0xff]  ;;  %v11068_v62 = vld [vmem:[#allocation240_spill] sm:$0xff]  ;;  %v11078_v1 = vld [vmem:[#allocation251_spill] sm:$0xff] }
 0x365   : > { %vm4257_vm12 = vmpackc.low %vm11035_vm2, %vm11033_vm0  ;;  %v4258_v34 = vpack.c.bf16 %v4969_v50, %v8838_v52  ;;  %v4979_v47 = vpop.eup %4978  ;;  %4998 = vpow2.f32 %v2591_v57  ;;  %v2607_v3 = vmul.f32 1.442695, %v2362_v56  ;;  %vm11038_vm9 = vnez %v11037_v36  ;;  %v11056_v50 = vld [vmem:[#allocation227_spill] sm:$0xff]  ;;  %v11062_v57 = vld [vmem:[#allocation249_spill] sm:$0xff] }
 0x366   : > { %vm11040_vm14 = vnez %v11039_v9  ;;  %v4981_v33 = vpop.eup %4980  ;;  %v2599_v45 = vmul.f32 1.442695, %v2358_v41  ;;  %5000 = vpow2.f32 %v2589_v38  ;;  %v4354_v14 = vpack.c.bf16 %v4975_v7, %v8861_v32  ;;  %v11070_v7 = vld [vmem:[#allocation248_spill] sm:$0xff] }
 0x367   : > { %vm4353_vm8 = vmpackc.low %vm11040_vm14, %vm11038_vm9  ;;  %4259 = vmatmul.mubr.msk.bf16.gmra.mrb[44].mxu0 %vm4257_vm12, %v4258_v34  ;;  %v4983_v53 = vpop.eup %4982  ;;  %5002 = vpow2.f32 %v2595_v0  ;;  %v2361_v44 = vsub.f32 %v11041_v31, %v8877_v23  ;;  %v2611_v52 = vmul.f32 1.442695, %v2364_v46  ;;  %vm11044_vm10 = vnez %v11043_v42  ;;  %v11072_v46 = vld [vmem:[#allocation256_spill] sm:$0xff] }
 0x368   : > { %vm4260_vm11 = vmpackc.low %vm11044_vm10, %vm7439_vm4  ;;  %v4985_v17 = vpop.eup %4984  ;;  %v2357_v59 = vsub.f32 %v11045_v58, %v8885_v61  ;;  %v2603_v21 = vmul.f32 1.442695, %v2360_v28  ;;  %5004 = vpow2.f32 %v2593_v12  ;;  %4355 = vmatmul.mubr.msk.bf16.gmra.mrb[44].mxu1 %vm4353_vm8, %v4354_v14  ;;  %v4261_v43 = vpack.c.bf16 %v4983_v53, %v4977_v39  ;;  %v11076_v39 = vld [vmem:[#allocation242_spill] sm:$0xff]  ;;  %v11084_v14 = vld [vmem:[#allocation253_spill] sm:$0xff] }
 0x369   : > { %v4987_v32 = vpop.eup %4986  ;;  %v2363_v15 = vsub.f32 %v11046_v35, %v8877_v23  ;;  %5006 = vpow2.f32 %v2607_v3  ;;  %vm11048_vm15 = vnez %v11047_v2  ;;  %vm11050_vm7 = vnez %v11049_v10  ;;  %v11082_v3 = vld [vmem:[#allocation276_spill] sm:$0xff]  ;;  %v11086_v53 = vld [vmem:[#allocation11_spill] sm:$0xff] }
 0x36a   : > { %vm4356_vm1 = vmpackc.low %vm11050_vm7, %vm11048_vm15  ;;  %v4989_v25 = vpop.eup %4988  ;;  %5008 = vpow2.f32 %v2599_v45  ;;  %4262 = vmatprep.mubr.msk.bf16.mxu0 %vm4260_vm11, %v4261_v43  ;;  %v4357_v48 = vpack.c.bf16 %v4987_v32, %v4981_v33  ;;  %v2359_v22 = vsub.f32 %v11051_v4, %v8885_v61  ;;  %v2605_v13 = vmul.f32 1.442695, %v2361_v44  ;;  %v11092_v58 = vld [vmem:[#allocation120_spill] sm:$0xff]  ;;  %v11094_v32 = vld [vmem:[#allocation131_spill] sm:$0xff] }
 0x36b   : > { %v4991_v18 = vpop.eup %4990  ;;  %5010 = vpow2.f32 %v2611_v52  ;;  %vm11053_vm4 = vnez %v11052_v27  ;;  %vm11055_vm3 = vnez %v11054_v5  ;;  %v2597_v16 = vmul.f32 1.442695, %v2357_v59  ;;  %v11088_v52 = vld [vmem:[#allocation258_spill] sm:$0xff]  ;;  %v11097_v27 = vld [vmem:[#allocation133_spill] sm:$0xff] }
 0x36c   : > { %vm4263_vm13 = vmpackc.low %vm11055_vm3, %vm11053_vm4  ;;  %v4993_v23 = vpop.eup %4992  ;;  %5012 = vpow2.f32 %v2603_v21  ;;  %4358 = vmatprep.mubr.msk.bf16.mxu1 %vm4356_vm1, %v4357_v48  ;;  %v4264_v60 = vpack.c.bf16 %v4985_v17, %v4973_v24  ;;  %v2609_v54 = vmul.f32 1.442695, %v2363_v15  ;;  %vm11057_vm5 = vnez %v11056_v50  ;;  %v11066_v24 = vld [vmem:[#allocation257_spill] sm:$0xff]  ;;  %v11093_v21 = vld [vmem:[#allocation112_spill] sm:$0xff] }
 0x36d   : > { %v4995_v6 = vpop.eup %4994  ;;  %vm11059_vm6 = vnez %v11058_v51  ;;  %v4360_v40 = vpack.c.bf16 %v4991_v18, %v4979_v47  ;;  %v2601_v63 = vmul.f32 1.442695, %v2359_v22  ;;  %5014 = vpow2.f32 %v2605_v13  ;;  %v11080_v47 = vld [vmem:[#allocation263_spill] sm:$0xff]  ;;  %v11095_v15 = vld [vmem:[#allocation118_spill] sm:$0xff] }
 0x36e   : > { %vm4359_vm0 = vmpackc.low %vm11059_vm6, %vm11057_vm5  ;;  %v4997_v61 = vpop.eup %4996  ;;  %vm11061_vm2 = vnez %v11060_v37  ;;  %vm11063_vm12 = vnez %v11062_v57  ;;  %5016 = vpow2.f32 %v2597_v16  ;;  %vm11065_vm14 = vnez %v11064_v20  ;;  %v11096_v22 = vld [vmem:[#allocation122_spill] sm:$0xff] }
 0x36f   : > { %4265 = vmatmul.mubr.msk.bf16.gmra.mrb[48].mxu0 %vm4263_vm13, %v4264_v60  ;;  %v4999_v55 = vpop.eup %4998  ;;  %vm4266_vm9 = vmpackc.low %vm11063_vm12, %vm11061_vm2  ;;  %5018 = vpow2.f32 %v2609_v54  ;;  %vm11067_vm8 = vnez %v11066_v24  ;;  %vm11069_vm11 = vnez %v11068_v62  ;;  %vm11071_vm15 = vnez %v11070_v7  ;;  %v11099_v60 = vld [vmem:[#allocation119_spill] sm:$0xff] }
 0x370   : > { %v5001_v49 = vpop.eup %5000  ;;  %4361 = vmatmul.mubr.msk.bf16.gmra.mrb[48].mxu1 %vm4359_vm0, %v4360_v40  ;;  %v4267_v56 = vpack.c.bf16 %v4999_v55, %v4993_v23  ;;  %vm4362_vm10 = vmpackc.low %vm11067_vm8, %vm11065_vm14  ;;  %5020 = vpow2.f32 %v2601_v63  ;;  %vm11073_vm1 = vnez %v11072_v46  ;;  %vm11075_vm4 = vnez %v11074_v8  ;;  %v11098_v23 = vld [vmem:[#allocation116_spill] sm:$0xff]  ;;  %v11108_v7 = vld [vmem:[#allocation127_spill] sm:$0xff] }
 0x371   : > { %v5003_v29 = vpop.eup %5002  ;;  %vm4269_vm7 = vmpackc.low %vm11071_vm15, %vm11069_vm11  ;;  %v4270_v19 = vpack.c.bf16 %v5001_v49, %v4989_v25  ;;  %vm11077_vm13 = vnez %v11076_v39  ;;  %vm11079_vm5 = vnez %v11078_v1  ;;  %vm11081_vm0 = vnez %v11080_v47  ;;  %v11112_v8 = vld [vmem:[#allocation130_spill] sm:$0xff] }
 0x372   : > { %v5005_v30 = vpop.eup %5004  ;;  %4268 = vmatprep.mubr.msk.bf16.mxu0 %vm4266_vm9, %v4267_v56  ;;  %v4363_v41 = vpack.c.bf16 %v5003_v29, %v4997_v61  ;;  %vm4272_vm3 = vmpackc.low %vm11075_vm4, %vm11073_vm1  ;;  %vm11083_vm2 = vnez %v11082_v3  ;;  %vm11085_vm9 = vnez %v11084_v14  ;;  %vm11087_vm14 = vnez %v11086_v53  ;;  %v11100_v56 = vld [vmem:[#allocation113_spill] sm:$0xff]  ;;  %v11102_v29 = vld [vmem:[#allocation115_spill] sm:$0xff] }
 0x373   : > { %v5007_v38 = vpop.eup %5006  ;;  %vm4365_vm6 = vmpackc.low %vm11079_vm5, %vm11077_vm13  ;;  %v4366_v34 = vpack.c.bf16 %v5005_v30, %v4995_v6  ;;  %vm11091_vm11 = vnez %v11090_v26  ;;  %vm11103_vm1 = vnez %v11102_v29 }
 0x374   : > { %v5009_v0 = vpop.eup %5008  ;;  %4364 = vmatprep.mubr.msk.bf16.mxu1 %vm4362_vm10, %v4363_v41  ;;  %vm4368_vm12 = vmpackc.low %vm11083_vm2, %vm11081_vm0  ;;  %vm11089_vm10 = vnez %v11088_v52  ;;  %v11104_v41 = vld [vmem:[#allocation109_spill] sm:$0xff] }
 0x375   : > { %v5011_v11 = vpop.eup %5010  ;;  %v4273_v28 = vpack.c.bf16 %v5007_v38, %v5009_v0  ;;  %vm4275_vm8 = vmpackc.low %vm11087_vm14, %vm11085_vm9  ;;  %v11106_v38 = vld [vmem:[#allocation125_spill] sm:$0xff]  ;;  %v11110_v0 = vld [vmem:[#allocation124_spill] sm:$0xff] }
 0x376   : > { %v5013_v12 = vpop.eup %5012  ;;  %vm4371_vm15 = vmpackc.low %vm11091_vm11, %vm11089_vm10  ;;  %vm11107_vm13 = vnez %v11106_v38  ;;  %vm11111_vm0 = vnez %v11110_v0 }
 0x377   : > { %4271 = vmatmul.mubr.msk.bf16.gmra.mrb[52].mxu0 %vm4269_vm7, %v4270_v19  ;;  %v4369_v36 = vpack.c.bf16 %v5011_v11, %v5013_v12  ;;  %v5015_v9 = vpop.eup %5014  ;;  %vm11101_vm7 = vnez %v11100_v56  ;;  %v11114_v11 = vld [vmem:[#allocation137_spill] sm:$0xff] }
 0x378   : > { %4274 = vmatprep.mubr.msk.bf16.mxu0 %vm4272_vm3, %v4273_v28  ;;  %4367 = vmatmul.mubr.msk.bf16.gmra.mrb[52].mxu1 %vm4365_vm6, %v4366_v34  ;;  %v5017_v33 = vpop.eup %5016  ;;  %vm4278_vm4 = vmpackc.low %vm11103_vm1, %vm11101_vm7  ;;  %vm11105_vm3 = vnez %v11104_v41  ;;  %vm11109_vm6 = vnez %v11108_v7  ;;  %vm11115_vm9 = vnez %v11114_v11 }
 0x379   : > { %4370 = vmatprep.mubr.msk.bf16.mxu1 %vm4368_vm12, %v4369_v36  ;;  %v5019_v45 = vpop.eup %5018  ;;  %v4276_v31 = vpack.c.bf16 %v5015_v9, %v5017_v33  ;;  %vm4281_vm5 = vmpackc.low %vm11107_vm13, %vm11105_vm3  ;;  %vm11113_vm12 = vnez %v11112_v8  ;;  %v11116_v36 = vlaneseq }
 0x37a   : > { %v5021_v44 = vpop.eup %5020  ;;  %vm4374_vm2 = vmpackc.low %vm11111_vm0, %vm11109_vm6 }
 0x37b   : > { %v4372_v42 = vpack.c.bf16 %v5019_v45, %v5021_v44  ;;  %vm4377_vm14 = vmpackc.low %vm11115_vm9, %vm11113_vm12  ;;  %v9014_v9 = vand.u32 127, %v11116_v36 }
 0x37f   : > { %4277 = vmatmul.mubr.msk.bf16.gmra.mrb[56].mxu0 %vm4275_vm8, %v4276_v31  ;;  %vm3757_vm8 = vcmp.eq.s32.totalorder %v9014_v9, 64 }
 0x380   : > { %4373 = vmatmul.mubr.msk.bf16.gmra.mrb[56].mxu1 %vm4371_vm15, %v4372_v42 }
 0x39b   : > { %v2238_v17 = vpop.permute.xlu0 %2237 }
 0x39c   : > { %v2365_v59 = vsub.f32 %v11092_v58, %v2238_v17  ;;  %v2366_v43 = vsub.f32 %v11093_v21, %v2238_v17  ;;  %v2367_v35 = vsub.f32 %v11094_v32, %v2238_v17  ;;  %v2368_v2 = vsub.f32 %v11095_v15, %v2238_v17 }
 0x39e   : > { %v2613_v10 = vmul.f32 1.442695, %v2365_v59  ;;  %v2615_v25 = vmul.f32 1.442695, %v2366_v43  ;;  %v2617_v48 = vmul.f32 1.442695, %v2367_v35 }
 0x39f   : > { %v2619_v18 = vmul.f32 1.442695, %v2368_v2  ;;  %v2792_v39 = vpop.permute.xlu0 %2791 }
 0x3a0   : > { %v2243_v4 = vpop.permute.xlu1 %2242  ;;  %5022 = vpow2.f32 %v2613_v10  ;;  %v2949_v52 = vmul.f32 0.0, %v2792_v39 }
 0x3a1   : > { %v2369_v13 = vsub.f32 %v11096_v22, %v2243_v4  ;;  %v2370_v5 = vsub.f32 %v11097_v27, %v2243_v4  ;;  %v2371_v16 = vsub.f32 %v11098_v23, %v2243_v4  ;;  %5024 = vpow2.f32 %v2615_v25 }
 0x3a2   : > { %v2372_v6 = vsub.f32 %v11099_v60, %v2243_v4  ;;  %5026 = vpow2.f32 %v2617_v48 }
 0x3a3   : > { %v2621_v54 = vmul.f32 1.442695, %v2369_v13  ;;  %v2623_v50 = vmul.f32 1.442695, %v2370_v5  ;;  %v2625_v51 = vmul.f32 1.442695, %v2371_v16  ;;  %5028 = vpow2.f32 %v2619_v18  ;;  %v2802_v21 = vpop.permute.xlu0 %2801 }
 0x3a4   : > { %v2627_v61 = vmul.f32 1.442695, %v2372_v6  ;;  %v2797_v53 = vpop.permute.xlu1 %2796  ;;  %v2951_v16 = vmul.f32 0.0, %v2802_v21 }
 0x3a5   : > { %5030 = vpow2.f32 %v2621_v54  ;;  %v2950_v17 = vmul.f32 0.0, %v2797_v53 }
 0x3a6   : > { %5032 = vpow2.f32 %v2623_v50 }
 0x3a7   : > { %5034 = vpow2.f32 %v2625_v51 }
 0x3a8   : > { %5036 = vpow2.f32 %v2627_v61  ;;  %v2807_v27 = vpop.permute.xlu1 %2806  ;;  %v2812_v61 = vpop.permute.xlu0 %2811 }
 0x3a9   : > { %v2952_v54 = vmul.f32 0.0, %v2807_v27  ;;  %v2953_v7 = vmul.f32 0.0, %v2812_v61 }
 0x3aa   : > { %v5023_v40 = vpop.eup %5022 }
 0x3ab   : > { %v5025_v55 = vpop.eup %5024 }
 0x3ac   : > { %v5027_v63 = vpop.eup %5026  ;;  %v2817_v41 = vpop.permute.xlu1 %2816 }
 0x3ad   : > { %v5029_v37 = vpop.eup %5028  ;;  %v2954_v8 = vmul.f32 0.0, %v2817_v41 }
 0x3af   : > { %v5031_v57 = vpop.eup %5030 }
 0x3b0   : > { %v5033_v49 = vpop.eup %5032  ;;  %v4282_v20 = vpack.c.bf16 %v5031_v57, %v5023_v40  ;;  %v2827_v36 = vpop.permute.xlu1 %2826 }
 0x3b1   : > { %v5035_v24 = vpop.eup %5034  ;;  %v4279_v30 = vpack.c.bf16 %v5033_v49, %v5025_v55 }
 0x3b2   : > { %v5037_v62 = vpop.eup %5036  ;;  %v4378_v19 = vpack.c.bf16 %v5035_v24, %v5027_v63 }
 0x3b3   : > { %4280 = vmatprep.mubr.msk.bf16.mxu0 %vm4278_vm4, %v4279_v30  ;;  %v4375_v46 = vpack.c.bf16 %v5037_v62, %v5029_v37 }
 0x3b4   : > { %4283 = vmatmul.mubr.msk.bf16.gmra.mrb[60].mxu0 %vm4281_vm5, %v4282_v20 }
 0x3b5   : > { %4376 = vmatprep.mubr.msk.bf16.mxu1 %vm4374_vm2, %v4375_v46 }
 0x3b6   : > { %4379 = vmatmul.mubr.msk.bf16.gmra.mrb[60].mxu1 %vm4377_vm14, %v4378_v19 }
 0x3c4   : > { %v4403_v1 = vpop.f32.mrb[0].mxu0 }
 0x3c5   : > { %v4404_v12 = vpop.f32.mrb[1].mxu0 }
 0x3c6   : > { %v4515_v28 = vpop.f32.mrb[0].mxu1  ;;  %v4405_v34 = vadd.f32 %v4404_v12, %v4403_v1  ;;  %v4406_v3 = vpop.f32.mrb[2].mxu0 }
 0x3c7   : > { %v4516_v47 = vpop.f32.mrb[1].mxu1  ;;  %v4407_v14 = vpop.f32.mrb[3].mxu0 }
 0x3c8   : > { %v4517_v33 = vadd.f32 %v4516_v47, %v4515_v28  ;;  %v4518_v45 = vpop.f32.mrb[2].mxu1  ;;  %v4408_v31 = vadd.f32 %v4407_v14, %v4406_v3  ;;  %v2822_v1 = vpop.permute.xlu0 %2821 }
 0x3c9   : > { %v4519_v44 = vpop.f32.mrb[3].mxu1 }
 0x3ca   : > { %v3497_v26 = vadd.f32 %v4517_v33, %v4405_v34  ;;  %v4520_v42 = vadd.f32 %v4519_v44, %v4518_v45 }
 0x3cc   : > { %v3500_v58 = vadd.f32 %v4520_v42, %v4408_v31  ;;  %v9017_v59 = vadd.f32 %v3497_v26, %v2949_v52  ;;  %v2955_v42 = vmul.f32 0.0, %v2822_v1 }
 0x3ce   : > { %v4409_v43 = vpop.f32.mrb[4].mxu0  ;;  %v3758_v15 = vsel %vm3757_vm8, %v9017_v59, 0.0  ;;  %v9022_v2 = vadd.f32 %v3500_v58, %v2950_v17 }
 0x3cf   : > { %v4521_v32 = vpop.f32.mrb[4].mxu1  ;;  %v4410_v35 = vpop.f32.mrb[5].mxu0  ;;  %3790 = vadd.xlane.f32.xlu0 %v3758_v15 }
 0x3d0   : > { %v4411_v10 = vadd.f32 %v4410_v35, %v4409_v43  ;;  %v4522_v25 = vpop.f32.mrb[5].mxu1  ;;  %v4412_v48 = vpop.f32.mrb[6].mxu0  ;;  %v3759_v13 = vsel %vm3757_vm8, %v9022_v2, 0.0  ;;  %v2956_v43 = vmul.f32 0.0, %v2827_v36 }
 0x3d1   : > { %v4523_v18 = vadd.f32 %v4522_v25, %v4521_v32  ;;  %v4524_v4 = vpop.f32.mrb[6].mxu1  ;;  %v4413_v22 = vpop.f32.mrb[7].mxu0  ;;  %3792 = vadd.xlane.f32.xlu1 %v3759_v13 }
 0x3d2   : > { %v4414_v5 = vadd.f32 %v4413_v22, %v4412_v48  ;;  %v4525_v23 = vpop.f32.mrb[7].mxu1  ;;  %v2832_v15 = vpop.permute.xlu0 %2831 }
 0x3d3   : > { %v3505_v60 = vadd.f32 %v4523_v18, %v4411_v10  ;;  %v4526_v6 = vadd.f32 %v4525_v23, %v4524_v4  ;;  %v2957_v61 = vmul.f32 0.0, %v2832_v15 }
 0x3d5   : > { %v3508_v50 = vadd.f32 %v4526_v6, %v4414_v5  ;;  %v9027_v51 = vadd.f32 %v3505_v60, %v2951_v16  ;;  %v2837_v6 = vpop.permute.xlu1 %2836 }
 0x3d7   : > { %v4415_v40 = vpop.f32.mrb[8].mxu0  ;;  %v3760_v37 = vsel %vm3757_vm8, %v9027_v51, 0.0  ;;  %v9032_v57 = vadd.f32 %v3508_v50, %v2952_v54 }
 0x3d8   : > { %v4527_v55 = vpop.f32.mrb[8].mxu1  ;;  %v4416_v63 = vpop.f32.mrb[9].mxu0  ;;  %3794 = vadd.xlane.f32.xlu0 %v3760_v37 }
 0x3d9   : > { %v4417_v49 = vadd.f32 %v4416_v63, %v4415_v40  ;;  %v4528_v56 = vpop.f32.mrb[9].mxu1  ;;  %v4418_v29 = vpop.f32.mrb[10].mxu0  ;;  %v3761_v46 = vsel %vm3757_vm8, %v9032_v57, 0.0  ;;  %v2958_v63 = vmul.f32 0.0, %v2837_v6 }
 0x3da   : > { %v4529_v20 = vadd.f32 %v4528_v56, %v4527_v55  ;;  %v4530_v24 = vpop.f32.mrb[10].mxu1  ;;  %v4419_v30 = vpop.f32.mrb[11].mxu0 }
 0x3db   : > { %v4420_v38 = vadd.f32 %v4419_v30, %v4418_v29  ;;  %v4531_v62 = vpop.f32.mrb[11].mxu1  ;;  %v2842_v56 = vpop.permute.xlu0 %2841 }
 0x3dc   : > { %v3513_v0 = vadd.f32 %v4529_v20, %v4417_v49  ;;  %v4532_v19 = vadd.f32 %v4531_v62, %v4530_v24  ;;  %3796 = vadd.xlane.f32.xlu0 %v3761_v46 }
 0x3de   : > { %v3516_v11 = vadd.f32 %v4532_v19, %v4420_v38  ;;  %v9037_v39 = vadd.f32 %v3513_v0, %v2953_v7 }
 0x3df   : > { %v4421_v28 = vpop.f32.mrb[12].mxu0 }
 0x3e0   : > { %v4533_v12 = vpop.f32.mrb[12].mxu1  ;;  %v4422_v34 = vpop.f32.mrb[13].mxu0  ;;  %v3762_v47 = vsel %vm3757_vm8, %v9037_v39, 0.0  ;;  %v9042_v3 = vadd.f32 %v3516_v11, %v2954_v8 }
 0x3e1   : > { %v4423_v33 = vadd.f32 %v4422_v34, %v4421_v28  ;;  %v4534_v45 = vpop.f32.mrb[13].mxu1  ;;  %3798 = vadd.xlane.f32.xlu1 %v3762_v47  ;;  %v4424_v53 = vpop.f32.mrb[14].mxu0 }
 0x3e2   : > { %v4535_v14 = vadd.f32 %v4534_v45, %v4533_v12  ;;  %v4536_v31 = vpop.f32.mrb[14].mxu1  ;;  %v3763_v44 = vsel %vm3757_vm8, %v9042_v3, 0.0  ;;  %v4425_v52 = vpop.f32.mrb[15].mxu0  ;;  %v2959_v12 = vmul.f32 0.0, %v2842_v56 }
 0x3e3   : > { %v4537_v26 = vpop.f32.mrb[15].mxu1  ;;  %3800 = vadd.xlane.f32.xlu0 %v3763_v44  ;;  %v4426_v58 = vadd.f32 %v4425_v52, %v4424_v53  ;;  %v2847_v11 = vpop.permute.xlu1 %2846 }
 0x3e4   : > { %v3521_v17 = vadd.f32 %v4535_v14, %v4423_v33  ;;  %v4538_v21 = vadd.f32 %v4537_v26, %v4536_v31  ;;  %v2960_v36 = vmul.f32 0.0, %v2847_v11  ;;  %v2852_v52 = vpop.permute.xlu0 %2851 }
 0x3e6   : > { %v3524_v32 = vadd.f32 %v4538_v21, %v4426_v58  ;;  %v9047_v35 = vadd.f32 %v3521_v17, %v2955_v42 }
 0x3e7   : > { %v4427_v10 = vpop.f32.mrb[16].mxu0 }
 0x3e8   : > { %v4428_v48 = vpop.f32.mrb[17].mxu0  ;;  %v3764_v18 = vsel %vm3757_vm8, %v9047_v35, 0.0  ;;  %v9052_v4 = vadd.f32 %v3524_v32, %v2956_v43  ;;  %v2862_v56 = vpop.permute.xlu0 %2861 }
 0x3e9   : > { %v4539_v25 = vpop.f32.mrb[16].mxu1  ;;  %v4429_v22 = vadd.f32 %v4428_v48, %v4427_v10  ;;  %3802 = vadd.xlane.f32.xlu1 %v3764_v18  ;;  %v4430_v27 = vpop.f32.mrb[18].mxu0  ;;  %v2961_v18 = vmul.f32 0.0, %v2852_v52 }
 0x3ea   : > { %v4540_v13 = vpop.f32.mrb[17].mxu1  ;;  %v4431_v16 = vpop.f32.mrb[19].mxu0  ;;  %v3765_v60 = vsel %vm3757_vm8, %v9052_v4, 0.0 }
 0x3eb   : > { %v4541_v5 = vadd.f32 %v4540_v13, %v4539_v25  ;;  %v4542_v23 = vpop.f32.mrb[18].mxu1  ;;  %v4432_v54 = vadd.f32 %v4431_v16, %v4430_v27  ;;  %3804 = vadd.xlane.f32.xlu0 %v3765_v60  ;;  %v2857_v25 = vpop.permute.xlu1 %2856 }
 0x3ec   : > { %v4543_v50 = vpop.f32.mrb[19].mxu1  ;;  %v2962_v27 = vmul.f32 0.0, %v2857_v25 }
 0x3ed   : > { %v3529_v40 = vadd.f32 %v4541_v5, %v4429_v22  ;;  %v4544_v55 = vadd.f32 %v4543_v50, %v4542_v23 }
 0x3ef   : > { %v3532_v37 = vadd.f32 %v4544_v55, %v4432_v54  ;;  %v9057_v49 = vadd.f32 %v3529_v40, %v2957_v61 }
 0x3f0   : > { %v4433_v29 = vpop.f32.mrb[20].mxu0 }
 0x3f1   : > { %v4434_v24 = vpop.f32.mrb[21].mxu0  ;;  %v3766_v30 = vsel %vm3757_vm8, %v9057_v49, 0.0  ;;  %v9062_v41 = vadd.f32 %v3532_v37, %v2958_v63 }
 0x3f2   : > { %v4545_v20 = vpop.f32.mrb[20].mxu1  ;;  %v4435_v38 = vadd.f32 %v4434_v24, %v4433_v29  ;;  %3806 = vadd.xlane.f32.xlu1 %v3766_v30  ;;  %v4436_v7 = vpop.f32.mrb[22].mxu0 }
 0x3f3   : > { %v4546_v62 = vpop.f32.mrb[21].mxu1  ;;  %v4437_v46 = vpop.f32.mrb[23].mxu0  ;;  %v3767_v8 = vsel %vm3757_vm8, %v9062_v41, 0.0 }
 0x3f4   : > { %v4547_v0 = vadd.f32 %v4546_v62, %v4545_v20  ;;  %v4548_v19 = vpop.f32.mrb[22].mxu1  ;;  %v4438_v1 = vadd.f32 %v4437_v46, %v4436_v7  ;;  %3808 = vadd.xlane.f32.xlu0 %v3767_v8  ;;  %v2867_v30 = vpop.permute.xlu1 %2866  ;;  %v2963_v62 = vmul.f32 0.0, %v2862_v56 }
 0x3f5   : > { %v4549_v28 = vpop.f32.mrb[23].mxu1  ;;  %v2964_v46 = vmul.f32 0.0, %v2867_v30 }
 0x3f6   : > { %v3537_v34 = vadd.f32 %v4547_v0, %v4435_v38  ;;  %v4550_v47 = vadd.f32 %v4549_v28, %v4548_v19 }
 0x3f8   : > { %v3540_v33 = vadd.f32 %v4550_v47, %v4438_v1  ;;  %v9067_v45 = vadd.f32 %v3537_v34, %v2959_v12 }
 0x3fa   : > { %v3768_v14 = vsel %vm3757_vm8, %v9067_v45, 0.0  ;;  %v9072_v53 = vadd.f32 %v3540_v33, %v2960_v36 }
 0x3fb   : > { %3810 = vadd.xlane.f32.xlu1 %v3768_v14  ;;  %v2872_v14 = vpop.permute.xlu0 %2871 }
 0x3fc   : > { %v3769_v31 = vsel %vm3757_vm8, %v9072_v53, 0.0 }
 0x3fd   : > { %3812 = vadd.xlane.f32.xlu0 %v3769_v31 }
 0x40d   : > { %v4439_v44 = vpop.f32.mrb[24].mxu0 }
 0x40e   : > { %v4440_v26 = vpop.f32.mrb[25].mxu0 }
 0x40f   : > { %v4551_v42 = vpop.f32.mrb[24].mxu1  ;;  %v4441_v17 = vadd.f32 %v4440_v26, %v4439_v44  ;;  %v4442_v58 = vpop.f32.mrb[26].mxu0 }
 0x410   : > { %v4552_v21 = vpop.f32.mrb[25].mxu1  ;;  %v4443_v43 = vpop.f32.mrb[27].mxu0 }
 0x411   : > { %v4553_v32 = vadd.f32 %v4552_v21, %v4551_v42  ;;  %v4554_v15 = vpop.f32.mrb[26].mxu1  ;;  %v4444_v10 = vadd.f32 %v4443_v43, %v4442_v58  ;;  %v2965_v21 = vmul.f32 0.0, %v2872_v14 }
 0x412   : > { %v4555_v48 = vpop.f32.mrb[27].mxu1 }
 0x413   : > { %v3545_v22 = vadd.f32 %v4553_v32, %v4441_v17  ;;  %v4556_v13 = vadd.f32 %v4555_v48, %v4554_v15  ;;  %v2877_v17 = vpop.permute.xlu1 %2876 }
 0x415   : > { %v3548_v5 = vadd.f32 %v4556_v13, %v4444_v10  ;;  %v9077_v23 = vadd.f32 %v3545_v22, %v2961_v18  ;;  %v2966_v10 = vmul.f32 0.0, %v2877_v17 }
 0x416   : > { %v4445_v16 = vpop.f32.mrb[28].mxu0 }
 0x417   : > { %v3770_v60 = vsel %vm3757_vm8, %v9077_v23, 0.0  ;;  %v9082_v6 = vadd.f32 %v3548_v5, %v2962_v27  ;;  %v4446_v54 = vpop.f32.mrb[29].mxu0 }
 0x418   : > { %3814 = vadd.xlane.f32.xlu1 %v3770_v60  ;;  %v4447_v50 = vadd.f32 %v4446_v54, %v4445_v16  ;;  %v4448_v61 = vpop.f32.mrb[30].mxu0  ;;  %v2882_v54 = vpop.permute.xlu0 %2881 }
 0x419   : > { %v3771_v40 = vsel %vm3757_vm8, %v9082_v6, 0.0  ;;  %v4449_v55 = vpop.f32.mrb[31].mxu0  ;;  %v4557_v63 = vpop.f32.mrb[28].mxu1 }
 0x41a   : > { %3816 = vadd.xlane.f32.xlu0 %v3771_v40  ;;  %v4450_v37 = vadd.f32 %v4449_v55, %v4448_v61  ;;  %v4558_v29 = vpop.f32.mrb[29].mxu1 }
 0x41b   : > { %v4559_v20 = vadd.f32 %v4558_v29, %v4557_v63  ;;  %v4560_v24 = vpop.f32.mrb[30].mxu1  ;;  %v2967_v29 = vmul.f32 0.0, %v2882_v54 }
 0x41c   : > { %v4561_v38 = vpop.f32.mrb[31].mxu1 }
 0x41d   : > { %v3553_v7 = vadd.f32 %v4559_v20, %v4447_v50  ;;  %v4562_v0 = vadd.f32 %v4561_v38, %v4560_v24 }
 0x41e   : > { %v4451_v19 = vpop.f32.mrb[32].mxu0 }
 0x41f   : > { %v3556_v8 = vadd.f32 %v4562_v0, %v4450_v37  ;;  %v4452_v11 = vpop.f32.mrb[33].mxu0  ;;  %v9087_v1 = vadd.f32 %v3553_v7, %v2963_v62  ;;  %v2887_v37 = vpop.permute.xlu1 %2886 }
 0x420   : > { %v4453_v28 = vadd.f32 %v4452_v11, %v4451_v19  ;;  %v4454_v12 = vpop.f32.mrb[34].mxu0  ;;  %v2968_v30 = vmul.f32 0.0, %v2887_v37  ;;  %v2892_v0 = vpop.permute.xlu0 %2891 }
 0x421   : > { %v3772_v47 = vsel %vm3757_vm8, %v9087_v1, 0.0  ;;  %v4455_v36 = vpop.f32.mrb[35].mxu0  ;;  %v9092_v33 = vadd.f32 %v3556_v8, %v2964_v46 }
 0x422   : > { %v4563_v34 = vpop.f32.mrb[32].mxu1  ;;  %3818 = vadd.xlane.f32.xlu1 %v3772_v47  ;;  %v4456_v44 = vadd.f32 %v4455_v36, %v4454_v12 }
 0x423   : > { %v4564_v31 = vpop.f32.mrb[33].mxu1  ;;  %v3773_v42 = vsel %vm3757_vm8, %v9092_v33, 0.0 }
 0x424   : > { %v4565_v52 = vadd.f32 %v4564_v31, %v4563_v34  ;;  %v4566_v26 = vpop.f32.mrb[34].mxu1  ;;  %3820 = vadd.xlane.f32.xlu0 %v3773_v42  ;;  %v2969_v42 = vmul.f32 0.0, %v2892_v0 }
 0x425   : > { %v4567_v58 = vpop.f32.mrb[35].mxu1 }
 0x426   : > { %v3561_v43 = vadd.f32 %v4565_v52, %v4453_v28  ;;  %v4568_v32 = vadd.f32 %v4567_v58, %v4566_v26  ;;  %v2897_v52 = vpop.permute.xlu1 %2896 }
 0x427   : > { %v4457_v15 = vpop.f32.mrb[36].mxu0 }
 0x428   : > { %v3564_v25 = vadd.f32 %v4568_v32, %v4456_v44  ;;  %v4458_v48 = vpop.f32.mrb[37].mxu0  ;;  %v9097_v18 = vadd.f32 %v3561_v43, %v2965_v21  ;;  %v2970_v21 = vmul.f32 0.0, %v2897_v52 }
 0x429   : > { %v4459_v22 = vadd.f32 %v4458_v48, %v4457_v15  ;;  %v4460_v13 = vpop.f32.mrb[38].mxu0 }
 0x42a   : > { %v4569_v27 = vpop.f32.mrb[36].mxu1  ;;  %v3774_v5 = vsel %vm3757_vm8, %v9097_v18, 0.0  ;;  %v4461_v16 = vpop.f32.mrb[39].mxu0  ;;  %v9102_v60 = vadd.f32 %v3564_v25, %v2966_v10 }
 0x42b   : > { %v4570_v50 = vpop.f32.mrb[37].mxu1  ;;  %3822 = vadd.xlane.f32.xlu1 %v3774_v5  ;;  %v4462_v61 = vadd.f32 %v4461_v16, %v4460_v13  ;;  %v2902_v10 = vpop.permute.xlu0 %2901 }
 0x42c   : > { %v4571_v40 = vadd.f32 %v4570_v50, %v4569_v27  ;;  %v4572_v55 = vpop.f32.mrb[38].mxu1  ;;  %v3775_v63 = vsel %vm3757_vm8, %v9102_v60, 0.0 }
 0x42d   : > { %v4573_v56 = vpop.f32.mrb[39].mxu1  ;;  %3824 = vadd.xlane.f32.xlu0 %v3775_v63  ;;  %v2907_v63 = vpop.permute.xlu1 %2906 }
 0x42e   : > { %v3569_v20 = vadd.f32 %v4571_v40, %v4459_v22  ;;  %v4574_v24 = vadd.f32 %v4573_v56, %v4572_v55  ;;  %v2971_v56 = vmul.f32 0.0, %v2902_v10 }
 0x42f   : > { %v2912_v0 = vpop.permute.xlu0 %2911 }
 0x430   : > { %v3572_v38 = vadd.f32 %v4574_v24, %v4462_v61  ;;  %v9107_v7 = vadd.f32 %v3569_v20, %v2967_v29  ;;  %v2972_v24 = vmul.f32 0.0, %v2907_v63 }
 0x431   : > { %v4463_v62 = vpop.f32.mrb[40].mxu0 }
 0x432   : > { %v4464_v19 = vpop.f32.mrb[41].mxu0  ;;  %v3776_v11 = vsel %vm3757_vm8, %v9107_v7, 0.0  ;;  %v9112_v12 = vadd.f32 %v3572_v38, %v2968_v30 }
 0x433   : > { %v4575_v46 = vpop.f32.mrb[40].mxu1  ;;  %v4465_v8 = vadd.f32 %v4464_v19, %v4463_v62  ;;  %v4466_v28 = vpop.f32.mrb[42].mxu0  ;;  %3826 = vadd.xlane.f32.xlu1 %v3776_v11 }
 0x434   : > { %v4576_v34 = vpop.f32.mrb[41].mxu1  ;;  %v4467_v47 = vpop.f32.mrb[43].mxu0  ;;  %v3777_v44 = vsel %vm3757_vm8, %v9112_v12, 0.0 }
 0x435   : > { %v4577_v36 = vadd.f32 %v4576_v34, %v4575_v46  ;;  %v4578_v14 = vpop.f32.mrb[42].mxu1  ;;  %v4468_v31 = vadd.f32 %v4467_v47, %v4466_v28  ;;  %3828 = vadd.xlane.f32.xlu0 %v3777_v44 }
 0x436   : > { %v4579_v26 = vpop.f32.mrb[43].mxu1 }
 0x437   : > { %v3577_v17 = vadd.f32 %v4577_v36, %v4465_v8  ;;  %v4580_v58 = vadd.f32 %v4579_v26, %v4578_v14  ;;  %v2917_v26 = vpop.permute.xlu1 %2916 }
 0x439   : > { %v3580_v43 = vadd.f32 %v4580_v58, %v4468_v31  ;;  %v9117_v15 = vadd.f32 %v3577_v17, %v2969_v42  ;;  %v2973_v17 = vmul.f32 0.0, %v2912_v0 }
 0x43a   : > { %v4469_v32 = vpop.f32.mrb[44].mxu0 }
 0x43b   : > { %v4470_v25 = vpop.f32.mrb[45].mxu0  ;;  %v4581_v48 = vpop.f32.mrb[44].mxu1  ;;  %v3778_v13 = vsel %vm3757_vm8, %v9117_v15, 0.0  ;;  %v9122_v5 = vadd.f32 %v3580_v43, %v2970_v21  ;;  %v2974_v43 = vmul.f32 0.0, %v2917_v26 }
 0x43c   : > { %v4471_v22 = vadd.f32 %v4470_v25, %v4469_v32  ;;  %v4472_v27 = vpop.f32.mrb[46].mxu0  ;;  %v4582_v16 = vpop.f32.mrb[45].mxu1  ;;  %3830 = vadd.xlane.f32.xlu1 %v3778_v13 }
 0x43d   : > { %v4473_v54 = vpop.f32.mrb[47].mxu0  ;;  %v4583_v50 = vadd.f32 %v4582_v16, %v4581_v48  ;;  %v4584_v61 = vpop.f32.mrb[46].mxu1  ;;  %v3779_v55 = vsel %vm3757_vm8, %v9122_v5, 0.0 }
 0x43e   : > { %v4474_v40 = vadd.f32 %v4473_v54, %v4472_v27  ;;  %v4585_v37 = vpop.f32.mrb[47].mxu1  ;;  %3832 = vadd.xlane.f32.xlu0 %v3779_v55  ;;  %v2922_v48 = vpop.permute.xlu0 %2921 }
 0x43f   : > { %v3585_v29 = vadd.f32 %v4583_v50, %v4471_v22  ;;  %v4586_v20 = vadd.f32 %v4585_v37, %v4584_v61 }
 0x441   : > { %v3588_v30 = vadd.f32 %v4586_v20, %v4474_v40  ;;  %v9127_v62 = vadd.f32 %v3585_v29, %v2971_v56  ;;  %v2927_v29 = vpop.permute.xlu1 %2926 }
 0x442   : > { %v4475_v38 = vpop.f32.mrb[48].mxu0  ;;  %v2976_v0 = vmul.f32 0.0, %v2927_v29 }
 0x443   : > { %v4476_v19 = vpop.f32.mrb[49].mxu0  ;;  %v4587_v46 = vpop.f32.mrb[48].mxu1  ;;  %v3780_v11 = vsel %vm3757_vm8, %v9127_v62, 0.0  ;;  %v9132_v34 = vadd.f32 %v3588_v30, %v2972_v24  ;;  %v2975_v24 = vmul.f32 0.0, %v2922_v48 }
 0x444   : > { %v4477_v8 = vadd.f32 %v4476_v19, %v4475_v38  ;;  %v4478_v28 = vpop.f32.mrb[50].mxu0  ;;  %v4588_v47 = vpop.f32.mrb[49].mxu1  ;;  %3834 = vadd.xlane.f32.xlu1 %v3780_v11 }
 0x445   : > { %v4479_v36 = vpop.f32.mrb[51].mxu0  ;;  %v4589_v14 = vadd.f32 %v4588_v47, %v4587_v46  ;;  %v4590_v31 = vpop.f32.mrb[50].mxu1  ;;  %v3781_v52 = vsel %vm3757_vm8, %v9132_v34, 0.0 }
 0x446   : > { %v4480_v44 = vadd.f32 %v4479_v36, %v4478_v28  ;;  %v4591_v42 = vpop.f32.mrb[51].mxu1  ;;  %3836 = vadd.xlane.f32.xlu0 %v3781_v52  ;;  %v2932_v11 = vpop.permute.xlu0 %2931 }
 0x447   : > { %v3593_v58 = vadd.f32 %v4589_v14, %v4477_v8  ;;  %v4592_v21 = vadd.f32 %v4591_v42, %v4590_v31 }
 0x449   : > { %v3596_v32 = vadd.f32 %v4592_v21, %v4480_v44  ;;  %v9137_v25 = vadd.f32 %v3593_v58, %v2973_v17 }
 0x44a   : > { %v4481_v10 = vpop.f32.mrb[52].mxu0 }
 0x44b   : > { %v4482_v22 = vpop.f32.mrb[53].mxu0  ;;  %v4593_v13 = vpop.f32.mrb[52].mxu1  ;;  %v3782_v16 = vsel %vm3757_vm8, %v9137_v25, 0.0  ;;  %v9142_v50 = vadd.f32 %v3596_v32, %v2974_v43 }
 0x44c   : > { %v4483_v27 = vadd.f32 %v4482_v22, %v4481_v10  ;;  %v4484_v54 = vpop.f32.mrb[54].mxu0  ;;  %v4594_v61 = vpop.f32.mrb[53].mxu1  ;;  %3838 = vadd.xlane.f32.xlu1 %v3782_v16  ;;  %v2977_v10 = vmul.f32 0.0, %v2932_v11 }
 0x44d   : > { %v4485_v40 = vpop.f32.mrb[55].mxu0  ;;  %v4595_v55 = vadd.f32 %v4594_v61, %v4593_v13  ;;  %v4596_v63 = vpop.f32.mrb[54].mxu1  ;;  %v3783_v56 = vsel %vm3757_vm8, %v9142_v50, 0.0 }
 0x44e   : > { %v4486_v37 = vadd.f32 %v4485_v40, %v4484_v54  ;;  %v4597_v20 = vpop.f32.mrb[55].mxu1  ;;  %3840 = vadd.xlane.f32.xlu0 %v3783_v56  ;;  %v2937_v43 = vpop.permute.xlu1 %2936 }
 0x44f   : > { %v3601_v30 = vadd.f32 %v4595_v55, %v4483_v27  ;;  %v4598_v38 = vadd.f32 %v4597_v20, %v4596_v63  ;;  %v2978_v13 = vmul.f32 0.0, %v2937_v43  ;;  %v9164_v40 = vpop.permute.xlu0 %2941 }
 0x451   : > { %v3604_v19 = vadd.f32 %v4598_v38, %v4486_v37  ;;  %v9147_v8 = vadd.f32 %v3601_v30, %v2975_v24 }
 0x452   : > { %v4487_v46 = vpop.f32.mrb[56].mxu0  ;;  %v9169_v63 = vpop.permute.xlu1 %2946 }
 0x453   : > { %v4488_v28 = vpop.f32.mrb[57].mxu0  ;;  %v4599_v47 = vpop.f32.mrb[56].mxu1  ;;  %v3784_v14 = vsel %vm3757_vm8, %v9147_v8, 0.0  ;;  %v9152_v44 = vadd.f32 %v3604_v19, %v2976_v0 }
 0x454   : > { %v4489_v36 = vadd.f32 %v4488_v28, %v4487_v46  ;;  %v4490_v31 = vpop.f32.mrb[58].mxu0  ;;  %v4600_v52 = vpop.f32.mrb[57].mxu1  ;;  %3842 = vadd.xlane.f32.xlu1 %v3784_v14 }
 0x455   : > { %v4491_v26 = vpop.f32.mrb[59].mxu0  ;;  %v4601_v42 = vadd.f32 %v4600_v52, %v4599_v47  ;;  %v4602_v17 = vpop.f32.mrb[58].mxu1  ;;  %v3785_v21 = vsel %vm3757_vm8, %v9152_v44, 0.0 }
 0x456   : > { %v4492_v58 = vadd.f32 %v4491_v26, %v4490_v31  ;;  %v4603_v32 = vpop.f32.mrb[59].mxu1  ;;  %3844 = vadd.xlane.f32.xlu0 %v3785_v21 }
 0x457   : > { %v3609_v48 = vadd.f32 %v4601_v42, %v4489_v36  ;;  %v4604_v22 = vadd.f32 %v4603_v32, %v4602_v17 }
 0x459   : > { %v3612_v27 = vadd.f32 %v4604_v22, %v4492_v58  ;;  %v9157_v16 = vadd.f32 %v3609_v48, %v2977_v10 }
 0x45b   : > { %v3786_v54 = vsel %vm3757_vm8, %v9157_v16, 0.0  ;;  %v9162_v61 = vadd.f32 %v3612_v27, %v2978_v13 }
 0x45c   : > { %3846 = vadd.xlane.f32.xlu1 %v3786_v54  ;;  %v3791_v37 = vpop.xlane.xlu0 %3790 }
 0x45d   : > { %v3787_v55 = vsel %vm3757_vm8, %v9162_v61, 0.0  ;;  %v3854_v56 = vmax.f32 %v3791_v37, 1e-20 }
 0x45e   : > { %3848 = vadd.xlane.f32.xlu0 %v3787_v55  ;;  %v3793_v29 = vpop.xlane.xlu1 %3792 }
 0x45f   : > { %5038 = vrcp.f32 %v3854_v56  ;;  %v3855_v20 = vmax.f32 %v3793_v29, 1e-20 }
 0x461   : > { %5040 = vrcp.f32 %v3855_v20 }
 0x465   : > { %v3795_v24 = vpop.xlane.xlu0 %3794 }
 0x466   : > { %v3856_v30 = vmax.f32 %v3795_v24, 1e-20 }
 0x468   : > { %5042 = vrcp.f32 %v3856_v30 }
 0x469   : > { %v3797_v38 = vpop.xlane.xlu0 %3796  ;;  %v5039_v0 = vpop.eup %5038 }
 0x46a   : > { %v3857_v19 = vmax.f32 %v3797_v38, 1e-20  ;;  %v3918_v46 = vmul.f32 %v5039_v0, %v9017_v59 }
 0x46b   : > { %v5041_v11 = vpop.eup %5040 }
 0x46c   : > { %5044 = vrcp.f32 %v3857_v19  ;;  %v3950_v28 = vmax.f32 %v3918_v46, 0.0  ;;  %v3919_v47 = vmul.f32 %v5041_v11, %v9022_v2 }
 0x46e   : > { %v3799_v36 = vpop.xlane.xlu1 %3798  ;;  %3982 = vst [vmem:[%s9176_s26] sm:$0xff] %v3950_v28  ;;  %v3951_v31 = vmax.f32 %v3919_v47, 0.0 }
 0x46f   : > { %v3858_v14 = vmax.f32 %v3799_v36, 1e-20 }
 0x470   : > { %v3801_v52 = vpop.xlane.xlu0 %3800  ;;  %3983 = vst [vmem:[%s9176_s26 + $0x8] sm:$0xff] %v3951_v31 }
 0x471   : > { %5046 = vrcp.f32 %v3858_v14  ;;  %v3859_v26 = vmax.f32 %v3801_v52, 1e-20 }
 0x472   : > { %v5043_v59 = vpop.eup %5042 }
 0x473   : > { %5048 = vrcp.f32 %v3859_v26  ;;  %v3920_v42 = vmul.f32 %v5043_v59, %v9027_v51 }
 0x475   : > { %v3952_v17 = vmax.f32 %v3920_v42, 0.0 }
 0x476   : > { %v3803_v2 = vpop.xlane.xlu1 %3802  ;;  %v5045_v58 = vpop.eup %5044 }
 0x477   : > { %v3860_v21 = vmax.f32 %v3803_v2, 1e-20  ;;  %3984 = vst [vmem:[%s9176_s26 + $0x10] sm:$0xff] %v3952_v17  ;;  %v3921_v43 = vmul.f32 %v5045_v58, %v9032_v57  ;;  %v2979_v17 = vmul.f32 0.0, %v9164_v40 }
 0x478   : > { %v3805_v32 = vpop.xlane.xlu0 %3804 }
 0x479   : > { %5050 = vrcp.f32 %v3860_v21  ;;  %v3861_v10 = vmax.f32 %v3805_v32, 1e-20  ;;  %v3953_v48 = vmax.f32 %v3921_v43, 0.0  ;;  %v2980_v43 = vmul.f32 0.0, %v9169_v63 }
 0x47b   : > { %v5047_v22 = vpop.eup %5046  ;;  %5052 = vrcp.f32 %v3861_v10  ;;  %3985 = vst [vmem:[%s9176_s26 + $0x18] sm:$0xff] %v3953_v48 }
 0x47c   : > { %v3922_v13 = vmul.f32 %v5047_v22, %v9037_v39 }
 0x47d   : > { %v5049_v27 = vpop.eup %5048 }
 0x47e   : > { %v3954_v51 = vmax.f32 %v3922_v13, 0.0  ;;  %v3923_v54 = vmul.f32 %v5049_v27, %v9042_v3 }
 0x47f   : > { %v3807_v55 = vpop.xlane.xlu1 %3806 }
 0x480   : > { %v3862_v37 = vmax.f32 %v3807_v55, 1e-20  ;;  %3986 = vst [vmem:[%s9176_s26 + $0x20] sm:$0xff] %v3954_v51  ;;  %v3955_v56 = vmax.f32 %v3923_v54, 0.0 }
 0x481   : > { %v3809_v29 = vpop.xlane.xlu0 %3808 }
 0x482   : > { %5054 = vrcp.f32 %v3862_v37  ;;  %v3863_v57 = vmax.f32 %v3809_v29, 1e-20  ;;  %3987 = vst [vmem:[%s9176_s26 + $0x28] sm:$0xff] %v3955_v56 }
 0x483   : > { %v5051_v20 = vpop.eup %5050 }
 0x484   : > { %5056 = vrcp.f32 %v3863_v57  ;;  %v3924_v24 = vmul.f32 %v5051_v20, %v9047_v35 }
 0x485   : > { %v5053_v38 = vpop.eup %5052 }
 0x486   : > { %v3956_v0 = vmax.f32 %v3924_v24, 0.0  ;;  %v3925_v19 = vmul.f32 %v5053_v38, %v9052_v4 }
 0x487   : > { %v4493_v30 = vpop.f32.mrb[60].mxu0 }
 0x488   : > { %v4494_v39 = vpop.f32.mrb[61].mxu0  ;;  %v3811_v3 = vpop.xlane.xlu1 %3810  ;;  %3988 = vst [vmem:[%s9176_s26 + $0x30] sm:$0xff] %v3956_v0  ;;  %v3957_v14 = vmax.f32 %v3925_v19, 0.0 }
 0x489   : > { %v4605_v46 = vpop.f32.mrb[60].mxu1  ;;  %v4495_v11 = vadd.f32 %v4494_v39, %v4493_v30  ;;  %v3864_v28 = vmax.f32 %v3811_v3, 1e-20  ;;  %v4496_v36 = vpop.f32.mrb[62].mxu0 }
 0x48a   : > { %v4606_v47 = vpop.f32.mrb[61].mxu1  ;;  %v3813_v31 = vpop.xlane.xlu0 %3812  ;;  %3989 = vst [vmem:[%s9176_s26 + $0x38] sm:$0xff] %v3957_v14 }
 0x48b   : > { %v4607_v52 = vadd.f32 %v4606_v47, %v4605_v46  ;;  %v4608_v26 = vpop.f32.mrb[62].mxu1  ;;  %5058 = vrcp.f32 %v3864_v28  ;;  %v3865_v35 = vmax.f32 %v3813_v31, 1e-20  ;;  %v4497_v59 = vpop.f32.mrb[63].mxu0 }
 0x48c   : > { %v4609_v42 = vpop.f32.mrb[63].mxu1  ;;  %v4498_v2 = vadd.f32 %v4497_v59, %v4496_v36  ;;  %v5055_v21 = vpop.eup %5054 }
 0x48d   : > { %v3617_v4 = vadd.f32 %v4607_v52, %v4495_v11  ;;  %v4610_v58 = vadd.f32 %v4609_v42, %v4608_v26  ;;  %5060 = vrcp.f32 %v3865_v35  ;;  %v3926_v32 = vmul.f32 %v5055_v21, %v9057_v49 }
 0x48e   : > { %v5057_v22 = vpop.eup %5056 }
 0x48f   : > { %v3620_v10 = vadd.f32 %v4610_v58, %v4498_v2  ;;  %v9195_v48 = vadd.f32 %v3617_v4, %v2979_v17  ;;  %v3958_v13 = vmax.f32 %v3926_v32, 0.0  ;;  %v3927_v40 = vmul.f32 %v5057_v22, %v9062_v41 }
 0x491   : > { %v3788_v27 = vsel %vm3757_vm8, %v9195_v48, 0.0  ;;  %v9201_v51 = vadd.f32 %v3620_v10, %v2980_v43  ;;  %3990 = vst [vmem:[%s9176_s26 + $0x40] sm:$0xff] %v3958_v13  ;;  %v3959_v63 = vmax.f32 %v3927_v40, 0.0 }
 0x492   : > { %3850 = vadd.xlane.f32.xlu1 %v3788_v27 }
 0x493   : > { %v3789_v49 = vsel %vm3757_vm8, %v9201_v51, 0.0  ;;  %3991 = vst [vmem:[%s9176_s26 + $0x48] sm:$0xff] %v3959_v63 }
 0x494   : > { %3852 = vadd.xlane.f32.xlu0 %v3789_v49 }
 0x495   : > { %v5059_v54 = vpop.eup %5058 }
 0x496   : > { %v3928_v55 = vmul.f32 %v5059_v54, %v9067_v45 }
 0x497   : > { %v5061_v41 = vpop.eup %5060 }
 0x498   : > { %v3960_v37 = vmax.f32 %v3928_v55, 0.0  ;;  %v3929_v56 = vmul.f32 %v5061_v41, %v9072_v53 }
 0x49a   : > { %3992 = vst [vmem:[%s9176_s26 + $0x50] sm:$0xff] %v3960_v37  ;;  %v3961_v29 = vmax.f32 %v3929_v56, 0.0 }
 0x49c   : > { %3993 = vst [vmem:[%s9176_s26 + $0x58] sm:$0xff] %v3961_v29 }
 0x4a5   : > { %v3815_v57 = vpop.xlane.xlu1 %3814 }
 0x4a6   : > { %v3866_v20 = vmax.f32 %v3815_v57, 1e-20 }
 0x4a7   : > { %v3817_v24 = vpop.xlane.xlu0 %3816 }
 0x4a8   : > { %5062 = vrcp.f32 %v3866_v20  ;;  %v3867_v9 = vmax.f32 %v3817_v24, 1e-20 }
 0x4aa   : > { %5064 = vrcp.f32 %v3867_v9 }
 0x4af   : > { %v3819_v30 = vpop.xlane.xlu1 %3818 }
 0x4b0   : > { %v3868_v39 = vmax.f32 %v3819_v30, 1e-20 }
 0x4b1   : > { %v3821_v0 = vpop.xlane.xlu0 %3820 }
 0x4b2   : > { %v5063_v38 = vpop.eup %5062  ;;  %5066 = vrcp.f32 %v3868_v39  ;;  %v3869_v53 = vmax.f32 %v3821_v0, 1e-20 }
 0x4b3   : > { %v3930_v45 = vmul.f32 %v5063_v38, %v9077_v23 }
 0x4b4   : > { %v5065_v19 = vpop.eup %5064  ;;  %5068 = vrcp.f32 %v3869_v53 }
 0x4b5   : > { %v3962_v3 = vmax.f32 %v3930_v45, 0.0  ;;  %v3931_v46 = vmul.f32 %v5065_v19, %v9082_v6 }
 0x4b7   : > { %3994 = vst [vmem:[%s9176_s26 + $0x60] sm:$0xff] %v3962_v3  ;;  %v3963_v11 = vmax.f32 %v3931_v46, 0.0 }
 0x4b8   : > { %v3823_v28 = vpop.xlane.xlu1 %3822 }
 0x4b9   : > { %3995 = vst [vmem:[%s9176_s26 + $0x68] sm:$0xff] %v3963_v11  ;;  %v3870_v47 = vmax.f32 %v3823_v28, 1e-20 }
 0x4ba   : > { %v3825_v36 = vpop.xlane.xlu0 %3824 }
 0x4bb   : > { %5070 = vrcp.f32 %v3870_v47  ;;  %v3871_v14 = vmax.f32 %v3825_v36, 1e-20 }
 0x4bc   : > { %v5067_v31 = vpop.eup %5066 }
 0x4bd   : > { %5072 = vrcp.f32 %v3871_v14  ;;  %v3932_v23 = vmul.f32 %v5067_v31, %v9087_v1 }
 0x4be   : > { %v5069_v52 = vpop.eup %5068 }
 0x4bf   : > { %v3964_v26 = vmax.f32 %v3932_v23, 0.0  ;;  %v3933_v35 = vmul.f32 %v5069_v52, %v9092_v33 }
 0x4c0   : > { %v3827_v6 = vpop.xlane.xlu1 %3826 }
 0x4c1   : > { %v3872_v59 = vmax.f32 %v3827_v6, 1e-20  ;;  %3996 = vst [vmem:[%s9176_s26 + $0x70] sm:$0xff] %v3964_v26  ;;  %v3965_v42 = vmax.f32 %v3933_v35, 0.0 }
 0x4c2   : > { %v3829_v17 = vpop.xlane.xlu0 %3828 }
 0x4c3   : > { %5074 = vrcp.f32 %v3872_v59  ;;  %v3873_v4 = vmax.f32 %v3829_v17, 1e-20  ;;  %3997 = vst [vmem:[%s9176_s26 + $0x78] sm:$0xff] %v3965_v42 }
 0x4c5   : > { %v5071_v2 = vpop.eup %5070  ;;  %5076 = vrcp.f32 %v3873_v4 }
 0x4c6   : > { %v3934_v58 = vmul.f32 %v5071_v2, %v9097_v18 }
 0x4c7   : > { %v5073_v21 = vpop.eup %5072 }
 0x4c8   : > { %v3966_v1 = vmax.f32 %v3934_v58, 0.0  ;;  %v3935_v43 = vmul.f32 %v5073_v21, %v9102_v60 }
 0x4c9   : > { %v3831_v32 = vpop.xlane.xlu1 %3830 }
 0x4ca   : > { %v3874_v33 = vmax.f32 %v3831_v32, 1e-20  ;;  %3998 = vst [vmem:[%s9176_s26 + $0x80] sm:$0xff] %v3966_v1  ;;  %v3967_v10 = vmax.f32 %v3935_v43, 0.0 }
 0x4cb   : > { %v3833_v22 = vpop.xlane.xlu0 %3832 }
 0x4cc   : > { %5078 = vrcp.f32 %v3874_v33  ;;  %v3875_v13 = vmax.f32 %v3833_v22, 1e-20  ;;  %3999 = vst [vmem:[%s9176_s26 + $0x88] sm:$0xff] %v3967_v10 }
 0x4cd   : > { %v5075_v40 = vpop.eup %5074 }
 0x4ce   : > { %5080 = vrcp.f32 %v3875_v13  ;;  %v3936_v27 = vmul.f32 %v5075_v40, %v9107_v7 }
 0x4cf   : > { %v5077_v63 = vpop.eup %5076 }
 0x4d0   : > { %v3968_v18 = vmax.f32 %v3936_v27, 0.0  ;;  %v3937_v49 = vmul.f32 %v5077_v63, %v9112_v12 }
 0x4d1   : > { %v3835_v54 = vpop.xlane.xlu1 %3834 }
 0x4d2   : > { %v3876_v60 = vmax.f32 %v3835_v54, 1e-20  ;;  %4000 = vst [vmem:[%s9176_s26 + $0x90] sm:$0xff] %v3968_v18  ;;  %v3969_v55 = vmax.f32 %v3937_v49, 0.0 }
 0x4d3   : > { %v3837_v41 = vpop.xlane.xlu0 %3836 }
 0x4d4   : > { %5082 = vrcp.f32 %v3876_v60  ;;  %v3877_v37 = vmax.f32 %v3837_v41, 1e-20  ;;  %4001 = vst [vmem:[%s9176_s26 + $0x98] sm:$0xff] %v3969_v55 }
 0x4d6   : > { %v5079_v56 = vpop.eup %5078  ;;  %5084 = vrcp.f32 %v3877_v37 }
 0x4d7   : > { %v3938_v29 = vmul.f32 %v5079_v56, %v9117_v15 }
 0x4d8   : > { %v5081_v57 = vpop.eup %5080 }
 0x4d9   : > { %v3970_v7 = vmax.f32 %v3938_v29, 0.0  ;;  %v3939_v20 = vmul.f32 %v5081_v57, %v9122_v5  ;;  %v3839_v24 = vpop.xlane.xlu1 %3838 }
 0x4da   : > { %v3878_v12 = vmax.f32 %v3839_v24, 1e-20 }
 0x4db   : > { %4002 = vst [vmem:[%s9176_s26 + $0xa0] sm:$0xff] %v3970_v7  ;;  %v3971_v9 = vmax.f32 %v3939_v20, 0.0  ;;  %v3841_v30 = vpop.xlane.xlu0 %3840 }
 0x4dc   : > { %5086 = vrcp.f32 %v3878_v12  ;;  %v3879_v38 = vmax.f32 %v3841_v30, 1e-20 }
 0x4dd   : > { %4003 = vst [vmem:[%s9176_s26 + $0xa8] sm:$0xff] %v3971_v9 }
 0x4de   : > { %v5083_v39 = vpop.eup %5082  ;;  %5088 = vrcp.f32 %v3879_v38 }
 0x4df   : > { %v3940_v45 = vmul.f32 %v5083_v39, %v9127_v62 }
 0x4e0   : > { %v5085_v0 = vpop.eup %5084 }
 0x4e1   : > { %v3972_v15 = vmax.f32 %v3940_v45, 0.0  ;;  %v3941_v19 = vmul.f32 %v5085_v0, %v9132_v34  ;;  %v3843_v53 = vpop.xlane.xlu1 %3842 }
 0x4e2   : > { %v3880_v5 = vmax.f32 %v3843_v53, 1e-20 }
 0x4e3   : > { %4004 = vst [vmem:[%s9176_s26 + $0xb0] sm:$0xff] %v3972_v15  ;;  %v3973_v3 = vmax.f32 %v3941_v19, 0.0  ;;  %v3845_v46 = vpop.xlane.xlu0 %3844 }
 0x4e4   : > { %5090 = vrcp.f32 %v3880_v5  ;;  %v3881_v11 = vmax.f32 %v3845_v46, 1e-20 }
 0x4e5   : > { %4005 = vst [vmem:[%s9176_s26 + $0xb8] sm:$0xff] %v3973_v3 }
 0x4e6   : > { %v5087_v28 = vpop.eup %5086  ;;  %5092 = vrcp.f32 %v3881_v11 }
 0x4e7   : > { %v3942_v47 = vmul.f32 %v5087_v28, %v9137_v25 }
 0x4e8   : > { %v5089_v36 = vpop.eup %5088 }
 0x4e9   : > { %v3974_v62 = vmax.f32 %v3942_v47, 0.0  ;;  %v3943_v14 = vmul.f32 %v5089_v36, %v9142_v50  ;;  %v3847_v34 = vpop.xlane.xlu1 %3846 }
 0x4ea   : > { %v3882_v31 = vmax.f32 %v3847_v34, 1e-20 }
 0x4eb   : > { %4006 = vst [vmem:[%s9176_s26 + $0xc0] sm:$0xff] %v3974_v62  ;;  %v3975_v23 = vmax.f32 %v3943_v14, 0.0  ;;  %v3849_v52 = vpop.xlane.xlu0 %3848 }
 0x4ec   : > { %5094 = vrcp.f32 %v3882_v31  ;;  %v3883_v26 = vmax.f32 %v3849_v52, 1e-20 }
 0x4ed   : > { %4007 = vst [vmem:[%s9176_s26 + $0xc8] sm:$0xff] %v3975_v23 }
 0x4ee   : > { %v5091_v35 = vpop.eup %5090  ;;  %5096 = vrcp.f32 %v3883_v26 }
 0x4ef   : > { %v3944_v25 = vmul.f32 %v5091_v35, %v9147_v8 }
 0x4f0   : > { %v5093_v6 = vpop.eup %5092 }
 0x4f1   : > { %v3976_v59 = vmax.f32 %v3944_v25, 0.0  ;;  %v3945_v42 = vmul.f32 %v5093_v6, %v9152_v44 }
 0x4f3   : > { %4008 = vst [vmem:[%s9176_s26 + $0xd0] sm:$0xff] %v3976_v59  ;;  %v3977_v50 = vmax.f32 %v3945_v42, 0.0 }
 0x4f5   : > { %4009 = vst [vmem:[%s9176_s26 + $0xd8] sm:$0xff] %v3977_v50 }
 0x4f6   : > { %v5095_v17 = vpop.eup %5094 }
 0x4f7   : > { %v3946_v4 = vmul.f32 %v5095_v17, %v9157_v16 }
 0x4f8   : > { %v5097_v2 = vpop.eup %5096 }
 0x4f9   : > { %v3978_v58 = vmax.f32 %v3946_v4, 0.0  ;;  %v3947_v21 = vmul.f32 %v5097_v2, %v9162_v61 }
 0x4fb   : > { %4010 = vst [vmem:[%s9176_s26 + $0xe0] sm:$0xff] %v3978_v58  ;;  %v3979_v1 = vmax.f32 %v3947_v21, 0.0 }
 0x4fd   : > { %4011 = vst [vmem:[%s9176_s26 + $0xe8] sm:$0xff] %v3979_v1 }
 0x51f   : > { %v3851_v8 = vpop.xlane.xlu1 %3850 }
 0x520   : > { %v3884_v43 = vmax.f32 %v3851_v8, 1e-20 }
 0x521   : > { %v3853_v44 = vpop.xlane.xlu0 %3852 }
 0x522   : > { %5098 = vrcp.f32 %v3884_v43  ;;  %v3885_v32 = vmax.f32 %v3853_v44, 1e-20 }
 0x524   : > { %5100 = vrcp.f32 %v3885_v32 }
 0x52c   : > { %v5099_v33 = vpop.eup %5098 }
 0x52d   : > { %v3948_v16 = vmul.f32 %v5099_v33, %v9195_v48 }
 0x52e   : > { %v5101_v10 = vpop.eup %5100 }
 0x52f   : > { %v3980_v61 = vmax.f32 %v3948_v16, 0.0  ;;  %v3949_v22 = vmul.f32 %v5101_v10, %v9201_v51 }
 0x531   : > { %4012 = vst [vmem:[%s9176_s26 + $0xf0] sm:$0xff] %v3980_v61  ;;  %v3981_v13 = vmax.f32 %v3949_v22, 0.0 }
 0x533   : > { %4013 = vst [vmem:[%s9176_s26 + $0xf8] sm:$0xff] %v3981_v13 }
 0x534   : > { %5143 = shalt.err (!%p5140_p7)
}
 0x535   : > { %s5144_s12 = scalar_lea.hbm %s9255_s29, 4096  ;;  %s5148_s21 = scalar_lea.hbm %s9313_s4, 8192 }
 0x536   : > { %p5145_p9 = scmp.ne.s32.totalorder %s9255_s29, %s5144_s12  ;;  %p5149_p2 = scmp.lt.u32.totalorder %s9255_s29, %s9313_s4 }
 0x537   : > { %p5150_p4 = scmp.lt.u32.totalorder %s5148_s21, %s5144_s12  ;;  %p5152_p10 = scmp.lt.u32.totalorder %s5144_s12, %s9255_s29 }
 0x538   : > { %p5146_p12 = pnand %p5145_p9, %p11117_p11 }
 0x539   : > { %p5151_p8 = por %p5150_p4, %p5149_p2 }
 0x53a   : > { %p5147_p0 = pneg %p5146_p12 }
 0x53b   : > { %p5153_p13 = por %p5152_p10, %p5151_p8 }
 0x53d   : > { %p5154_p1 = pnand %p5153_p13, %p5147_p0 }
 0x53f   : > { %5157 = shalt.err (!%p5154_p1)
}
 0x540   : > { %s5220_s26 = smov 128   ;;  %s5221_s5 = smov 8  }
 0x541   : > { %4615 = dma.vmem_to_hbm [thread:$0]  (%p11117_p11), %s9257_s8, 4096, %s9255_s29, %s9263_s18, %s5220_s26, %s5220_s26, %s5221_s5  }
 0x542 PF: > { %p4627_p3 = scmp.ge.s32.totalorder %s5212_s20, 2  ;;  %s4043_s6 = sand.u32 1, %s5192_s15  }
 0x543   : > { %p11118_p5 = scmp.ne.s32.totalorder %s9926_s27, 0  ;;  %s4044_s7 = scalar_lea.sflag [#allocation7], %s4043_s6 }
 0x545   : > { %p4622_p6 = pnand %p4627_p3, %p11118_p5 }
 0x547   : > { %5187 = dma.done.wait (!%p4622_p6), %s4044_s7, 4096  }
 0x548   : > { %5189 = vsyncadd (!%p4622_p6), %s4044_s7, 4294963200  ;;  %s18_s20 = sadd.s32 1, %s5212_s20   ;;  %s11119_s15 = smov %s5196_s16 }
 0x549   : > { %p15_p7 = scmp.ge.s32.totalorder %s18_s20, 4   ;;  %s11120_s16 = smov %s5200_s17 }
 0x54a   : > { %s11121_s17 = smov %s5300_s28  ;;  %s11122_s18 = smov %s5208_s19 }
 0x54b   : > { %s11123_s19 = smov %s11125_s23  ;;  %17 = sbr.rel (!%p15_p7) target bundleno = 5 (0x5), region = 91 }
 0x552   :  { %4049 = vsyncpa [#allocation6], 1 }
 0x553   :  { %4051 = vsyncpa [#allocation6 + $0x1], 1 }
 0x554   :  { %4052 = vsyncpa [#allocation7], 1 }
 0x555   :  { %4054 = vsyncpa [#allocation7 + $0x1], 1 }

</bundles_post_ra>
